<compile_context>
chip_gen: v6e
topology: v6e:2x2x1
jax: 0.10.0
libtpu: 0.0.40
codegen_flags: <defaults>
</compile_context>

<pallas_src>
import functools

import jax
import jax.numpy as jnp
from jax.experimental import pallas as pl
from jax.experimental.pallas import tpu as pltpu


# ------------------------------ fused kernel --------------------------------


def _band_split_kernel(
        x_ref, f_ref, g_ref,
        wc_ref, bc_ref, w1_ref, b1_ref, w2_ref, b2_ref, wcc_ref, bcc_ref,
        al_ref, o_ref,
        *, H, W, N, in_split, f_split, g_in, out_split, shortcut):
    """One split of Bandmodulation over the whole (lane-packed) batch.

    x_ref  : (in_split, H, N*W)  VMEM -- this split's slice of `input`
    f_ref  : (f_split, H, N*W)   VMEM -- this split's slice of `f_input`
    g_ref  : (g_in, H, N*W)      VMEM -- g_input (copy_wight folded into fc1 w)
    w*_ref : (split, 9*cin*cout) SMEM -- flattened 3x3 weights (dy, dx, ci, co)
    b*_ref : (split, cout)       SMEM
    al_ref : (split, 2)          SMEM -- [fc1 PReLU alpha, gate PReLU alpha]
    o_ref  : (out_split, H, N*W) VMEM
    """
    s = pl.program_id(0)
    NW = N * W

    # 3x3 'same'-padding halo masks for the lane-packed (H, N*W) planes:
    # row 0 / row H-1 and each image's first / last column must read zero for
    # taps that step off the image (rolls wrap circularly and across the
    # packed batch boundary).  Built once, reused by all four conv stages.
    row = jax.lax.broadcasted_iota(jnp.int32, (H, NW), 0)
    col = jax.lax.broadcasted_iota(jnp.int32, (H, NW), 1) % W   # per-image col
    row_keep = (row > 0, None, row < H - 1)      # dy = 0, 1, 2
    col_keep = (col > 0, None, col < W - 1)      # dx = 0, 1, 2
    keep = {}
    for dy in range(3):
        for dx in range(3):
            rk, ck = row_keep[dy], col_keep[dx]
            if rk is None:
                keep[dy, dx] = ck
            elif ck is None:
                keep[dy, dx] = rk
            else:
                keep[dy, dx] = jnp.logical_and(rk, ck)

    def tap(plane, dy, dx):
        """plane shifted so out(y,x) reads in(y+dy-1, x+dx-1); zeros at halo."""
        p = plane
        if dy != 1:
            p = pltpu.roll(p, shift=(1 - dy) % H, axis=0)    # sublane roll (XLU)
        if dx != 1:
            p = pltpu.roll(p, shift=(1 - dx) % NW, axis=1)   # lane roll (XLU)
        k = keep[dy, dx]
        return p if k is None else jnp.where(k, p, 0.0)

    def conv3x3(planes, cout, w_ref, b_ref):
        """3x3 same conv: scalar SMEM weights x lane-dense planes on the VPU."""
        cin = len(planes)
        accs = [None] * cout
        # TODO(synk): for production H*W, bound accumulator live ranges with a
        # short unrolled lax.fori_loop over row tiles so <=64 vregs stay live.
        for dy in range(3):
            for dx in range(3):
                for ci in range(cin):
                    t = tap(planes[ci], dy, dx)
                    base = ((dy * 3 + dx) * cin + ci) * cout
                    for co in range(cout):
                        w = w_ref[s, base + co]
                        accs[co] = (w * t if accs[co] is None
                                    else accs[co] + w * t)
        return [accs[co] + b_ref[s, co] for co in range(cout)]

    x_planes = [x_ref[c] for c in range(in_split)]

    # 1) split_fusion = conv_i(cat(t_input, t_fusion))
    split_fusion = conv3x3(
        x_planes + [f_ref[c] for c in range(f_split)], in_split, wc_ref, bc_ref)

    # 2) h = PReLU(fc1(g))   (copy_wight already folded into the fc1 weights)
    a1 = al_ref[s, 0]
    h = [jnp.where(p >= 0.0, p, a1 * p)
         for p in conv3x3([g_ref[c] for c in range(g_in)], in_split,
                          w1_ref, b1_ref)]

    # 3) scale, translation = split(fc2(h), in_split)
    st = conv3x3(h, 2 * in_split, w2_ref, b2_ref)
    scale, trans = st[:in_split], st[in_split:]

    # 4) gated = PReLU(split_fusion * sigmoid(scale) + translation)
    ag = al_ref[s, 1]
    gated = []
    for c in range(in_split):
        # EUP exp + EUP approx reciprocal (use approx=False for bit-parity).
        sig = pl.reciprocal(1.0 + jnp.exp(-scale[c]), approx=True)
        y = split_fusion[c] * sig + trans[c]
        gated.append(jnp.where(y >= 0.0, y, ag * y))

    # 5) out = cconv(gated)  (+ residual when in_channels == out_channels)
    out = conv3x3(gated, out_split, wcc_ref, bcc_ref)
    for co in range(out_split):
        res = out[co]
        if shortcut:
            res = res + x_planes[co]
        o_ref[co] = res.astype(o_ref.dtype)


# ------------------------------ wrapper --------------------------------------


def _pack_nchw(a):
    """(N, C, H, W) -> (C, H, N*W): fold the batch onto the lane axis."""
    n, c, h, w = a.shape
    return jnp.transpose(a, (1, 2, 0, 3)).reshape(c, h, n * w)


def _unpack_nchw(a, n):
    """(C, H, N*W) -> (N, C, H, W)."""
    c, h, nw = a.shape
    return jnp.transpose(a.reshape(c, h, n, nw // n), (2, 0, 1, 3))


def bandmodulation_forward(packed, cfg, x, f_x, g_x):
    """x: (N, in_ch, H, W), f_x: (N, f_ch, H, W), g_x: (N, g_in, H, W)."""
    (w_conv, b_conv, w_fc1, b_fc1, w_fc2, b_fc2, w_cc, b_cc, alphas) = packed
    N, in_ch, H, W = x.shape
    split = cfg["split"]
    in_split = in_ch // split
    f_split = f_x.shape[1] // split
    g_in = g_x.shape[1]
    out_ch = cfg["out_channels"]
    out_split = out_ch // split
    shortcut = (cfg["in_channels"] == out_ch)
    NW = N * W

    kern = functools.partial(
        _band_split_kernel, H=H, W=W, N=N, in_split=in_split, f_split=f_split,
        g_in=g_in, out_split=out_split, shortcut=shortcut)

    smem = pl.BlockSpec(memory_space=pltpu.MemorySpace.SMEM)

    # Lane-packed layout: wrapper-side transpose/reshape is layout plumbing;
    # the kernel sees lane-dense (H, N*W) planes and a lane-dense output slab.
    x_p, f_p, g_p = _pack_nchw(x), _pack_nchw(f_x), _pack_nchw(g_x)

    # NOTE: on v6e/v7x the HBM boundary could be bf16 (cast in/out, f32
    # accumulate) to halve bytes moved; kept f32 so the v5e path and the exact
    # reference check share one code path.
    # TODO(synk): for production H/W add an H row-tile grid axis ("arbitrary",
    # 4-row halo for the fused 4-conv chain) and set vmem_limit_bytes so the
    # block set fits v7x's 64 MiB physical / 32 MiB scoped VMEM (16 MiB v5e).
    out_p = pl.pallas_call(
        kern,
        out_shape=jax.ShapeDtypeStruct((out_ch, H, NW), x.dtype),
        grid=(split,),
        in_specs=[
            pl.BlockSpec((in_split, H, NW), lambda s: (s, 0, 0)),
            pl.BlockSpec((f_split, H, NW), lambda s: (s, 0, 0)),
            # constant block index -> g_input is fetched once, reused each step
            pl.BlockSpec((g_in, H, NW), lambda s: (0, 0, 0)),
            smem, smem, smem, smem, smem, smem, smem, smem, smem,
        ],
        out_specs=pl.BlockSpec((out_split, H, NW), lambda s: (s, 0, 0)),
        compiler_params=pltpu.CompilerParams(
            # "parallel" lets v7x's 2 TensorCores shard the splits 2-per-core.
            dimension_semantics=("parallel",)),
    )(x_p, f_p, g_p, w_conv, b_conv, w_fc1, b_fc1, w_fc2, b_fc2, w_cc, b_cc,
      alphas)
    return _unpack_nchw(out_p, N)


# ------------------------- parameters & packing -----------------------------


def init_conv(key, cin, cout):
    kw, kb = jax.random.split(key)
    w = jax.random.normal(kw, (3, 3, cin, cout), jnp.float32) * 0.1   # HWIO
    b = jax.random.normal(kb, (cout,), jnp.float32) * 0.01
    return w, b


def init_bandmodulation(key, in_channels, out_channels, f_channels=4,
                        split=4, copy_wight=3, g_inchannels=1):
    in_split = in_channels // split
    f_split = f_channels // split
    out_split = out_channels // split
    params = []
    keys = jax.random.split(key, split)
    for i in range(split):
        k = jax.random.split(keys[i], 4)
        params.append({
            # Bandmodulation.conv{i}: Conv2d(in_split+f_split -> in_split)
            "conv": init_conv(k[0], in_split + f_split, in_split),
            # CConv.fc: Conv2d(copy_wight*g_in -> in_split) -> PReLU(0.5)
            #           -> Conv2d(in_split -> 2*in_split)
            "fc1": init_conv(k[1], copy_wight * g_inchannels, in_split),
            "fc1_alpha": 0.5,
            "fc2": init_conv(k[2], in_split, 2 * in_split),
            # CConv.conv: Conv2d(in_split -> out_split)
            "cconv": init_conv(k[3], in_split, out_split),
            "gate_alpha": 0.5,
        })
    cfg = dict(in_channels=in_channels, out_channels=out_channels,
               f_channels=f_channels, split=split, copy_wight=copy_wight,
               g_inchannels=g_inchannels)
    return params, cfg


def pack_params(params, cfg):
    """Stack per-split weights into flat SMEM scalar tables for the kernel."""
    copy, g_in = cfg["copy_wight"], cfg["g_inchannels"]

    def flat(w):        # (3,3,cin,cout) -> (9*cin*cout,) in (dy, dx, ci, co)
        return w.reshape(-1)

    def fold_fc1(w):
        # conv over [g]*copy with weights w == conv over g with the weights
        # summed over the `copy` replicas of each g channel (exact).
        kh, kw, _, cout = w.shape
        return w.reshape(kh, kw, copy, g_in, cout).sum(axis=2)

    stack = lambda fn: jnp.stack([fn(p) for p in params])
    return (
        stack(lambda p: flat(p["conv"][0])), stack(lambda p: p["conv"][1]),
        stack(lambda p: flat(fold_fc1(p["fc1"][0]))),
        stack(lambda p: p["fc1"][1]),
        stack(lambda p: flat(p["fc2"][0])), stack(lambda p: p["fc2"][1]),
        stack(lambda p: flat(p["cconv"][0])), stack(lambda p: p["cconv"][1]),
        jnp.array([[p["fc1_alpha"], p["gate_alpha"]] for p in params],
                  jnp.float32),
    )


# ------------------------------ pure-JAX reference --------------------------


def _ref_conv3x3(x, w, b, prelu_alpha=None):
    y = jax.lax.conv_general_dilated(
        x, w, window_strides=(1, 1), padding="SAME",
        dimension_numbers=("NCHW", "HWIO", "NCHW"),
        precision=jax.lax.Precision.HIGHEST) + b.reshape(1, -1, 1, 1)
    if prelu_alpha is not None:
        y = jnp.where(y >= 0.0, y, prelu_alpha * y)
    return y


def _ref_cconv(p, x, g_x):
    h = _ref_conv3x3(g_x, *p["fc1"], prelu_alpha=p["fc1_alpha"])
    st = _ref_conv3x3(h, *p["fc2"])
    c = x.shape[1]
    scale, translation = st[:, :c], st[:, c:]
    y = x * jax.nn.sigmoid(scale) + translation
    y = jnp.where(y >= 0.0, y, p["gate_alpha"] * y)
    return _ref_conv3x3(y, *p["cconv"])


def bandmodulation_ref(params, cfg, x, f_x, g_x):
    split = cfg["split"]
    in_split = cfg["in_channels"] // split
    f_split = cfg["f_channels"] // split
    shortcut = cfg["in_channels"] == cfg["out_channels"]
    g_cat = jnp.concatenate([g_x] * cfg["copy_wight"], axis=1)
    outs = []
    for i in range(split):
        t_in = x[:, i * in_split:(i + 1) * in_split]
        t_f = f_x[:, i * f_split:(i + 1) * f_split]
        p = params[i]
        sf = _ref_conv3x3(jnp.concatenate([t_in, t_f], axis=1), *p["conv"])
        outs.append(_ref_cconv(p, sf, g_cat))
    out = jnp.concatenate(outs, axis=1)
    if shortcut:
        out = out + x
    return out


# ----------------------------------- main -----------------------------------


if __name__ == "__main__":
    key = jax.random.PRNGKey(0)
    k_p, k_x, k_f, k_g = jax.random.split(key, 4)

    N, H, W = 2, 16, 16
    in_channels, out_channels, f_channels, g_in = 8, 8, 4, 1

    params, cfg = init_bandmodulation(
        k_p, in_channels, out_channels, f_channels=f_channels,
        split=4, copy_wight=3, g_inchannels=g_in)
    packed = pack_params(params, cfg)

    x = jax.random.normal(k_x, (N, in_channels, H, W), jnp.float32)
    f_x = jax.random.normal(k_f, (N, f_channels, H, W), jnp.float32)
    g_x = jax.random.normal(k_g, (N, g_in, H, W), jnp.float32)

    out = bandmodulation_forward(packed, cfg, x, f_x, g_x)
    out = jax.block_until_ready(out)

    ref = bandmodulation_ref(params, cfg, x, f_x, g_x)
    assert out.shape == (N, out_channels, H, W), out.shape
    max_err = float(jnp.max(jnp.abs(out - ref)))
    assert jnp.allclose(out, ref, atol=2e-3, rtol=2e-3), max_err

    print("KERNEL_OK")
</pallas_src>

<mosaic_0001>
module attributes {stable_mosaic.version = 11 : i64} {
  func.func @_band_split_kernel(%arg0: i32, %arg1: memref<2x16x32xf32, #tpu.memory_space<vmem>>, %arg2: memref<1x16x32xf32, #tpu.memory_space<vmem>>, %arg3: memref<1x16x32xf32, #tpu.memory_space<vmem>>, %arg4: memref<4x54xf32, #tpu.memory_space<smem>>, %arg5: memref<4x2xf32, #tpu.memory_space<smem>>, %arg6: memref<4x18xf32, #tpu.memory_space<smem>>, %arg7: memref<4x2xf32, #tpu.memory_space<smem>>, %arg8: memref<4x72xf32, #tpu.memory_space<smem>>, %arg9: memref<4x4xf32, #tpu.memory_space<smem>>, %arg10: memref<4x36xf32, #tpu.memory_space<smem>>, %arg11: memref<4x2xf32, #tpu.memory_space<smem>>, %arg12: memref<4x2xf32, #tpu.memory_space<smem>>, %arg13: memref<2x16x32xf32, #tpu.memory_space<vmem>>) attributes {dimension_semantics = [#tpu.dimension_semantics<parallel>], iteration_bounds = array<i64: 4>, scalar_prefetch = 0 : i64, scratch_operands = 0 : i64, tpu.core_type = #tpu.core_type<tc>, window_params = [{transform_indices = @transform_0, window_bounds = array<i64: 2, 16, 32>}, {transform_indices = @transform_1, window_bounds = array<i64: 1, 16, 32>}, {pipeline_mode = #tpu.pipeline_mode<synchronous>, transform_indices = @transform_2, window_bounds = array<i64: 1, 16, 32>}, {transform_indices = @transform_3, window_bounds = array<i64: 4, 54>}, {transform_indices = @transform_4, window_bounds = array<i64: 4, 2>}, {transform_indices = @transform_5, window_bounds = array<i64: 4, 18>}, {transform_indices = @transform_6, window_bounds = array<i64: 4, 2>}, {transform_indices = @transform_7, window_bounds = array<i64: 4, 72>}, {transform_indices = @transform_8, window_bounds = array<i64: 4, 4>}, {transform_indices = @transform_9, window_bounds = array<i64: 4, 36>}, {transform_indices = @transform_10, window_bounds = array<i64: 4, 2>}, {transform_indices = @transform_11, window_bounds = array<i64: 4, 2>}, {transform_indices = @transform_12, window_bounds = array<i64: 2, 16, 32>}]} {
    %0 = tpu.iota {dimensions = array<i32: 0>} : vector<16x32xi32>
    %1 = tpu.iota {dimensions = array<i32: 1>} : vector<16x32xi32>
    %c16_i32 = arith.constant 16 : i32
    %c0_i32 = arith.constant 0 : i32
    %2 = arith.cmpi eq, %c16_i32, %c0_i32 : i32
    %c1_i32 = arith.constant 1 : i32
    %3 = arith.select %2, %c1_i32, %c16_i32 : i32
    %4 = vector.broadcast %3 : i32 to vector<16x32xi32>
    %5 = arith.remsi %1, %4 : vector<16x32xi32>
    %c0_i32_0 = arith.constant 0 : i32
    %6 = vector.broadcast %c0_i32_0 : i32 to vector<16x32xi32>
    %7 = arith.cmpi ne, %5, %6 : vector<16x32xi32>
    %c0_i32_1 = arith.constant 0 : i32
    %8 = vector.broadcast %c0_i32_1 : i32 to vector<16x32xi32>
    %9 = arith.cmpi slt, %5, %8 : vector<16x32xi32>
    %c0_i32_2 = arith.constant 0 : i32
    %10 = arith.cmpi slt, %3, %c0_i32_2 : i32
    %11 = vector.broadcast %10 : i1 to vector<16x32xi1>
    %12 = vector.broadcast %11 : vector<16x32xi1> to vector<16x32xi1>
    %13 = arith.xori %9, %12 : vector<16x32xi1>
    %14 = arith.andi %13, %7 : vector<16x32xi1>
    %15 = vector.broadcast %3 : i32 to vector<16x32xi32>
    %16 = arith.addi %5, %15 : vector<16x32xi32>
    %17 = arith.select %14, %16, %5 : vector<16x32xi1>, vector<16x32xi32>
    %c0_i32_3 = arith.constant 0 : i32
    %18 = vector.broadcast %c0_i32_3 : i32 to vector<16x32xi32>
    %19 = arith.cmpi sgt, %0, %18 : vector<16x32xi32>
    %c15_i32 = arith.constant 15 : i32
    %20 = vector.broadcast %c15_i32 : i32 to vector<16x32xi32>
    %21 = arith.cmpi slt, %0, %20 : vector<16x32xi32>
    %c0_i32_4 = arith.constant 0 : i32
    %22 = vector.broadcast %c0_i32_4 : i32 to vector<16x32xi32>
    %23 = arith.cmpi sgt, %17, %22 : vector<16x32xi32>
    %c15_i32_5 = arith.constant 15 : i32
    %24 = vector.broadcast %c15_i32_5 : i32 to vector<16x32xi32>
    %25 = arith.cmpi slt, %17, %24 : vector<16x32xi32>
    %26 = arith.andi %19, %23 : vector<16x32xi1>
    %27 = arith.andi %19, %25 : vector<16x32xi1>
    %28 = arith.andi %21, %23 : vector<16x32xi1>
    %29 = arith.andi %21, %25 : vector<16x32xi1>
    %c0 = arith.constant 0 : index
    %c0_6 = arith.constant 0 : index
    %c0_7 = arith.constant 0 : index
    %30 = vector.load %arg1[%c0, %c0_6, %c0_7] : memref<2x16x32xf32, #tpu.memory_space<vmem>>, vector<1x16x32xf32>
    %31 = vector.shape_cast %30 : vector<1x16x32xf32> to vector<16x32xf32>
    %c1 = arith.constant 1 : index
    %c0_8 = arith.constant 0 : index
    %c0_9 = arith.constant 0 : index
    %32 = vector.load %arg1[%c1, %c0_8, %c0_9] : memref<2x16x32xf32, #tpu.memory_space<vmem>>, vector<1x16x32xf32>
    %33 = vector.shape_cast %32 : vector<1x16x32xf32> to vector<16x32xf32>
    %c0_10 = arith.constant 0 : index
    %c0_11 = arith.constant 0 : index
    %c0_12 = arith.constant 0 : index
    %34 = vector.load %arg2[%c0_10, %c0_11, %c0_12] : memref<1x16x32xf32, #tpu.memory_space<vmem>>, vector<1x16x32xf32>
    %35 = vector.shape_cast %34 : vector<1x16x32xf32> to vector<16x32xf32>
    %c1_i32_13 = arith.constant 1 : i32
    %36 = tpu.dynamic_rotate %31 by %c1_i32_13 dim 0 : vector<16x32xf32>, i32 -> vector<16x32xf32>
    %c1_i32_14 = arith.constant 1 : i32
    %37 = tpu.dynamic_rotate %36 by %c1_i32_14 dim 1 : vector<16x32xf32>, i32 -> vector<16x32xf32>
    %cst = arith.constant 0.000000e+00 : f32
    %38 = vector.broadcast %cst : f32 to vector<16x32xf32>
    %39 = arith.select %26, %37, %38 : vector<16x32xi1>, vector<16x32xf32>
    %40 = arith.index_cast %arg0 : i32 to index
    %c0_15 = arith.constant 0 : index
    %41 = memref.load %arg4[%40, %c0_15] : memref<4x54xf32, #tpu.memory_space<smem>>
    %42 = vector.broadcast %41 : f32 to vector<16x32xf32>
    %43 = arith.mulf %42, %39 : vector<16x32xf32>
    %44 = arith.index_cast %arg0 : i32 to index
    %c1_16 = arith.constant 1 : index
    %45 = memref.load %arg4[%44, %c1_16] : memref<4x54xf32, #tpu.memory_space<smem>>
    %46 = vector.broadcast %45 : f32 to vector<16x32xf32>
    %47 = arith.mulf %46, %39 : vector<16x32xf32>
    %c1_i32_17 = arith.constant 1 : i32
    %48 = tpu.dynamic_rotate %33 by %c1_i32_17 dim 0 : vector<16x32xf32>, i32 -> vector<16x32xf32>
    %c1_i32_18 = arith.constant 1 : i32
    %49 = tpu.dynamic_rotate %48 by %c1_i32_18 dim 1 : vector<16x32xf32>, i32 -> vector<16x32xf32>
    %cst_19 = arith.constant 0.000000e+00 : f32
    %50 = vector.broadcast %cst_19 : f32 to vector<16x32xf32>
    %51 = arith.select %26, %49, %50 : vector<16x32xi1>, vector<16x32xf32>
    %52 = arith.index_cast %arg0 : i32 to index
    %c2 = arith.constant 2 : index
    %53 = memref.load %arg4[%52, %c2] : memref<4x54xf32, #tpu.memory_space<smem>>
    %54 = vector.broadcast %53 : f32 to vector<16x32xf32>
    %55 = arith.mulf %54, %51 : vector<16x32xf32>
    %56 = arith.addf %43, %55 : vector<16x32xf32>
    %57 = arith.index_cast %arg0 : i32 to index
    %c3 = arith.constant 3 : index
    %58 = memref.load %arg4[%57, %c3] : memref<4x54xf32, #tpu.memory_space<smem>>
    %59 = vector.broadcast %58 : f32 to vector<16x32xf32>
    %60 = arith.mulf %59, %51 : vector<16x32xf32>
    %61 = arith.addf %47, %60 : vector<16x32xf32>
    %c1_i32_20 = arith.constant 1 : i32
    %62 = tpu.dynamic_rotate %35 by %c1_i32_20 dim 0 : vector<16x32xf32>, i32 -> vector<16x32xf32>
    %c1_i32_21 = arith.constant 1 : i32
    %63 = tpu.dynamic_rotate %62 by %c1_i32_21 dim 1 : vector<16x32xf32>, i32 -> vector<16x32xf32>
    %cst_22 = arith.constant 0.000000e+00 : f32
    %64 = vector.broadcast %cst_22 : f32 to vector<16x32xf32>
    %65 = arith.select %26, %63, %64 : vector<16x32xi1>, vector<16x32xf32>
    %66 = arith.index_cast %arg0 : i32 to index
    %c4 = arith.constant 4 : index
    %67 = memref.load %arg4[%66, %c4] : memref<4x54xf32, #tpu.memory_space<smem>>
    %68 = vector.broadcast %67 : f32 to vector<16x32xf32>
    %69 = arith.mulf %68, %65 : vector<16x32xf32>
    %70 = arith.addf %56, %69 : vector<16x32xf32>
    %71 = arith.index_cast %arg0 : i32 to index
    %c5 = arith.constant 5 : index
    %72 = memref.load %arg4[%71, %c5] : memref<4x54xf32, #tpu.memory_space<smem>>
    %73 = vector.broadcast %72 : f32 to vector<16x32xf32>
    %74 = arith.mulf %73, %65 : vector<16x32xf32>
    %75 = arith.addf %61, %74 : vector<16x32xf32>
    %c1_i32_23 = arith.constant 1 : i32
    %76 = tpu.dynamic_rotate %31 by %c1_i32_23 dim 0 : vector<16x32xf32>, i32 -> vector<16x32xf32>
    %cst_24 = arith.constant 0.000000e+00 : f32
    %77 = vector.broadcast %cst_24 : f32 to vector<16x32xf32>
    %78 = arith.select %19, %76, %77 : vector<16x32xi1>, vector<16x32xf32>
    %79 = arith.index_cast %arg0 : i32 to index
    %c6 = arith.constant 6 : index
    %80 = memref.load %arg4[%79, %c6] : memref<4x54xf32, #tpu.memory_space<smem>>
    %81 = vector.broadcast %80 : f32 to vector<16x32xf32>
    %82 = arith.mulf %81, %78 : vector<16x32xf32>
    %83 = arith.addf %70, %82 : vector<16x32xf32>
    %84 = arith.index_cast %arg0 : i32 to index
    %c7 = arith.constant 7 : index
    %85 = memref.load %arg4[%84, %c7] : memref<4x54xf32, #tpu.memory_space<smem>>
    %86 = vector.broadcast %85 : f32 to vector<16x32xf32>
    %87 = arith.mulf %86, %78 : vector<16x32xf32>
    %88 = arith.addf %75, %87 : vector<16x32xf32>
    %c1_i32_25 = arith.constant 1 : i32
    %89 = tpu.dynamic_rotate %33 by %c1_i32_25 dim 0 : vector<16x32xf32>, i32 -> vector<16x32xf32>
    %cst_26 = arith.constant 0.000000e+00 : f32
    %90 = vector.broadcast %cst_26 : f32 to vector<16x32xf32>
    %91 = arith.select %19, %89, %90 : vector<16x32xi1>, vector<16x32xf32>
    %92 = arith.index_cast %arg0 : i32 to index
    %c8 = arith.constant 8 : index
    %93 = memref.load %arg4[%92, %c8] : memref<4x54xf32, #tpu.memory_space<smem>>
    %94 = vector.broadcast %93 : f32 to vector<16x32xf32>
    %95 = arith.mulf %94, %91 : vector<16x32xf32>
    %96 = arith.addf %83, %95 : vector<16x32xf32>
    %97 = arith.index_cast %arg0 : i32 to index
    %c9 = arith.constant 9 : index
    %98 = memref.load %arg4[%97, %c9] : memref<4x54xf32, #tpu.memory_space<smem>>
    %99 = vector.broadcast %98 : f32 to vector<16x32xf32>
    %100 = arith.mulf %99, %91 : vector<16x32xf32>
    %101 = arith.addf %88, %100 : vector<16x32xf32>
    %c1_i32_27 = arith.constant 1 : i32
    %102 = tpu.dynamic_rotate %35 by %c1_i32_27 dim 0 : vector<16x32xf32>, i32 -> vector<16x32xf32>
    %cst_28 = arith.constant 0.000000e+00 : f32
    %103 = vector.broadcast %cst_28 : f32 to vector<16x32xf32>
    %104 = arith.select %19, %102, %103 : vector<16x32xi1>, vector<16x32xf32>
    %105 = arith.index_cast %arg0 : i32 to index
    %c10 = arith.constant 10 : index
    %106 = memref.load %arg4[%105, %c10] : memref<4x54xf32, #tpu.memory_space<smem>>
    %107 = vector.broadcast %106 : f32 to vector<16x32xf32>
    %108 = arith.mulf %107, %104 : vector<16x32xf32>
    %109 = arith.addf %96, %108 : vector<16x32xf32>
    %110 = arith.index_cast %arg0 : i32 to index
    %c11 = arith.constant 11 : index
    %111 = memref.load %arg4[%110, %c11] : memref<4x54xf32, #tpu.memory_space<smem>>
    %112 = vector.broadcast %111 : f32 to vector<16x32xf32>
    %113 = arith.mulf %112, %104 : vector<16x32xf32>
    %114 = arith.addf %101, %113 : vector<16x32xf32>
    %c1_i32_29 = arith.constant 1 : i32
    %115 = tpu.dynamic_rotate %31 by %c1_i32_29 dim 0 : vector<16x32xf32>, i32 -> vector<16x32xf32>
    %c31_i32 = arith.constant 31 : i32
    %116 = tpu.dynamic_rotate %115 by %c31_i32 dim 1 : vector<16x32xf32>, i32 -> vector<16x32xf32>
    %cst_30 = arith.constant 0.000000e+00 : f32
    %117 = vector.broadcast %cst_30 : f32 to vector<16x32xf32>
    %118 = arith.select %27, %116, %117 : vector<16x32xi1>, vector<16x32xf32>
    %119 = arith.index_cast %arg0 : i32 to index
    %c12 = arith.constant 12 : index
    %120 = memref.load %arg4[%119, %c12] : memref<4x54xf32, #tpu.memory_space<smem>>
    %121 = vector.broadcast %120 : f32 to vector<16x32xf32>
    %122 = arith.mulf %121, %118 : vector<16x32xf32>
    %123 = arith.addf %109, %122 : vector<16x32xf32>
    %124 = arith.index_cast %arg0 : i32 to index
    %c13 = arith.constant 13 : index
    %125 = memref.load %arg4[%124, %c13] : memref<4x54xf32, #tpu.memory_space<smem>>
    %126 = vector.broadcast %125 : f32 to vector<16x32xf32>
    %127 = arith.mulf %126, %118 : vector<16x32xf32>
    %128 = arith.addf %114, %127 : vector<16x32xf32>
    %c1_i32_31 = arith.constant 1 : i32
    %129 = tpu.dynamic_rotate %33 by %c1_i32_31 dim 0 : vector<16x32xf32>, i32 -> vector<16x32xf32>
    %c31_i32_32 = arith.constant 31 : i32
    %130 = tpu.dynamic_rotate %129 by %c31_i32_32 dim 1 : vector<16x32xf32>, i32 -> vector<16x32xf32>
    %cst_33 = arith.constant 0.000000e+00 : f32
    %131 = vector.broadcast %cst_33 : f32 to vector<16x32xf32>
    %132 = arith.select %27, %130, %131 : vector<16x32xi1>, vector<16x32xf32>
    %133 = arith.index_cast %arg0 : i32 to index
    %c14 = arith.constant 14 : index
    %134 = memref.load %arg4[%133, %c14] : memref<4x54xf32, #tpu.memory_space<smem>>
    %135 = vector.broadcast %134 : f32 to vector<16x32xf32>
    %136 = arith.mulf %135, %132 : vector<16x32xf32>
    %137 = arith.addf %123, %136 : vector<16x32xf32>
    %138 = arith.index_cast %arg0 : i32 to index
    %c15 = arith.constant 15 : index
    %139 = memref.load %arg4[%138, %c15] : memref<4x54xf32, #tpu.memory_space<smem>>
    %140 = vector.broadcast %139 : f32 to vector<16x32xf32>
    %141 = arith.mulf %140, %132 : vector<16x32xf32>
    %142 = arith.addf %128, %141 : vector<16x32xf32>
    %c1_i32_34 = arith.constant 1 : i32
    %143 = tpu.dynamic_rotate %35 by %c1_i32_34 dim 0 : vector<16x32xf32>, i32 -> vector<16x32xf32>
    %c31_i32_35 = arith.constant 31 : i32
    %144 = tpu.dynamic_rotate %143 by %c31_i32_35 dim 1 : vector<16x32xf32>, i32 -> vector<16x32xf32>
    %cst_36 = arith.constant 0.000000e+00 : f32
    %145 = vector.broadcast %cst_36 : f32 to vector<16x32xf32>
    %146 = arith.select %27, %144, %145 : vector<16x32xi1>, vector<16x32xf32>
    %147 = arith.index_cast %arg0 : i32 to index
    %c16 = arith.constant 16 : index
    %148 = memref.load %arg4[%147, %c16] : memref<4x54xf32, #tpu.memory_space<smem>>
    %149 = vector.broadcast %148 : f32 to vector<16x32xf32>
    %150 = arith.mulf %149, %146 : vector<16x32xf32>
    %151 = arith.addf %137, %150 : vector<16x32xf32>
    %152 = arith.index_cast %arg0 : i32 to index
    %c17 = arith.constant 17 : index
    %153 = memref.load %arg4[%152, %c17] : memref<4x54xf32, #tpu.memory_space<smem>>
    %154 = vector.broadcast %153 : f32 to vector<16x32xf32>
    %155 = arith.mulf %154, %146 : vector<16x32xf32>
    %156 = arith.addf %142, %155 : vector<16x32xf32>
    %c1_i32_37 = arith.constant 1 : i32
    %157 = tpu.dynamic_rotate %31 by %c1_i32_37 dim 1 : vector<16x32xf32>, i32 -> vector<16x32xf32>
    %cst_38 = arith.constant 0.000000e+00 : f32
    %158 = vector.broadcast %cst_38 : f32 to vector<16x32xf32>
    %159 = arith.select %23, %157, %158 : vector<16x32xi1>, vector<16x32xf32>
    %160 = arith.index_cast %arg0 : i32 to index
    %c18 = arith.constant 18 : index
    %161 = memref.load %arg4[%160, %c18] : memref<4x54xf32, #tpu.memory_space<smem>>
    %162 = vector.broadcast %161 : f32 to vector<16x32xf32>
    %163 = arith.mulf %162, %159 : vector<16x32xf32>
    %164 = arith.addf %151, %163 : vector<16x32xf32>
    %165 = arith.index_cast %arg0 : i32 to index
    %c19 = arith.constant 19 : index
    %166 = memref.load %arg4[%165, %c19] : memref<4x54xf32, #tpu.memory_space<smem>>
    %167 = vector.broadcast %166 : f32 to vector<16x32xf32>
    %168 = arith.mulf %167, %159 : vector<16x32xf32>
    %169 = arith.addf %156, %168 : vector<16x32xf32>
    %c1_i32_39 = arith.constant 1 : i32
    %170 = tpu.dynamic_rotate %33 by %c1_i32_39 dim 1 : vector<16x32xf32>, i32 -> vector<16x32xf32>
    %cst_40 = arith.constant 0.000000e+00 : f32
    %171 = vector.broadcast %cst_40 : f32 to vector<16x32xf32>
    %172 = arith.select %23, %170, %171 : vector<16x32xi1>, vector<16x32xf32>
    %173 = arith.index_cast %arg0 : i32 to index
    %c20 = arith.constant 20 : index
    %174 = memref.load %arg4[%173, %c20] : memref<4x54xf32, #tpu.memory_space<smem>>
    %175 = vector.broadcast %174 : f32 to vector<16x32xf32>
    %176 = arith.mulf %175, %172 : vector<16x32xf32>
    %177 = arith.addf %164, %176 : vector<16x32xf32>
    %178 = arith.index_cast %arg0 : i32 to index
    %c21 = arith.constant 21 : index
    %179 = memref.load %arg4[%178, %c21] : memref<4x54xf32, #tpu.memory_space<smem>>
    %180 = vector.broadcast %179 : f32 to vector<16x32xf32>
    %181 = arith.mulf %180, %172 : vector<16x32xf32>
    %182 = arith.addf %169, %181 : vector<16x32xf32>
    %c1_i32_41 = arith.constant 1 : i32
    %183 = tpu.dynamic_rotate %35 by %c1_i32_41 dim 1 : vector<16x32xf32>, i32 -> vector<16x32xf32>
    %cst_42 = arith.constant 0.000000e+00 : f32
    %184 = vector.broadcast %cst_42 : f32 to vector<16x32xf32>
    %185 = arith.select %23, %183, %184 : vector<16x32xi1>, vector<16x32xf32>
    %186 = arith.index_cast %arg0 : i32 to index
    %c22 = arith.constant 22 : index
    %187 = memref.load %arg4[%186, %c22] : memref<4x54xf32, #tpu.memory_space<smem>>
    %188 = vector.broadcast %187 : f32 to vector<16x32xf32>
    %189 = arith.mulf %188, %185 : vector<16x32xf32>
    %190 = arith.addf %177, %189 : vector<16x32xf32>
    %191 = arith.index_cast %arg0 : i32 to index
    %c23 = arith.constant 23 : index
    %192 = memref.load %arg4[%191, %c23] : memref<4x54xf32, #tpu.memory_space<smem>>
    %193 = vector.broadcast %192 : f32 to vector<16x32xf32>
    %194 = arith.mulf %193, %185 : vector<16x32xf32>
    %195 = arith.addf %182, %194 : vector<16x32xf32>
    %196 = arith.index_cast %arg0 : i32 to index
    %c24 = arith.constant 24 : index
    %197 = memref.load %arg4[%196, %c24] : memref<4x54xf32, #tpu.memory_space<smem>>
    %198 = vector.broadcast %197 : f32 to vector<16x32xf32>
    %199 = arith.mulf %198, %31 : vector<16x32xf32>
    %200 = arith.addf %190, %199 : vector<16x32xf32>
    %201 = arith.index_cast %arg0 : i32 to index
    %c25 = arith.constant 25 : index
    %202 = memref.load %arg4[%201, %c25] : memref<4x54xf32, #tpu.memory_space<smem>>
    %203 = vector.broadcast %202 : f32 to vector<16x32xf32>
    %204 = arith.mulf %203, %31 : vector<16x32xf32>
    %205 = arith.addf %195, %204 : vector<16x32xf32>
    %206 = arith.index_cast %arg0 : i32 to index
    %c26 = arith.constant 26 : index
    %207 = memref.load %arg4[%206, %c26] : memref<4x54xf32, #tpu.memory_space<smem>>
    %208 = vector.broadcast %207 : f32 to vector<16x32xf32>
    %209 = arith.mulf %208, %33 : vector<16x32xf32>
    %210 = arith.addf %200, %209 : vector<16x32xf32>
    %211 = arith.index_cast %arg0 : i32 to index
    %c27 = arith.constant 27 : index
    %212 = memref.load %arg4[%211, %c27] : memref<4x54xf32, #tpu.memory_space<smem>>
    %213 = vector.broadcast %212 : f32 to vector<16x32xf32>
    %214 = arith.mulf %213, %33 : vector<16x32xf32>
    %215 = arith.addf %205, %214 : vector<16x32xf32>
    %216 = arith.index_cast %arg0 : i32 to index
    %c28 = arith.constant 28 : index
    %217 = memref.load %arg4[%216, %c28] : memref<4x54xf32, #tpu.memory_space<smem>>
    %218 = vector.broadcast %217 : f32 to vector<16x32xf32>
    %219 = arith.mulf %218, %35 : vector<16x32xf32>
    %220 = arith.addf %210, %219 : vector<16x32xf32>
    %221 = arith.index_cast %arg0 : i32 to index
    %c29 = arith.constant 29 : index
    %222 = memref.load %arg4[%221, %c29] : memref<4x54xf32, #tpu.memory_space<smem>>
    %223 = vector.broadcast %222 : f32 to vector<16x32xf32>
    %224 = arith.mulf %223, %35 : vector<16x32xf32>
    %225 = arith.addf %215, %224 : vector<16x32xf32>
    %c31_i32_43 = arith.constant 31 : i32
    %226 = tpu.dynamic_rotate %31 by %c31_i32_43 dim 1 : vector<16x32xf32>, i32 -> vector<16x32xf32>
    %cst_44 = arith.constant 0.000000e+00 : f32
    %227 = vector.broadcast %cst_44 : f32 to vector<16x32xf32>
    %228 = arith.select %25, %226, %227 : vector<16x32xi1>, vector<16x32xf32>
    %229 = arith.index_cast %arg0 : i32 to index
    %c30 = arith.constant 30 : index
    %230 = memref.load %arg4[%229, %c30] : memref<4x54xf32, #tpu.memory_space<smem>>
    %231 = vector.broadcast %230 : f32 to vector<16x32xf32>
    %232 = arith.mulf %231, %228 : vector<16x32xf32>
    %233 = arith.addf %220, %232 : vector<16x32xf32>
    %234 = arith.index_cast %arg0 : i32 to index
    %c31 = arith.constant 31 : index
    %235 = memref.load %arg4[%234, %c31] : memref<4x54xf32, #tpu.memory_space<smem>>
    %236 = vector.broadcast %235 : f32 to vector<16x32xf32>
    %237 = arith.mulf %236, %228 : vector<16x32xf32>
    %238 = arith.addf %225, %237 : vector<16x32xf32>
    %c31_i32_45 = arith.constant 31 : i32
    %239 = tpu.dynamic_rotate %33 by %c31_i32_45 dim 1 : vector<16x32xf32>, i32 -> vector<16x32xf32>
    %cst_46 = arith.constant 0.000000e+00 : f32
    %240 = vector.broadcast %cst_46 : f32 to vector<16x32xf32>
    %241 = arith.select %25, %239, %240 : vector<16x32xi1>, vector<16x32xf32>
    %242 = arith.index_cast %arg0 : i32 to index
    %c32 = arith.constant 32 : index
    %243 = memref.load %arg4[%242, %c32] : memref<4x54xf32, #tpu.memory_space<smem>>
    %244 = vector.broadcast %243 : f32 to vector<16x32xf32>
    %245 = arith.mulf %244, %241 : vector<16x32xf32>
    %246 = arith.addf %233, %245 : vector<16x32xf32>
    %247 = arith.index_cast %arg0 : i32 to index
    %c33 = arith.constant 33 : index
    %248 = memref.load %arg4[%247, %c33] : memref<4x54xf32, #tpu.memory_space<smem>>
    %249 = vector.broadcast %248 : f32 to vector<16x32xf32>
    %250 = arith.mulf %249, %241 : vector<16x32xf32>
    %251 = arith.addf %238, %250 : vector<16x32xf32>
    %c31_i32_47 = arith.constant 31 : i32
    %252 = tpu.dynamic_rotate %35 by %c31_i32_47 dim 1 : vector<16x32xf32>, i32 -> vector<16x32xf32>
    %cst_48 = arith.constant 0.000000e+00 : f32
    %253 = vector.broadcast %cst_48 : f32 to vector<16x32xf32>
    %254 = arith.select %25, %252, %253 : vector<16x32xi1>, vector<16x32xf32>
    %255 = arith.index_cast %arg0 : i32 to index
    %c34 = arith.constant 34 : index
    %256 = memref.load %arg4[%255, %c34] : memref<4x54xf32, #tpu.memory_space<smem>>
    %257 = vector.broadcast %256 : f32 to vector<16x32xf32>
    %258 = arith.mulf %257, %254 : vector<16x32xf32>
    %259 = arith.addf %246, %258 : vector<16x32xf32>
    %260 = arith.index_cast %arg0 : i32 to index
    %c35 = arith.constant 35 : index
    %261 = memref.load %arg4[%260, %c35] : memref<4x54xf32, #tpu.memory_space<smem>>
    %262 = vector.broadcast %261 : f32 to vector<16x32xf32>
    %263 = arith.mulf %262, %254 : vector<16x32xf32>
    %264 = arith.addf %251, %263 : vector<16x32xf32>
    %c15_i32_49 = arith.constant 15 : i32
    %265 = tpu.dynamic_rotate %31 by %c15_i32_49 dim 0 : vector<16x32xf32>, i32 -> vector<16x32xf32>
    %c1_i32_50 = arith.constant 1 : i32
    %266 = tpu.dynamic_rotate %265 by %c1_i32_50 dim 1 : vector<16x32xf32>, i32 -> vector<16x32xf32>
    %cst_51 = arith.constant 0.000000e+00 : f32
    %267 = vector.broadcast %cst_51 : f32 to vector<16x32xf32>
    %268 = arith.select %28, %266, %267 : vector<16x32xi1>, vector<16x32xf32>
    %269 = arith.index_cast %arg0 : i32 to index
    %c36 = arith.constant 36 : index
    %270 = memref.load %arg4[%269, %c36] : memref<4x54xf32, #tpu.memory_space<smem>>
    %271 = vector.broadcast %270 : f32 to vector<16x32xf32>
    %272 = arith.mulf %271, %268 : vector<16x32xf32>
    %273 = arith.addf %259, %272 : vector<16x32xf32>
    %274 = arith.index_cast %arg0 : i32 to index
    %c37 = arith.constant 37 : index
    %275 = memref.load %arg4[%274, %c37] : memref<4x54xf32, #tpu.memory_space<smem>>
    %276 = vector.broadcast %275 : f32 to vector<16x32xf32>
    %277 = arith.mulf %276, %268 : vector<16x32xf32>
    %278 = arith.addf %264, %277 : vector<16x32xf32>
    %c15_i32_52 = arith.constant 15 : i32
    %279 = tpu.dynamic_rotate %33 by %c15_i32_52 dim 0 : vector<16x32xf32>, i32 -> vector<16x32xf32>
    %c1_i32_53 = arith.constant 1 : i32
    %280 = tpu.dynamic_rotate %279 by %c1_i32_53 dim 1 : vector<16x32xf32>, i32 -> vector<16x32xf32>
    %cst_54 = arith.constant 0.000000e+00 : f32
    %281 = vector.broadcast %cst_54 : f32 to vector<16x32xf32>
    %282 = arith.select %28, %280, %281 : vector<16x32xi1>, vector<16x32xf32>
    %283 = arith.index_cast %arg0 : i32 to index
    %c38 = arith.constant 38 : index
    %284 = memref.load %arg4[%283, %c38] : memref<4x54xf32, #tpu.memory_space<smem>>
    %285 = vector.broadcast %284 : f32 to vector<16x32xf32>
    %286 = arith.mulf %285, %282 : vector<16x32xf32>
    %287 = arith.addf %273, %286 : vector<16x32xf32>
    %288 = arith.index_cast %arg0 : i32 to index
    %c39 = arith.constant 39 : index
    %289 = memref.load %arg4[%288, %c39] : memref<4x54xf32, #tpu.memory_space<smem>>
    %290 = vector.broadcast %289 : f32 to vector<16x32xf32>
    %291 = arith.mulf %290, %282 : vector<16x32xf32>
    %292 = arith.addf %278, %291 : vector<16x32xf32>
    %c15_i32_55 = arith.constant 15 : i32
    %293 = tpu.dynamic_rotate %35 by %c15_i32_55 dim 0 : vector<16x32xf32>, i32 -> vector<16x32xf32>
    %c1_i32_56 = arith.constant 1 : i32
    %294 = tpu.dynamic_rotate %293 by %c1_i32_56 dim 1 : vector<16x32xf32>, i32 -> vector<16x32xf32>
    %cst_57 = arith.constant 0.000000e+00 : f32
    %295 = vector.broadcast %cst_57 : f32 to vector<16x32xf32>
    %296 = arith.select %28, %294, %295 : vector<16x32xi1>, vector<16x32xf32>
    %297 = arith.index_cast %arg0 : i32 to index
    %c40 = arith.constant 40 : index
    %298 = memref.load %arg4[%297, %c40] : memref<4x54xf32, #tpu.memory_space<smem>>
    %299 = vector.broadcast %298 : f32 to vector<16x32xf32>
    %300 = arith.mulf %299, %296 : vector<16x32xf32>
    %301 = arith.addf %287, %300 : vector<16x32xf32>
    %302 = arith.index_cast %arg0 : i32 to index
    %c41 = arith.constant 41 : index
    %303 = memref.load %arg4[%302, %c41] : memref<4x54xf32, #tpu.memory_space<smem>>
    %304 = vector.broadcast %303 : f32 to vector<16x32xf32>
    %305 = arith.mulf %304, %296 : vector<16x32xf32>
    %306 = arith.addf %292, %305 : vector<16x32xf32>
    %c15_i32_58 = arith.constant 15 : i32
    %307 = tpu.dynamic_rotate %31 by %c15_i32_58 dim 0 : vector<16x32xf32>, i32 -> vector<16x32xf32>
    %cst_59 = arith.constant 0.000000e+00 : f32
    %308 = vector.broadcast %cst_59 : f32 to vector<16x32xf32>
    %309 = arith.select %21, %307, %308 : vector<16x32xi1>, vector<16x32xf32>
    %310 = arith.index_cast %arg0 : i32 to index
    %c42 = arith.constant 42 : index
    %311 = memref.load %arg4[%310, %c42] : memref<4x54xf32, #tpu.memory_space<smem>>
    %312 = vector.broadcast %311 : f32 to vector<16x32xf32>
    %313 = arith.mulf %312, %309 : vector<16x32xf32>
    %314 = arith.addf %301, %313 : vector<16x32xf32>
    %315 = arith.index_cast %arg0 : i32 to index
    %c43 = arith.constant 43 : index
    %316 = memref.load %arg4[%315, %c43] : memref<4x54xf32, #tpu.memory_space<smem>>
    %317 = vector.broadcast %316 : f32 to vector<16x32xf32>
    %318 = arith.mulf %317, %309 : vector<16x32xf32>
    %319 = arith.addf %306, %318 : vector<16x32xf32>
    %c15_i32_60 = arith.constant 15 : i32
    %320 = tpu.dynamic_rotate %33 by %c15_i32_60 dim 0 : vector<16x32xf32>, i32 -> vector<16x32xf32>
    %cst_61 = arith.constant 0.000000e+00 : f32
    %321 = vector.broadcast %cst_61 : f32 to vector<16x32xf32>
    %322 = arith.select %21, %320, %321 : vector<16x32xi1>, vector<16x32xf32>
    %323 = arith.index_cast %arg0 : i32 to index
    %c44 = arith.constant 44 : index
    %324 = memref.load %arg4[%323, %c44] : memref<4x54xf32, #tpu.memory_space<smem>>
    %325 = vector.broadcast %324 : f32 to vector<16x32xf32>
    %326 = arith.mulf %325, %322 : vector<16x32xf32>
    %327 = arith.addf %314, %326 : vector<16x32xf32>
    %328 = arith.index_cast %arg0 : i32 to index
    %c45 = arith.constant 45 : index
    %329 = memref.load %arg4[%328, %c45] : memref<4x54xf32, #tpu.memory_space<smem>>
    %330 = vector.broadcast %329 : f32 to vector<16x32xf32>
    %331 = arith.mulf %330, %322 : vector<16x32xf32>
    %332 = arith.addf %319, %331 : vector<16x32xf32>
    %c15_i32_62 = arith.constant 15 : i32
    %333 = tpu.dynamic_rotate %35 by %c15_i32_62 dim 0 : vector<16x32xf32>, i32 -> vector<16x32xf32>
    %cst_63 = arith.constant 0.000000e+00 : f32
    %334 = vector.broadcast %cst_63 : f32 to vector<16x32xf32>
    %335 = arith.select %21, %333, %334 : vector<16x32xi1>, vector<16x32xf32>
    %336 = arith.index_cast %arg0 : i32 to index
    %c46 = arith.constant 46 : index
    %337 = memref.load %arg4[%336, %c46] : memref<4x54xf32, #tpu.memory_space<smem>>
    %338 = vector.broadcast %337 : f32 to vector<16x32xf32>
    %339 = arith.mulf %338, %335 : vector<16x32xf32>
    %340 = arith.addf %327, %339 : vector<16x32xf32>
    %341 = arith.index_cast %arg0 : i32 to index
    %c47 = arith.constant 47 : index
    %342 = memref.load %arg4[%341, %c47] : memref<4x54xf32, #tpu.memory_space<smem>>
    %343 = vector.broadcast %342 : f32 to vector<16x32xf32>
    %344 = arith.mulf %343, %335 : vector<16x32xf32>
    %345 = arith.addf %332, %344 : vector<16x32xf32>
    %c15_i32_64 = arith.constant 15 : i32
    %346 = tpu.dynamic_rotate %31 by %c15_i32_64 dim 0 : vector<16x32xf32>, i32 -> vector<16x32xf32>
    %c31_i32_65 = arith.constant 31 : i32
    %347 = tpu.dynamic_rotate %346 by %c31_i32_65 dim 1 : vector<16x32xf32>, i32 -> vector<16x32xf32>
    %cst_66 = arith.constant 0.000000e+00 : f32
    %348 = vector.broadcast %cst_66 : f32 to vector<16x32xf32>
    %349 = arith.select %29, %347, %348 : vector<16x32xi1>, vector<16x32xf32>
    %350 = arith.index_cast %arg0 : i32 to index
    %c48 = arith.constant 48 : index
    %351 = memref.load %arg4[%350, %c48] : memref<4x54xf32, #tpu.memory_space<smem>>
    %352 = vector.broadcast %351 : f32 to vector<16x32xf32>
    %353 = arith.mulf %352, %349 : vector<16x32xf32>
    %354 = arith.addf %340, %353 : vector<16x32xf32>
    %355 = arith.index_cast %arg0 : i32 to index
    %c49 = arith.constant 49 : index
    %356 = memref.load %arg4[%355, %c49] : memref<4x54xf32, #tpu.memory_space<smem>>
    %357 = vector.broadcast %356 : f32 to vector<16x32xf32>
    %358 = arith.mulf %357, %349 : vector<16x32xf32>
    %359 = arith.addf %345, %358 : vector<16x32xf32>
    %c15_i32_67 = arith.constant 15 : i32
    %360 = tpu.dynamic_rotate %33 by %c15_i32_67 dim 0 : vector<16x32xf32>, i32 -> vector<16x32xf32>
    %c31_i32_68 = arith.constant 31 : i32
    %361 = tpu.dynamic_rotate %360 by %c31_i32_68 dim 1 : vector<16x32xf32>, i32 -> vector<16x32xf32>
    %cst_69 = arith.constant 0.000000e+00 : f32
    %362 = vector.broadcast %cst_69 : f32 to vector<16x32xf32>
    %363 = arith.select %29, %361, %362 : vector<16x32xi1>, vector<16x32xf32>
    %364 = arith.index_cast %arg0 : i32 to index
    %c50 = arith.constant 50 : index
    %365 = memref.load %arg4[%364, %c50] : memref<4x54xf32, #tpu.memory_space<smem>>
    %366 = vector.broadcast %365 : f32 to vector<16x32xf32>
    %367 = arith.mulf %366, %363 : vector<16x32xf32>
    %368 = arith.addf %354, %367 : vector<16x32xf32>
    %369 = arith.index_cast %arg0 : i32 to index
    %c51 = arith.constant 51 : index
    %370 = memref.load %arg4[%369, %c51] : memref<4x54xf32, #tpu.memory_space<smem>>
    %371 = vector.broadcast %370 : f32 to vector<16x32xf32>
    %372 = arith.mulf %371, %363 : vector<16x32xf32>
    %373 = arith.addf %359, %372 : vector<16x32xf32>
    %c15_i32_70 = arith.constant 15 : i32
    %374 = tpu.dynamic_rotate %35 by %c15_i32_70 dim 0 : vector<16x32xf32>, i32 -> vector<16x32xf32>
    %c31_i32_71 = arith.constant 31 : i32
    %375 = tpu.dynamic_rotate %374 by %c31_i32_71 dim 1 : vector<16x32xf32>, i32 -> vector<16x32xf32>
    %cst_72 = arith.constant 0.000000e+00 : f32
    %376 = vector.broadcast %cst_72 : f32 to vector<16x32xf32>
    %377 = arith.select %29, %375, %376 : vector<16x32xi1>, vector<16x32xf32>
    %378 = arith.index_cast %arg0 : i32 to index
    %c52 = arith.constant 52 : index
    %379 = memref.load %arg4[%378, %c52] : memref<4x54xf32, #tpu.memory_space<smem>>
    %380 = vector.broadcast %379 : f32 to vector<16x32xf32>
    %381 = arith.mulf %380, %377 : vector<16x32xf32>
    %382 = arith.addf %368, %381 : vector<16x32xf32>
    %383 = arith.index_cast %arg0 : i32 to index
    %c53 = arith.constant 53 : index
    %384 = memref.load %arg4[%383, %c53] : memref<4x54xf32, #tpu.memory_space<smem>>
    %385 = vector.broadcast %384 : f32 to vector<16x32xf32>
    %386 = arith.mulf %385, %377 : vector<16x32xf32>
    %387 = arith.addf %373, %386 : vector<16x32xf32>
    %388 = arith.index_cast %arg0 : i32 to index
    %c0_73 = arith.constant 0 : index
    %389 = memref.load %arg5[%388, %c0_73] : memref<4x2xf32, #tpu.memory_space<smem>>
    %390 = vector.broadcast %389 : f32 to vector<16x32xf32>
    %391 = arith.addf %382, %390 : vector<16x32xf32>
    %392 = arith.index_cast %arg0 : i32 to index
    %c1_74 = arith.constant 1 : index
    %393 = memref.load %arg5[%392, %c1_74] : memref<4x2xf32, #tpu.memory_space<smem>>
    %394 = vector.broadcast %393 : f32 to vector<16x32xf32>
    %395 = arith.addf %387, %394 : vector<16x32xf32>
    %396 = arith.index_cast %arg0 : i32 to index
    %c0_75 = arith.constant 0 : index
    %397 = memref.load %arg12[%396, %c0_75] : memref<4x2xf32, #tpu.memory_space<smem>>
    %c0_76 = arith.constant 0 : index
    %c0_77 = arith.constant 0 : index
    %c0_78 = arith.constant 0 : index
    %398 = vector.load %arg3[%c0_76, %c0_77, %c0_78] : memref<1x16x32xf32, #tpu.memory_space<vmem>>, vector<1x16x32xf32>
    %399 = vector.shape_cast %398 : vector<1x16x32xf32> to vector<16x32xf32>
    %c1_i32_79 = arith.constant 1 : i32
    %400 = tpu.dynamic_rotate %399 by %c1_i32_79 dim 0 : vector<16x32xf32>, i32 -> vector<16x32xf32>
    %c1_i32_80 = arith.constant 1 : i32
    %401 = tpu.dynamic_rotate %400 by %c1_i32_80 dim 1 : vector<16x32xf32>, i32 -> vector<16x32xf32>
    %cst_81 = arith.constant 0.000000e+00 : f32
    %402 = vector.broadcast %cst_81 : f32 to vector<16x32xf32>
    %403 = arith.select %26, %401, %402 : vector<16x32xi1>, vector<16x32xf32>
    %404 = arith.index_cast %arg0 : i32 to index
    %c0_82 = arith.constant 0 : index
    %405 = memref.load %arg6[%404, %c0_82] : memref<4x18xf32, #tpu.memory_space<smem>>
    %406 = vector.broadcast %405 : f32 to vector<16x32xf32>
    %407 = arith.mulf %406, %403 : vector<16x32xf32>
    %408 = arith.index_cast %arg0 : i32 to index
    %c1_83 = arith.constant 1 : index
    %409 = memref.load %arg6[%408, %c1_83] : memref<4x18xf32, #tpu.memory_space<smem>>
    %410 = vector.broadcast %409 : f32 to vector<16x32xf32>
    %411 = arith.mulf %410, %403 : vector<16x32xf32>
    %c1_i32_84 = arith.constant 1 : i32
    %412 = tpu.dynamic_rotate %399 by %c1_i32_84 dim 0 : vector<16x32xf32>, i32 -> vector<16x32xf32>
    %cst_85 = arith.constant 0.000000e+00 : f32
    %413 = vector.broadcast %cst_85 : f32 to vector<16x32xf32>
    %414 = arith.select %19, %412, %413 : vector<16x32xi1>, vector<16x32xf32>
    %415 = arith.index_cast %arg0 : i32 to index
    %c2_86 = arith.constant 2 : index
    %416 = memref.load %arg6[%415, %c2_86] : memref<4x18xf32, #tpu.memory_space<smem>>
    %417 = vector.broadcast %416 : f32 to vector<16x32xf32>
    %418 = arith.mulf %417, %414 : vector<16x32xf32>
    %419 = arith.addf %407, %418 : vector<16x32xf32>
    %420 = arith.index_cast %arg0 : i32 to index
    %c3_87 = arith.constant 3 : index
    %421 = memref.load %arg6[%420, %c3_87] : memref<4x18xf32, #tpu.memory_space<smem>>
    %422 = vector.broadcast %421 : f32 to vector<16x32xf32>
    %423 = arith.mulf %422, %414 : vector<16x32xf32>
    %424 = arith.addf %411, %423 : vector<16x32xf32>
    %c1_i32_88 = arith.constant 1 : i32
    %425 = tpu.dynamic_rotate %399 by %c1_i32_88 dim 0 : vector<16x32xf32>, i32 -> vector<16x32xf32>
    %c31_i32_89 = arith.constant 31 : i32
    %426 = tpu.dynamic_rotate %425 by %c31_i32_89 dim 1 : vector<16x32xf32>, i32 -> vector<16x32xf32>
    %cst_90 = arith.constant 0.000000e+00 : f32
    %427 = vector.broadcast %cst_90 : f32 to vector<16x32xf32>
    %428 = arith.select %27, %426, %427 : vector<16x32xi1>, vector<16x32xf32>
    %429 = arith.index_cast %arg0 : i32 to index
    %c4_91 = arith.constant 4 : index
    %430 = memref.load %arg6[%429, %c4_91] : memref<4x18xf32, #tpu.memory_space<smem>>
    %431 = vector.broadcast %430 : f32 to vector<16x32xf32>
    %432 = arith.mulf %431, %428 : vector<16x32xf32>
    %433 = arith.addf %419, %432 : vector<16x32xf32>
    %434 = arith.index_cast %arg0 : i32 to index
    %c5_92 = arith.constant 5 : index
    %435 = memref.load %arg6[%434, %c5_92] : memref<4x18xf32, #tpu.memory_space<smem>>
    %436 = vector.broadcast %435 : f32 to vector<16x32xf32>
    %437 = arith.mulf %436, %428 : vector<16x32xf32>
    %438 = arith.addf %424, %437 : vector<16x32xf32>
    %c1_i32_93 = arith.constant 1 : i32
    %439 = tpu.dynamic_rotate %399 by %c1_i32_93 dim 1 : vector<16x32xf32>, i32 -> vector<16x32xf32>
    %cst_94 = arith.constant 0.000000e+00 : f32
    %440 = vector.broadcast %cst_94 : f32 to vector<16x32xf32>
    %441 = arith.select %23, %439, %440 : vector<16x32xi1>, vector<16x32xf32>
    %442 = arith.index_cast %arg0 : i32 to index
    %c6_95 = arith.constant 6 : index
    %443 = memref.load %arg6[%442, %c6_95] : memref<4x18xf32, #tpu.memory_space<smem>>
    %444 = vector.broadcast %443 : f32 to vector<16x32xf32>
    %445 = arith.mulf %444, %441 : vector<16x32xf32>
    %446 = arith.addf %433, %445 : vector<16x32xf32>
    %447 = arith.index_cast %arg0 : i32 to index
    %c7_96 = arith.constant 7 : index
    %448 = memref.load %arg6[%447, %c7_96] : memref<4x18xf32, #tpu.memory_space<smem>>
    %449 = vector.broadcast %448 : f32 to vector<16x32xf32>
    %450 = arith.mulf %449, %441 : vector<16x32xf32>
    %451 = arith.addf %438, %450 : vector<16x32xf32>
    %452 = arith.index_cast %arg0 : i32 to index
    %c8_97 = arith.constant 8 : index
    %453 = memref.load %arg6[%452, %c8_97] : memref<4x18xf32, #tpu.memory_space<smem>>
    %454 = vector.broadcast %453 : f32 to vector<16x32xf32>
    %455 = arith.mulf %454, %399 : vector<16x32xf32>
    %456 = arith.addf %446, %455 : vector<16x32xf32>
    %457 = arith.index_cast %arg0 : i32 to index
    %c9_98 = arith.constant 9 : index
    %458 = memref.load %arg6[%457, %c9_98] : memref<4x18xf32, #tpu.memory_space<smem>>
    %459 = vector.broadcast %458 : f32 to vector<16x32xf32>
    %460 = arith.mulf %459, %399 : vector<16x32xf32>
    %461 = arith.addf %451, %460 : vector<16x32xf32>
    %c31_i32_99 = arith.constant 31 : i32
    %462 = tpu.dynamic_rotate %399 by %c31_i32_99 dim 1 : vector<16x32xf32>, i32 -> vector<16x32xf32>
    %cst_100 = arith.constant 0.000000e+00 : f32
    %463 = vector.broadcast %cst_100 : f32 to vector<16x32xf32>
    %464 = arith.select %25, %462, %463 : vector<16x32xi1>, vector<16x32xf32>
    %465 = arith.index_cast %arg0 : i32 to index
    %c10_101 = arith.constant 10 : index
    %466 = memref.load %arg6[%465, %c10_101] : memref<4x18xf32, #tpu.memory_space<smem>>
    %467 = vector.broadcast %466 : f32 to vector<16x32xf32>
    %468 = arith.mulf %467, %464 : vector<16x32xf32>
    %469 = arith.addf %456, %468 : vector<16x32xf32>
    %470 = arith.index_cast %arg0 : i32 to index
    %c11_102 = arith.constant 11 : index
    %471 = memref.load %arg6[%470, %c11_102] : memref<4x18xf32, #tpu.memory_space<smem>>
    %472 = vector.broadcast %471 : f32 to vector<16x32xf32>
    %473 = arith.mulf %472, %464 : vector<16x32xf32>
    %474 = arith.addf %461, %473 : vector<16x32xf32>
    %c15_i32_103 = arith.constant 15 : i32
    %475 = tpu.dynamic_rotate %399 by %c15_i32_103 dim 0 : vector<16x32xf32>, i32 -> vector<16x32xf32>
    %c1_i32_104 = arith.constant 1 : i32
    %476 = tpu.dynamic_rotate %475 by %c1_i32_104 dim 1 : vector<16x32xf32>, i32 -> vector<16x32xf32>
    %cst_105 = arith.constant 0.000000e+00 : f32
    %477 = vector.broadcast %cst_105 : f32 to vector<16x32xf32>
    %478 = arith.select %28, %476, %477 : vector<16x32xi1>, vector<16x32xf32>
    %479 = arith.index_cast %arg0 : i32 to index
    %c12_106 = arith.constant 12 : index
    %480 = memref.load %arg6[%479, %c12_106] : memref<4x18xf32, #tpu.memory_space<smem>>
    %481 = vector.broadcast %480 : f32 to vector<16x32xf32>
    %482 = arith.mulf %481, %478 : vector<16x32xf32>
    %483 = arith.addf %469, %482 : vector<16x32xf32>
    %484 = arith.index_cast %arg0 : i32 to index
    %c13_107 = arith.constant 13 : index
    %485 = memref.load %arg6[%484, %c13_107] : memref<4x18xf32, #tpu.memory_space<smem>>
    %486 = vector.broadcast %485 : f32 to vector<16x32xf32>
    %487 = arith.mulf %486, %478 : vector<16x32xf32>
    %488 = arith.addf %474, %487 : vector<16x32xf32>
    %c15_i32_108 = arith.constant 15 : i32
    %489 = tpu.dynamic_rotate %399 by %c15_i32_108 dim 0 : vector<16x32xf32>, i32 -> vector<16x32xf32>
    %cst_109 = arith.constant 0.000000e+00 : f32
    %490 = vector.broadcast %cst_109 : f32 to vector<16x32xf32>
    %491 = arith.select %21, %489, %490 : vector<16x32xi1>, vector<16x32xf32>
    %492 = arith.index_cast %arg0 : i32 to index
    %c14_110 = arith.constant 14 : index
    %493 = memref.load %arg6[%492, %c14_110] : memref<4x18xf32, #tpu.memory_space<smem>>
    %494 = vector.broadcast %493 : f32 to vector<16x32xf32>
    %495 = arith.mulf %494, %491 : vector<16x32xf32>
    %496 = arith.addf %483, %495 : vector<16x32xf32>
    %497 = arith.index_cast %arg0 : i32 to index
    %c15_111 = arith.constant 15 : index
    %498 = memref.load %arg6[%497, %c15_111] : memref<4x18xf32, #tpu.memory_space<smem>>
    %499 = vector.broadcast %498 : f32 to vector<16x32xf32>
    %500 = arith.mulf %499, %491 : vector<16x32xf32>
    %501 = arith.addf %488, %500 : vector<16x32xf32>
    %c15_i32_112 = arith.constant 15 : i32
    %502 = tpu.dynamic_rotate %399 by %c15_i32_112 dim 0 : vector<16x32xf32>, i32 -> vector<16x32xf32>
    %c31_i32_113 = arith.constant 31 : i32
    %503 = tpu.dynamic_rotate %502 by %c31_i32_113 dim 1 : vector<16x32xf32>, i32 -> vector<16x32xf32>
    %cst_114 = arith.constant 0.000000e+00 : f32
    %504 = vector.broadcast %cst_114 : f32 to vector<16x32xf32>
    %505 = arith.select %29, %503, %504 : vector<16x32xi1>, vector<16x32xf32>
    %506 = arith.index_cast %arg0 : i32 to index
    %c16_115 = arith.constant 16 : index
    %507 = memref.load %arg6[%506, %c16_115] : memref<4x18xf32, #tpu.memory_space<smem>>
    %508 = vector.broadcast %507 : f32 to vector<16x32xf32>
    %509 = arith.mulf %508, %505 : vector<16x32xf32>
    %510 = arith.addf %496, %509 : vector<16x32xf32>
    %511 = arith.index_cast %arg0 : i32 to index
    %c17_116 = arith.constant 17 : index
    %512 = memref.load %arg6[%511, %c17_116] : memref<4x18xf32, #tpu.memory_space<smem>>
    %513 = vector.broadcast %512 : f32 to vector<16x32xf32>
    %514 = arith.mulf %513, %505 : vector<16x32xf32>
    %515 = arith.addf %501, %514 : vector<16x32xf32>
    %516 = arith.index_cast %arg0 : i32 to index
    %c0_117 = arith.constant 0 : index
    %517 = memref.load %arg7[%516, %c0_117] : memref<4x2xf32, #tpu.memory_space<smem>>
    %518 = vector.broadcast %517 : f32 to vector<16x32xf32>
    %519 = arith.addf %510, %518 : vector<16x32xf32>
    %520 = arith.index_cast %arg0 : i32 to index
    %c1_118 = arith.constant 1 : index
    %521 = memref.load %arg7[%520, %c1_118] : memref<4x2xf32, #tpu.memory_space<smem>>
    %522 = vector.broadcast %521 : f32 to vector<16x32xf32>
    %523 = arith.addf %515, %522 : vector<16x32xf32>
    %cst_119 = arith.constant 0.000000e+00 : f32
    %524 = vector.broadcast %cst_119 : f32 to vector<16x32xf32>
    %525 = arith.cmpf oge, %519, %524 : vector<16x32xf32>
    %526 = vector.broadcast %397 : f32 to vector<16x32xf32>
    %527 = arith.mulf %526, %519 : vector<16x32xf32>
    %528 = arith.select %525, %519, %527 : vector<16x32xi1>, vector<16x32xf32>
    %cst_120 = arith.constant 0.000000e+00 : f32
    %529 = vector.broadcast %cst_120 : f32 to vector<16x32xf32>
    %530 = arith.cmpf oge, %523, %529 : vector<16x32xf32>
    %531 = vector.broadcast %397 : f32 to vector<16x32xf32>
    %532 = arith.mulf %531, %523 : vector<16x32xf32>
    %533 = arith.select %530, %523, %532 : vector<16x32xi1>, vector<16x32xf32>
    %c1_i32_121 = arith.constant 1 : i32
    %534 = tpu.dynamic_rotate %528 by %c1_i32_121 dim 0 : vector<16x32xf32>, i32 -> vector<16x32xf32>
    %c1_i32_122 = arith.constant 1 : i32
    %535 = tpu.dynamic_rotate %534 by %c1_i32_122 dim 1 : vector<16x32xf32>, i32 -> vector<16x32xf32>
    %cst_123 = arith.constant 0.000000e+00 : f32
    %536 = vector.broadcast %cst_123 : f32 to vector<16x32xf32>
    %537 = arith.select %26, %535, %536 : vector<16x32xi1>, vector<16x32xf32>
    %538 = arith.index_cast %arg0 : i32 to index
    %c0_124 = arith.constant 0 : index
    %539 = memref.load %arg8[%538, %c0_124] : memref<4x72xf32, #tpu.memory_space<smem>>
    %540 = vector.broadcast %539 : f32 to vector<16x32xf32>
    %541 = arith.mulf %540, %537 : vector<16x32xf32>
    %542 = arith.index_cast %arg0 : i32 to index
    %c1_125 = arith.constant 1 : index
    %543 = memref.load %arg8[%542, %c1_125] : memref<4x72xf32, #tpu.memory_space<smem>>
    %544 = vector.broadcast %543 : f32 to vector<16x32xf32>
    %545 = arith.mulf %544, %537 : vector<16x32xf32>
    %546 = arith.index_cast %arg0 : i32 to index
    %c2_126 = arith.constant 2 : index
    %547 = memref.load %arg8[%546, %c2_126] : memref<4x72xf32, #tpu.memory_space<smem>>
    %548 = vector.broadcast %547 : f32 to vector<16x32xf32>
    %549 = arith.mulf %548, %537 : vector<16x32xf32>
    %550 = arith.index_cast %arg0 : i32 to index
    %c3_127 = arith.constant 3 : index
    %551 = memref.load %arg8[%550, %c3_127] : memref<4x72xf32, #tpu.memory_space<smem>>
    %552 = vector.broadcast %551 : f32 to vector<16x32xf32>
    %553 = arith.mulf %552, %537 : vector<16x32xf32>
    %c1_i32_128 = arith.constant 1 : i32
    %554 = tpu.dynamic_rotate %533 by %c1_i32_128 dim 0 : vector<16x32xf32>, i32 -> vector<16x32xf32>
    %c1_i32_129 = arith.constant 1 : i32
    %555 = tpu.dynamic_rotate %554 by %c1_i32_129 dim 1 : vector<16x32xf32>, i32 -> vector<16x32xf32>
    %cst_130 = arith.constant 0.000000e+00 : f32
    %556 = vector.broadcast %cst_130 : f32 to vector<16x32xf32>
    %557 = arith.select %26, %555, %556 : vector<16x32xi1>, vector<16x32xf32>
    %558 = arith.index_cast %arg0 : i32 to index
    %c4_131 = arith.constant 4 : index
    %559 = memref.load %arg8[%558, %c4_131] : memref<4x72xf32, #tpu.memory_space<smem>>
    %560 = vector.broadcast %559 : f32 to vector<16x32xf32>
    %561 = arith.mulf %560, %557 : vector<16x32xf32>
    %562 = arith.addf %541, %561 : vector<16x32xf32>
    %563 = arith.index_cast %arg0 : i32 to index
    %c5_132 = arith.constant 5 : index
    %564 = memref.load %arg8[%563, %c5_132] : memref<4x72xf32, #tpu.memory_space<smem>>
    %565 = vector.broadcast %564 : f32 to vector<16x32xf32>
    %566 = arith.mulf %565, %557 : vector<16x32xf32>
    %567 = arith.addf %545, %566 : vector<16x32xf32>
    %568 = arith.index_cast %arg0 : i32 to index
    %c6_133 = arith.constant 6 : index
    %569 = memref.load %arg8[%568, %c6_133] : memref<4x72xf32, #tpu.memory_space<smem>>
    %570 = vector.broadcast %569 : f32 to vector<16x32xf32>
    %571 = arith.mulf %570, %557 : vector<16x32xf32>
    %572 = arith.addf %549, %571 : vector<16x32xf32>
    %573 = arith.index_cast %arg0 : i32 to index
    %c7_134 = arith.constant 7 : index
    %574 = memref.load %arg8[%573, %c7_134] : memref<4x72xf32, #tpu.memory_space<smem>>
    %575 = vector.broadcast %574 : f32 to vector<16x32xf32>
    %576 = arith.mulf %575, %557 : vector<16x32xf32>
    %577 = arith.addf %553, %576 : vector<16x32xf32>
    %c1_i32_135 = arith.constant 1 : i32
    %578 = tpu.dynamic_rotate %528 by %c1_i32_135 dim 0 : vector<16x32xf32>, i32 -> vector<16x32xf32>
    %cst_136 = arith.constant 0.000000e+00 : f32
    %579 = vector.broadcast %cst_136 : f32 to vector<16x32xf32>
    %580 = arith.select %19, %578, %579 : vector<16x32xi1>, vector<16x32xf32>
    %581 = arith.index_cast %arg0 : i32 to index
    %c8_137 = arith.constant 8 : index
    %582 = memref.load %arg8[%581, %c8_137] : memref<4x72xf32, #tpu.memory_space<smem>>
    %583 = vector.broadcast %582 : f32 to vector<16x32xf32>
    %584 = arith.mulf %583, %580 : vector<16x32xf32>
    %585 = arith.addf %562, %584 : vector<16x32xf32>
    %586 = arith.index_cast %arg0 : i32 to index
    %c9_138 = arith.constant 9 : index
    %587 = memref.load %arg8[%586, %c9_138] : memref<4x72xf32, #tpu.memory_space<smem>>
    %588 = vector.broadcast %587 : f32 to vector<16x32xf32>
    %589 = arith.mulf %588, %580 : vector<16x32xf32>
    %590 = arith.addf %567, %589 : vector<16x32xf32>
    %591 = arith.index_cast %arg0 : i32 to index
    %c10_139 = arith.constant 10 : index
    %592 = memref.load %arg8[%591, %c10_139] : memref<4x72xf32, #tpu.memory_space<smem>>
    %593 = vector.broadcast %592 : f32 to vector<16x32xf32>
    %594 = arith.mulf %593, %580 : vector<16x32xf32>
    %595 = arith.addf %572, %594 : vector<16x32xf32>
    %596 = arith.index_cast %arg0 : i32 to index
    %c11_140 = arith.constant 11 : index
    %597 = memref.load %arg8[%596, %c11_140] : memref<4x72xf32, #tpu.memory_space<smem>>
    %598 = vector.broadcast %597 : f32 to vector<16x32xf32>
    %599 = arith.mulf %598, %580 : vector<16x32xf32>
    %600 = arith.addf %577, %599 : vector<16x32xf32>
    %c1_i32_141 = arith.constant 1 : i32
    %601 = tpu.dynamic_rotate %533 by %c1_i32_141 dim 0 : vector<16x32xf32>, i32 -> vector<16x32xf32>
    %cst_142 = arith.constant 0.000000e+00 : f32
    %602 = vector.broadcast %cst_142 : f32 to vector<16x32xf32>
    %603 = arith.select %19, %601, %602 : vector<16x32xi1>, vector<16x32xf32>
    %604 = arith.index_cast %arg0 : i32 to index
    %c12_143 = arith.constant 12 : index
    %605 = memref.load %arg8[%604, %c12_143] : memref<4x72xf32, #tpu.memory_space<smem>>
    %606 = vector.broadcast %605 : f32 to vector<16x32xf32>
    %607 = arith.mulf %606, %603 : vector<16x32xf32>
    %608 = arith.addf %585, %607 : vector<16x32xf32>
    %609 = arith.index_cast %arg0 : i32 to index
    %c13_144 = arith.constant 13 : index
    %610 = memref.load %arg8[%609, %c13_144] : memref<4x72xf32, #tpu.memory_space<smem>>
    %611 = vector.broadcast %610 : f32 to vector<16x32xf32>
    %612 = arith.mulf %611, %603 : vector<16x32xf32>
    %613 = arith.addf %590, %612 : vector<16x32xf32>
    %614 = arith.index_cast %arg0 : i32 to index
    %c14_145 = arith.constant 14 : index
    %615 = memref.load %arg8[%614, %c14_145] : memref<4x72xf32, #tpu.memory_space<smem>>
    %616 = vector.broadcast %615 : f32 to vector<16x32xf32>
    %617 = arith.mulf %616, %603 : vector<16x32xf32>
    %618 = arith.addf %595, %617 : vector<16x32xf32>
    %619 = arith.index_cast %arg0 : i32 to index
    %c15_146 = arith.constant 15 : index
    %620 = memref.load %arg8[%619, %c15_146] : memref<4x72xf32, #tpu.memory_space<smem>>
    %621 = vector.broadcast %620 : f32 to vector<16x32xf32>
    %622 = arith.mulf %621, %603 : vector<16x32xf32>
    %623 = arith.addf %600, %622 : vector<16x32xf32>
    %c1_i32_147 = arith.constant 1 : i32
    %624 = tpu.dynamic_rotate %528 by %c1_i32_147 dim 0 : vector<16x32xf32>, i32 -> vector<16x32xf32>
    %c31_i32_148 = arith.constant 31 : i32
    %625 = tpu.dynamic_rotate %624 by %c31_i32_148 dim 1 : vector<16x32xf32>, i32 -> vector<16x32xf32>
    %cst_149 = arith.constant 0.000000e+00 : f32
    %626 = vector.broadcast %cst_149 : f32 to vector<16x32xf32>
    %627 = arith.select %27, %625, %626 : vector<16x32xi1>, vector<16x32xf32>
    %628 = arith.index_cast %arg0 : i32 to index
    %c16_150 = arith.constant 16 : index
    %629 = memref.load %arg8[%628, %c16_150] : memref<4x72xf32, #tpu.memory_space<smem>>
    %630 = vector.broadcast %629 : f32 to vector<16x32xf32>
    %631 = arith.mulf %630, %627 : vector<16x32xf32>
    %632 = arith.addf %608, %631 : vector<16x32xf32>
    %633 = arith.index_cast %arg0 : i32 to index
    %c17_151 = arith.constant 17 : index
    %634 = memref.load %arg8[%633, %c17_151] : memref<4x72xf32, #tpu.memory_space<smem>>
    %635 = vector.broadcast %634 : f32 to vector<16x32xf32>
    %636 = arith.mulf %635, %627 : vector<16x32xf32>
    %637 = arith.addf %613, %636 : vector<16x32xf32>
    %638 = arith.index_cast %arg0 : i32 to index
    %c18_152 = arith.constant 18 : index
    %639 = memref.load %arg8[%638, %c18_152] : memref<4x72xf32, #tpu.memory_space<smem>>
    %640 = vector.broadcast %639 : f32 to vector<16x32xf32>
    %641 = arith.mulf %640, %627 : vector<16x32xf32>
    %642 = arith.addf %618, %641 : vector<16x32xf32>
    %643 = arith.index_cast %arg0 : i32 to index
    %c19_153 = arith.constant 19 : index
    %644 = memref.load %arg8[%643, %c19_153] : memref<4x72xf32, #tpu.memory_space<smem>>
    %645 = vector.broadcast %644 : f32 to vector<16x32xf32>
    %646 = arith.mulf %645, %627 : vector<16x32xf32>
    %647 = arith.addf %623, %646 : vector<16x32xf32>
    %c1_i32_154 = arith.constant 1 : i32
    %648 = tpu.dynamic_rotate %533 by %c1_i32_154 dim 0 : vector<16x32xf32>, i32 -> vector<16x32xf32>
    %c31_i32_155 = arith.constant 31 : i32
    %649 = tpu.dynamic_rotate %648 by %c31_i32_155 dim 1 : vector<16x32xf32>, i32 -> vector<16x32xf32>
    %cst_156 = arith.constant 0.000000e+00 : f32
    %650 = vector.broadcast %cst_156 : f32 to vector<16x32xf32>
    %651 = arith.select %27, %649, %650 : vector<16x32xi1>, vector<16x32xf32>
    %652 = arith.index_cast %arg0 : i32 to index
    %c20_157 = arith.constant 20 : index
    %653 = memref.load %arg8[%652, %c20_157] : memref<4x72xf32, #tpu.memory_space<smem>>
    %654 = vector.broadcast %653 : f32 to vector<16x32xf32>
    %655 = arith.mulf %654, %651 : vector<16x32xf32>
    %656 = arith.addf %632, %655 : vector<16x32xf32>
    %657 = arith.index_cast %arg0 : i32 to index
    %c21_158 = arith.constant 21 : index
    %658 = memref.load %arg8[%657, %c21_158] : memref<4x72xf32, #tpu.memory_space<smem>>
    %659 = vector.broadcast %658 : f32 to vector<16x32xf32>
    %660 = arith.mulf %659, %651 : vector<16x32xf32>
    %661 = arith.addf %637, %660 : vector<16x32xf32>
    %662 = arith.index_cast %arg0 : i32 to index
    %c22_159 = arith.constant 22 : index
    %663 = memref.load %arg8[%662, %c22_159] : memref<4x72xf32, #tpu.memory_space<smem>>
    %664 = vector.broadcast %663 : f32 to vector<16x32xf32>
    %665 = arith.mulf %664, %651 : vector<16x32xf32>
    %666 = arith.addf %642, %665 : vector<16x32xf32>
    %667 = arith.index_cast %arg0 : i32 to index
    %c23_160 = arith.constant 23 : index
    %668 = memref.load %arg8[%667, %c23_160] : memref<4x72xf32, #tpu.memory_space<smem>>
    %669 = vector.broadcast %668 : f32 to vector<16x32xf32>
    %670 = arith.mulf %669, %651 : vector<16x32xf32>
    %671 = arith.addf %647, %670 : vector<16x32xf32>
    %c1_i32_161 = arith.constant 1 : i32
    %672 = tpu.dynamic_rotate %528 by %c1_i32_161 dim 1 : vector<16x32xf32>, i32 -> vector<16x32xf32>
    %cst_162 = arith.constant 0.000000e+00 : f32
    %673 = vector.broadcast %cst_162 : f32 to vector<16x32xf32>
    %674 = arith.select %23, %672, %673 : vector<16x32xi1>, vector<16x32xf32>
    %675 = arith.index_cast %arg0 : i32 to index
    %c24_163 = arith.constant 24 : index
    %676 = memref.load %arg8[%675, %c24_163] : memref<4x72xf32, #tpu.memory_space<smem>>
    %677 = vector.broadcast %676 : f32 to vector<16x32xf32>
    %678 = arith.mulf %677, %674 : vector<16x32xf32>
    %679 = arith.addf %656, %678 : vector<16x32xf32>
    %680 = arith.index_cast %arg0 : i32 to index
    %c25_164 = arith.constant 25 : index
    %681 = memref.load %arg8[%680, %c25_164] : memref<4x72xf32, #tpu.memory_space<smem>>
    %682 = vector.broadcast %681 : f32 to vector<16x32xf32>
    %683 = arith.mulf %682, %674 : vector<16x32xf32>
    %684 = arith.addf %661, %683 : vector<16x32xf32>
    %685 = arith.index_cast %arg0 : i32 to index
    %c26_165 = arith.constant 26 : index
    %686 = memref.load %arg8[%685, %c26_165] : memref<4x72xf32, #tpu.memory_space<smem>>
    %687 = vector.broadcast %686 : f32 to vector<16x32xf32>
    %688 = arith.mulf %687, %674 : vector<16x32xf32>
    %689 = arith.addf %666, %688 : vector<16x32xf32>
    %690 = arith.index_cast %arg0 : i32 to index
    %c27_166 = arith.constant 27 : index
    %691 = memref.load %arg8[%690, %c27_166] : memref<4x72xf32, #tpu.memory_space<smem>>
    %692 = vector.broadcast %691 : f32 to vector<16x32xf32>
    %693 = arith.mulf %692, %674 : vector<16x32xf32>
    %694 = arith.addf %671, %693 : vector<16x32xf32>
    %c1_i32_167 = arith.constant 1 : i32
    %695 = tpu.dynamic_rotate %533 by %c1_i32_167 dim 1 : vector<16x32xf32>, i32 -> vector<16x32xf32>
    %cst_168 = arith.constant 0.000000e+00 : f32
    %696 = vector.broadcast %cst_168 : f32 to vector<16x32xf32>
    %697 = arith.select %23, %695, %696 : vector<16x32xi1>, vector<16x32xf32>
    %698 = arith.index_cast %arg0 : i32 to index
    %c28_169 = arith.constant 28 : index
    %699 = memref.load %arg8[%698, %c28_169] : memref<4x72xf32, #tpu.memory_space<smem>>
    %700 = vector.broadcast %699 : f32 to vector<16x32xf32>
    %701 = arith.mulf %700, %697 : vector<16x32xf32>
    %702 = arith.addf %679, %701 : vector<16x32xf32>
    %703 = arith.index_cast %arg0 : i32 to index
    %c29_170 = arith.constant 29 : index
    %704 = memref.load %arg8[%703, %c29_170] : memref<4x72xf32, #tpu.memory_space<smem>>
    %705 = vector.broadcast %704 : f32 to vector<16x32xf32>
    %706 = arith.mulf %705, %697 : vector<16x32xf32>
    %707 = arith.addf %684, %706 : vector<16x32xf32>
    %708 = arith.index_cast %arg0 : i32 to index
    %c30_171 = arith.constant 30 : index
    %709 = memref.load %arg8[%708, %c30_171] : memref<4x72xf32, #tpu.memory_space<smem>>
    %710 = vector.broadcast %709 : f32 to vector<16x32xf32>
    %711 = arith.mulf %710, %697 : vector<16x32xf32>
    %712 = arith.addf %689, %711 : vector<16x32xf32>
    %713 = arith.index_cast %arg0 : i32 to index
    %c31_172 = arith.constant 31 : index
    %714 = memref.load %arg8[%713, %c31_172] : memref<4x72xf32, #tpu.memory_space<smem>>
    %715 = vector.broadcast %714 : f32 to vector<16x32xf32>
    %716 = arith.mulf %715, %697 : vector<16x32xf32>
    %717 = arith.addf %694, %716 : vector<16x32xf32>
    %718 = arith.index_cast %arg0 : i32 to index
    %c32_173 = arith.constant 32 : index
    %719 = memref.load %arg8[%718, %c32_173] : memref<4x72xf32, #tpu.memory_space<smem>>
    %720 = vector.broadcast %719 : f32 to vector<16x32xf32>
    %721 = arith.mulf %720, %528 : vector<16x32xf32>
    %722 = arith.addf %702, %721 : vector<16x32xf32>
    %723 = arith.index_cast %arg0 : i32 to index
    %c33_174 = arith.constant 33 : index
    %724 = memref.load %arg8[%723, %c33_174] : memref<4x72xf32, #tpu.memory_space<smem>>
    %725 = vector.broadcast %724 : f32 to vector<16x32xf32>
    %726 = arith.mulf %725, %528 : vector<16x32xf32>
    %727 = arith.addf %707, %726 : vector<16x32xf32>
    %728 = arith.index_cast %arg0 : i32 to index
    %c34_175 = arith.constant 34 : index
    %729 = memref.load %arg8[%728, %c34_175] : memref<4x72xf32, #tpu.memory_space<smem>>
    %730 = vector.broadcast %729 : f32 to vector<16x32xf32>
    %731 = arith.mulf %730, %528 : vector<16x32xf32>
    %732 = arith.addf %712, %731 : vector<16x32xf32>
    %733 = arith.index_cast %arg0 : i32 to index
    %c35_176 = arith.constant 35 : index
    %734 = memref.load %arg8[%733, %c35_176] : memref<4x72xf32, #tpu.memory_space<smem>>
    %735 = vector.broadcast %734 : f32 to vector<16x32xf32>
    %736 = arith.mulf %735, %528 : vector<16x32xf32>
    %737 = arith.addf %717, %736 : vector<16x32xf32>
    %738 = arith.index_cast %arg0 : i32 to index
    %c36_177 = arith.constant 36 : index
    %739 = memref.load %arg8[%738, %c36_177] : memref<4x72xf32, #tpu.memory_space<smem>>
    %740 = vector.broadcast %739 : f32 to vector<16x32xf32>
    %741 = arith.mulf %740, %533 : vector<16x32xf32>
    %742 = arith.addf %722, %741 : vector<16x32xf32>
    %743 = arith.index_cast %arg0 : i32 to index
    %c37_178 = arith.constant 37 : index
    %744 = memref.load %arg8[%743, %c37_178] : memref<4x72xf32, #tpu.memory_space<smem>>
    %745 = vector.broadcast %744 : f32 to vector<16x32xf32>
    %746 = arith.mulf %745, %533 : vector<16x32xf32>
    %747 = arith.addf %727, %746 : vector<16x32xf32>
    %748 = arith.index_cast %arg0 : i32 to index
    %c38_179 = arith.constant 38 : index
    %749 = memref.load %arg8[%748, %c38_179] : memref<4x72xf32, #tpu.memory_space<smem>>
    %750 = vector.broadcast %749 : f32 to vector<16x32xf32>
    %751 = arith.mulf %750, %533 : vector<16x32xf32>
    %752 = arith.addf %732, %751 : vector<16x32xf32>
    %753 = arith.index_cast %arg0 : i32 to index
    %c39_180 = arith.constant 39 : index
    %754 = memref.load %arg8[%753, %c39_180] : memref<4x72xf32, #tpu.memory_space<smem>>
    %755 = vector.broadcast %754 : f32 to vector<16x32xf32>
    %756 = arith.mulf %755, %533 : vector<16x32xf32>
    %757 = arith.addf %737, %756 : vector<16x32xf32>
    %c31_i32_181 = arith.constant 31 : i32
    %758 = tpu.dynamic_rotate %528 by %c31_i32_181 dim 1 : vector<16x32xf32>, i32 -> vector<16x32xf32>
    %cst_182 = arith.constant 0.000000e+00 : f32
    %759 = vector.broadcast %cst_182 : f32 to vector<16x32xf32>
    %760 = arith.select %25, %758, %759 : vector<16x32xi1>, vector<16x32xf32>
    %761 = arith.index_cast %arg0 : i32 to index
    %c40_183 = arith.constant 40 : index
    %762 = memref.load %arg8[%761, %c40_183] : memref<4x72xf32, #tpu.memory_space<smem>>
    %763 = vector.broadcast %762 : f32 to vector<16x32xf32>
    %764 = arith.mulf %763, %760 : vector<16x32xf32>
    %765 = arith.addf %742, %764 : vector<16x32xf32>
    %766 = arith.index_cast %arg0 : i32 to index
    %c41_184 = arith.constant 41 : index
    %767 = memref.load %arg8[%766, %c41_184] : memref<4x72xf32, #tpu.memory_space<smem>>
    %768 = vector.broadcast %767 : f32 to vector<16x32xf32>
    %769 = arith.mulf %768, %760 : vector<16x32xf32>
    %770 = arith.addf %747, %769 : vector<16x32xf32>
    %771 = arith.index_cast %arg0 : i32 to index
    %c42_185 = arith.constant 42 : index
    %772 = memref.load %arg8[%771, %c42_185] : memref<4x72xf32, #tpu.memory_space<smem>>
    %773 = vector.broadcast %772 : f32 to vector<16x32xf32>
    %774 = arith.mulf %773, %760 : vector<16x32xf32>
    %775 = arith.addf %752, %774 : vector<16x32xf32>
    %776 = arith.index_cast %arg0 : i32 to index
    %c43_186 = arith.constant 43 : index
    %777 = memref.load %arg8[%776, %c43_186] : memref<4x72xf32, #tpu.memory_space<smem>>
    %778 = vector.broadcast %777 : f32 to vector<16x32xf32>
    %779 = arith.mulf %778, %760 : vector<16x32xf32>
    %780 = arith.addf %757, %779 : vector<16x32xf32>
    %c31_i32_187 = arith.constant 31 : i32
    %781 = tpu.dynamic_rotate %533 by %c31_i32_187 dim 1 : vector<16x32xf32>, i32 -> vector<16x32xf32>
    %cst_188 = arith.constant 0.000000e+00 : f32
    %782 = vector.broadcast %cst_188 : f32 to vector<16x32xf32>
    %783 = arith.select %25, %781, %782 : vector<16x32xi1>, vector<16x32xf32>
    %784 = arith.index_cast %arg0 : i32 to index
    %c44_189 = arith.constant 44 : index
    %785 = memref.load %arg8[%784, %c44_189] : memref<4x72xf32, #tpu.memory_space<smem>>
    %786 = vector.broadcast %785 : f32 to vector<16x32xf32>
    %787 = arith.mulf %786, %783 : vector<16x32xf32>
    %788 = arith.addf %765, %787 : vector<16x32xf32>
    %789 = arith.index_cast %arg0 : i32 to index
    %c45_190 = arith.constant 45 : index
    %790 = memref.load %arg8[%789, %c45_190] : memref<4x72xf32, #tpu.memory_space<smem>>
    %791 = vector.broadcast %790 : f32 to vector<16x32xf32>
    %792 = arith.mulf %791, %783 : vector<16x32xf32>
    %793 = arith.addf %770, %792 : vector<16x32xf32>
    %794 = arith.index_cast %arg0 : i32 to index
    %c46_191 = arith.constant 46 : index
    %795 = memref.load %arg8[%794, %c46_191] : memref<4x72xf32, #tpu.memory_space<smem>>
    %796 = vector.broadcast %795 : f32 to vector<16x32xf32>
    %797 = arith.mulf %796, %783 : vector<16x32xf32>
    %798 = arith.addf %775, %797 : vector<16x32xf32>
    %799 = arith.index_cast %arg0 : i32 to index
    %c47_192 = arith.constant 47 : index
    %800 = memref.load %arg8[%799, %c47_192] : memref<4x72xf32, #tpu.memory_space<smem>>
    %801 = vector.broadcast %800 : f32 to vector<16x32xf32>
    %802 = arith.mulf %801, %783 : vector<16x32xf32>
    %803 = arith.addf %780, %802 : vector<16x32xf32>
    %c15_i32_193 = arith.constant 15 : i32
    %804 = tpu.dynamic_rotate %528 by %c15_i32_193 dim 0 : vector<16x32xf32>, i32 -> vector<16x32xf32>
    %c1_i32_194 = arith.constant 1 : i32
    %805 = tpu.dynamic_rotate %804 by %c1_i32_194 dim 1 : vector<16x32xf32>, i32 -> vector<16x32xf32>
    %cst_195 = arith.constant 0.000000e+00 : f32
    %806 = vector.broadcast %cst_195 : f32 to vector<16x32xf32>
    %807 = arith.select %28, %805, %806 : vector<16x32xi1>, vector<16x32xf32>
    %808 = arith.index_cast %arg0 : i32 to index
    %c48_196 = arith.constant 48 : index
    %809 = memref.load %arg8[%808, %c48_196] : memref<4x72xf32, #tpu.memory_space<smem>>
    %810 = vector.broadcast %809 : f32 to vector<16x32xf32>
    %811 = arith.mulf %810, %807 : vector<16x32xf32>
    %812 = arith.addf %788, %811 : vector<16x32xf32>
    %813 = arith.index_cast %arg0 : i32 to index
    %c49_197 = arith.constant 49 : index
    %814 = memref.load %arg8[%813, %c49_197] : memref<4x72xf32, #tpu.memory_space<smem>>
    %815 = vector.broadcast %814 : f32 to vector<16x32xf32>
    %816 = arith.mulf %815, %807 : vector<16x32xf32>
    %817 = arith.addf %793, %816 : vector<16x32xf32>
    %818 = arith.index_cast %arg0 : i32 to index
    %c50_198 = arith.constant 50 : index
    %819 = memref.load %arg8[%818, %c50_198] : memref<4x72xf32, #tpu.memory_space<smem>>
    %820 = vector.broadcast %819 : f32 to vector<16x32xf32>
    %821 = arith.mulf %820, %807 : vector<16x32xf32>
    %822 = arith.addf %798, %821 : vector<16x32xf32>
    %823 = arith.index_cast %arg0 : i32 to index
    %c51_199 = arith.constant 51 : index
    %824 = memref.load %arg8[%823, %c51_199] : memref<4x72xf32, #tpu.memory_space<smem>>
    %825 = vector.broadcast %824 : f32 to vector<16x32xf32>
    %826 = arith.mulf %825, %807 : vector<16x32xf32>
    %827 = arith.addf %803, %826 : vector<16x32xf32>
    %c15_i32_200 = arith.constant 15 : i32
    %828 = tpu.dynamic_rotate %533 by %c15_i32_200 dim 0 : vector<16x32xf32>, i32 -> vector<16x32xf32>
    %c1_i32_201 = arith.constant 1 : i32
    %829 = tpu.dynamic_rotate %828 by %c1_i32_201 dim 1 : vector<16x32xf32>, i32 -> vector<16x32xf32>
    %cst_202 = arith.constant 0.000000e+00 : f32
    %830 = vector.broadcast %cst_202 : f32 to vector<16x32xf32>
    %831 = arith.select %28, %829, %830 : vector<16x32xi1>, vector<16x32xf32>
    %832 = arith.index_cast %arg0 : i32 to index
    %c52_203 = arith.constant 52 : index
    %833 = memref.load %arg8[%832, %c52_203] : memref<4x72xf32, #tpu.memory_space<smem>>
    %834 = vector.broadcast %833 : f32 to vector<16x32xf32>
    %835 = arith.mulf %834, %831 : vector<16x32xf32>
    %836 = arith.addf %812, %835 : vector<16x32xf32>
    %837 = arith.index_cast %arg0 : i32 to index
    %c53_204 = arith.constant 53 : index
    %838 = memref.load %arg8[%837, %c53_204] : memref<4x72xf32, #tpu.memory_space<smem>>
    %839 = vector.broadcast %838 : f32 to vector<16x32xf32>
    %840 = arith.mulf %839, %831 : vector<16x32xf32>
    %841 = arith.addf %817, %840 : vector<16x32xf32>
    %842 = arith.index_cast %arg0 : i32 to index
    %c54 = arith.constant 54 : index
    %843 = memref.load %arg8[%842, %c54] : memref<4x72xf32, #tpu.memory_space<smem>>
    %844 = vector.broadcast %843 : f32 to vector<16x32xf32>
    %845 = arith.mulf %844, %831 : vector<16x32xf32>
    %846 = arith.addf %822, %845 : vector<16x32xf32>
    %847 = arith.index_cast %arg0 : i32 to index
    %c55 = arith.constant 55 : index
    %848 = memref.load %arg8[%847, %c55] : memref<4x72xf32, #tpu.memory_space<smem>>
    %849 = vector.broadcast %848 : f32 to vector<16x32xf32>
    %850 = arith.mulf %849, %831 : vector<16x32xf32>
    %851 = arith.addf %827, %850 : vector<16x32xf32>
    %c15_i32_205 = arith.constant 15 : i32
    %852 = tpu.dynamic_rotate %528 by %c15_i32_205 dim 0 : vector<16x32xf32>, i32 -> vector<16x32xf32>
    %cst_206 = arith.constant 0.000000e+00 : f32
    %853 = vector.broadcast %cst_206 : f32 to vector<16x32xf32>
    %854 = arith.select %21, %852, %853 : vector<16x32xi1>, vector<16x32xf32>
    %855 = arith.index_cast %arg0 : i32 to index
    %c56 = arith.constant 56 : index
    %856 = memref.load %arg8[%855, %c56] : memref<4x72xf32, #tpu.memory_space<smem>>
    %857 = vector.broadcast %856 : f32 to vector<16x32xf32>
    %858 = arith.mulf %857, %854 : vector<16x32xf32>
    %859 = arith.addf %836, %858 : vector<16x32xf32>
    %860 = arith.index_cast %arg0 : i32 to index
    %c57 = arith.constant 57 : index
    %861 = memref.load %arg8[%860, %c57] : memref<4x72xf32, #tpu.memory_space<smem>>
    %862 = vector.broadcast %861 : f32 to vector<16x32xf32>
    %863 = arith.mulf %862, %854 : vector<16x32xf32>
    %864 = arith.addf %841, %863 : vector<16x32xf32>
    %865 = arith.index_cast %arg0 : i32 to index
    %c58 = arith.constant 58 : index
    %866 = memref.load %arg8[%865, %c58] : memref<4x72xf32, #tpu.memory_space<smem>>
    %867 = vector.broadcast %866 : f32 to vector<16x32xf32>
    %868 = arith.mulf %867, %854 : vector<16x32xf32>
    %869 = arith.addf %846, %868 : vector<16x32xf32>
    %870 = arith.index_cast %arg0 : i32 to index
    %c59 = arith.constant 59 : index
    %871 = memref.load %arg8[%870, %c59] : memref<4x72xf32, #tpu.memory_space<smem>>
    %872 = vector.broadcast %871 : f32 to vector<16x32xf32>
    %873 = arith.mulf %872, %854 : vector<16x32xf32>
    %874 = arith.addf %851, %873 : vector<16x32xf32>
    %c15_i32_207 = arith.constant 15 : i32
    %875 = tpu.dynamic_rotate %533 by %c15_i32_207 dim 0 : vector<16x32xf32>, i32 -> vector<16x32xf32>
    %cst_208 = arith.constant 0.000000e+00 : f32
    %876 = vector.broadcast %cst_208 : f32 to vector<16x32xf32>
    %877 = arith.select %21, %875, %876 : vector<16x32xi1>, vector<16x32xf32>
    %878 = arith.index_cast %arg0 : i32 to index
    %c60 = arith.constant 60 : index
    %879 = memref.load %arg8[%878, %c60] : memref<4x72xf32, #tpu.memory_space<smem>>
    %880 = vector.broadcast %879 : f32 to vector<16x32xf32>
    %881 = arith.mulf %880, %877 : vector<16x32xf32>
    %882 = arith.addf %859, %881 : vector<16x32xf32>
    %883 = arith.index_cast %arg0 : i32 to index
    %c61 = arith.constant 61 : index
    %884 = memref.load %arg8[%883, %c61] : memref<4x72xf32, #tpu.memory_space<smem>>
    %885 = vector.broadcast %884 : f32 to vector<16x32xf32>
    %886 = arith.mulf %885, %877 : vector<16x32xf32>
    %887 = arith.addf %864, %886 : vector<16x32xf32>
    %888 = arith.index_cast %arg0 : i32 to index
    %c62 = arith.constant 62 : index
    %889 = memref.load %arg8[%888, %c62] : memref<4x72xf32, #tpu.memory_space<smem>>
    %890 = vector.broadcast %889 : f32 to vector<16x32xf32>
    %891 = arith.mulf %890, %877 : vector<16x32xf32>
    %892 = arith.addf %869, %891 : vector<16x32xf32>
    %893 = arith.index_cast %arg0 : i32 to index
    %c63 = arith.constant 63 : index
    %894 = memref.load %arg8[%893, %c63] : memref<4x72xf32, #tpu.memory_space<smem>>
    %895 = vector.broadcast %894 : f32 to vector<16x32xf32>
    %896 = arith.mulf %895, %877 : vector<16x32xf32>
    %897 = arith.addf %874, %896 : vector<16x32xf32>
    %c15_i32_209 = arith.constant 15 : i32
    %898 = tpu.dynamic_rotate %528 by %c15_i32_209 dim 0 : vector<16x32xf32>, i32 -> vector<16x32xf32>
    %c31_i32_210 = arith.constant 31 : i32
    %899 = tpu.dynamic_rotate %898 by %c31_i32_210 dim 1 : vector<16x32xf32>, i32 -> vector<16x32xf32>
    %cst_211 = arith.constant 0.000000e+00 : f32
    %900 = vector.broadcast %cst_211 : f32 to vector<16x32xf32>
    %901 = arith.select %29, %899, %900 : vector<16x32xi1>, vector<16x32xf32>
    %902 = arith.index_cast %arg0 : i32 to index
    %c64 = arith.constant 64 : index
    %903 = memref.load %arg8[%902, %c64] : memref<4x72xf32, #tpu.memory_space<smem>>
    %904 = vector.broadcast %903 : f32 to vector<16x32xf32>
    %905 = arith.mulf %904, %901 : vector<16x32xf32>
    %906 = arith.addf %882, %905 : vector<16x32xf32>
    %907 = arith.index_cast %arg0 : i32 to index
    %c65 = arith.constant 65 : index
    %908 = memref.load %arg8[%907, %c65] : memref<4x72xf32, #tpu.memory_space<smem>>
    %909 = vector.broadcast %908 : f32 to vector<16x32xf32>
    %910 = arith.mulf %909, %901 : vector<16x32xf32>
    %911 = arith.addf %887, %910 : vector<16x32xf32>
    %912 = arith.index_cast %arg0 : i32 to index
    %c66 = arith.constant 66 : index
    %913 = memref.load %arg8[%912, %c66] : memref<4x72xf32, #tpu.memory_space<smem>>
    %914 = vector.broadcast %913 : f32 to vector<16x32xf32>
    %915 = arith.mulf %914, %901 : vector<16x32xf32>
    %916 = arith.addf %892, %915 : vector<16x32xf32>
    %917 = arith.index_cast %arg0 : i32 to index
    %c67 = arith.constant 67 : index
    %918 = memref.load %arg8[%917, %c67] : memref<4x72xf32, #tpu.memory_space<smem>>
    %919 = vector.broadcast %918 : f32 to vector<16x32xf32>
    %920 = arith.mulf %919, %901 : vector<16x32xf32>
    %921 = arith.addf %897, %920 : vector<16x32xf32>
    %c15_i32_212 = arith.constant 15 : i32
    %922 = tpu.dynamic_rotate %533 by %c15_i32_212 dim 0 : vector<16x32xf32>, i32 -> vector<16x32xf32>
    %c31_i32_213 = arith.constant 31 : i32
    %923 = tpu.dynamic_rotate %922 by %c31_i32_213 dim 1 : vector<16x32xf32>, i32 -> vector<16x32xf32>
    %cst_214 = arith.constant 0.000000e+00 : f32
    %924 = vector.broadcast %cst_214 : f32 to vector<16x32xf32>
    %925 = arith.select %29, %923, %924 : vector<16x32xi1>, vector<16x32xf32>
    %926 = arith.index_cast %arg0 : i32 to index
    %c68 = arith.constant 68 : index
    %927 = memref.load %arg8[%926, %c68] : memref<4x72xf32, #tpu.memory_space<smem>>
    %928 = vector.broadcast %927 : f32 to vector<16x32xf32>
    %929 = arith.mulf %928, %925 : vector<16x32xf32>
    %930 = arith.addf %906, %929 : vector<16x32xf32>
    %931 = arith.index_cast %arg0 : i32 to index
    %c69 = arith.constant 69 : index
    %932 = memref.load %arg8[%931, %c69] : memref<4x72xf32, #tpu.memory_space<smem>>
    %933 = vector.broadcast %932 : f32 to vector<16x32xf32>
    %934 = arith.mulf %933, %925 : vector<16x32xf32>
    %935 = arith.addf %911, %934 : vector<16x32xf32>
    %936 = arith.index_cast %arg0 : i32 to index
    %c70 = arith.constant 70 : index
    %937 = memref.load %arg8[%936, %c70] : memref<4x72xf32, #tpu.memory_space<smem>>
    %938 = vector.broadcast %937 : f32 to vector<16x32xf32>
    %939 = arith.mulf %938, %925 : vector<16x32xf32>
    %940 = arith.addf %916, %939 : vector<16x32xf32>
    %941 = arith.index_cast %arg0 : i32 to index
    %c71 = arith.constant 71 : index
    %942 = memref.load %arg8[%941, %c71] : memref<4x72xf32, #tpu.memory_space<smem>>
    %943 = vector.broadcast %942 : f32 to vector<16x32xf32>
    %944 = arith.mulf %943, %925 : vector<16x32xf32>
    %945 = arith.addf %921, %944 : vector<16x32xf32>
    %946 = arith.index_cast %arg0 : i32 to index
    %c0_215 = arith.constant 0 : index
    %947 = memref.load %arg9[%946, %c0_215] : memref<4x4xf32, #tpu.memory_space<smem>>
    %948 = vector.broadcast %947 : f32 to vector<16x32xf32>
    %949 = arith.addf %930, %948 : vector<16x32xf32>
    %950 = arith.index_cast %arg0 : i32 to index
    %c1_216 = arith.constant 1 : index
    %951 = memref.load %arg9[%950, %c1_216] : memref<4x4xf32, #tpu.memory_space<smem>>
    %952 = vector.broadcast %951 : f32 to vector<16x32xf32>
    %953 = arith.addf %935, %952 : vector<16x32xf32>
    %954 = arith.index_cast %arg0 : i32 to index
    %c2_217 = arith.constant 2 : index
    %955 = memref.load %arg9[%954, %c2_217] : memref<4x4xf32, #tpu.memory_space<smem>>
    %956 = vector.broadcast %955 : f32 to vector<16x32xf32>
    %957 = arith.addf %940, %956 : vector<16x32xf32>
    %958 = arith.index_cast %arg0 : i32 to index
    %c3_218 = arith.constant 3 : index
    %959 = memref.load %arg9[%958, %c3_218] : memref<4x4xf32, #tpu.memory_space<smem>>
    %960 = vector.broadcast %959 : f32 to vector<16x32xf32>
    %961 = arith.addf %945, %960 : vector<16x32xf32>
    %962 = arith.index_cast %arg0 : i32 to index
    %c1_219 = arith.constant 1 : index
    %963 = memref.load %arg12[%962, %c1_219] : memref<4x2xf32, #tpu.memory_space<smem>>
    %cst_220 = arith.constant 0.000000e+00 : f32
    %964 = vector.broadcast %cst_220 : f32 to vector<16x32xf32>
    %965 = arith.subf %964, %949 : vector<16x32xf32>
    %966 = math.exp %965 : vector<16x32xf32>
    %cst_221 = arith.constant 1.000000e+00 : f32
    %967 = vector.broadcast %cst_221 : f32 to vector<16x32xf32>
    %968 = arith.addf %967, %966 : vector<16x32xf32>
    %969 = tpu.reciprocal %968 {approx = true} : vector<16x32xf32> -> vector<16x32xf32>
    %970 = arith.mulf %391, %969 : vector<16x32xf32>
    %971 = arith.addf %970, %957 : vector<16x32xf32>
    %cst_222 = arith.constant 0.000000e+00 : f32
    %972 = vector.broadcast %cst_222 : f32 to vector<16x32xf32>
    %973 = arith.cmpf oge, %971, %972 : vector<16x32xf32>
    %974 = vector.broadcast %963 : f32 to vector<16x32xf32>
    %975 = arith.mulf %974, %971 : vector<16x32xf32>
    %976 = arith.select %973, %971, %975 : vector<16x32xi1>, vector<16x32xf32>
    %cst_223 = arith.constant 0.000000e+00 : f32
    %977 = vector.broadcast %cst_223 : f32 to vector<16x32xf32>
    %978 = arith.subf %977, %953 : vector<16x32xf32>
    %979 = math.exp %978 : vector<16x32xf32>
    %cst_224 = arith.constant 1.000000e+00 : f32
    %980 = vector.broadcast %cst_224 : f32 to vector<16x32xf32>
    %981 = arith.addf %980, %979 : vector<16x32xf32>
    %982 = tpu.reciprocal %981 {approx = true} : vector<16x32xf32> -> vector<16x32xf32>
    %983 = arith.mulf %395, %982 : vector<16x32xf32>
    %984 = arith.addf %983, %961 : vector<16x32xf32>
    %cst_225 = arith.constant 0.000000e+00 : f32
    %985 = vector.broadcast %cst_225 : f32 to vector<16x32xf32>
    %986 = arith.cmpf oge, %984, %985 : vector<16x32xf32>
    %987 = vector.broadcast %963 : f32 to vector<16x32xf32>
    %988 = arith.mulf %987, %984 : vector<16x32xf32>
    %989 = arith.select %986, %984, %988 : vector<16x32xi1>, vector<16x32xf32>
    %c1_i32_226 = arith.constant 1 : i32
    %990 = tpu.dynamic_rotate %976 by %c1_i32_226 dim 0 : vector<16x32xf32>, i32 -> vector<16x32xf32>
    %c1_i32_227 = arith.constant 1 : i32
    %991 = tpu.dynamic_rotate %990 by %c1_i32_227 dim 1 : vector<16x32xf32>, i32 -> vector<16x32xf32>
    %cst_228 = arith.constant 0.000000e+00 : f32
    %992 = vector.broadcast %cst_228 : f32 to vector<16x32xf32>
    %993 = arith.select %26, %991, %992 : vector<16x32xi1>, vector<16x32xf32>
    %994 = arith.index_cast %arg0 : i32 to index
    %c0_229 = arith.constant 0 : index
    %995 = memref.load %arg10[%994, %c0_229] : memref<4x36xf32, #tpu.memory_space<smem>>
    %996 = vector.broadcast %995 : f32 to vector<16x32xf32>
    %997 = arith.mulf %996, %993 : vector<16x32xf32>
    %998 = arith.index_cast %arg0 : i32 to index
    %c1_230 = arith.constant 1 : index
    %999 = memref.load %arg10[%998, %c1_230] : memref<4x36xf32, #tpu.memory_space<smem>>
    %1000 = vector.broadcast %999 : f32 to vector<16x32xf32>
    %1001 = arith.mulf %1000, %993 : vector<16x32xf32>
    %c1_i32_231 = arith.constant 1 : i32
    %1002 = tpu.dynamic_rotate %989 by %c1_i32_231 dim 0 : vector<16x32xf32>, i32 -> vector<16x32xf32>
    %c1_i32_232 = arith.constant 1 : i32
    %1003 = tpu.dynamic_rotate %1002 by %c1_i32_232 dim 1 : vector<16x32xf32>, i32 -> vector<16x32xf32>
    %cst_233 = arith.constant 0.000000e+00 : f32
    %1004 = vector.broadcast %cst_233 : f32 to vector<16x32xf32>
    %1005 = arith.select %26, %1003, %1004 : vector<16x32xi1>, vector<16x32xf32>
    %1006 = arith.index_cast %arg0 : i32 to index
    %c2_234 = arith.constant 2 : index
    %1007 = memref.load %arg10[%1006, %c2_234] : memref<4x36xf32, #tpu.memory_space<smem>>
    %1008 = vector.broadcast %1007 : f32 to vector<16x32xf32>
    %1009 = arith.mulf %1008, %1005 : vector<16x32xf32>
    %1010 = arith.addf %997, %1009 : vector<16x32xf32>
    %1011 = arith.index_cast %arg0 : i32 to index
    %c3_235 = arith.constant 3 : index
    %1012 = memref.load %arg10[%1011, %c3_235] : memref<4x36xf32, #tpu.memory_space<smem>>
    %1013 = vector.broadcast %1012 : f32 to vector<16x32xf32>
    %1014 = arith.mulf %1013, %1005 : vector<16x32xf32>
    %1015 = arith.addf %1001, %1014 : vector<16x32xf32>
    %c1_i32_236 = arith.constant 1 : i32
    %1016 = tpu.dynamic_rotate %976 by %c1_i32_236 dim 0 : vector<16x32xf32>, i32 -> vector<16x32xf32>
    %cst_237 = arith.constant 0.000000e+00 : f32
    %1017 = vector.broadcast %cst_237 : f32 to vector<16x32xf32>
    %1018 = arith.select %19, %1016, %1017 : vector<16x32xi1>, vector<16x32xf32>
    %1019 = arith.index_cast %arg0 : i32 to index
    %c4_238 = arith.constant 4 : index
    %1020 = memref.load %arg10[%1019, %c4_238] : memref<4x36xf32, #tpu.memory_space<smem>>
    %1021 = vector.broadcast %1020 : f32 to vector<16x32xf32>
    %1022 = arith.mulf %1021, %1018 : vector<16x32xf32>
    %1023 = arith.addf %1010, %1022 : vector<16x32xf32>
    %1024 = arith.index_cast %arg0 : i32 to index
    %c5_239 = arith.constant 5 : index
    %1025 = memref.load %arg10[%1024, %c5_239] : memref<4x36xf32, #tpu.memory_space<smem>>
    %1026 = vector.broadcast %1025 : f32 to vector<16x32xf32>
    %1027 = arith.mulf %1026, %1018 : vector<16x32xf32>
    %1028 = arith.addf %1015, %1027 : vector<16x32xf32>
    %c1_i32_240 = arith.constant 1 : i32
    %1029 = tpu.dynamic_rotate %989 by %c1_i32_240 dim 0 : vector<16x32xf32>, i32 -> vector<16x32xf32>
    %cst_241 = arith.constant 0.000000e+00 : f32
    %1030 = vector.broadcast %cst_241 : f32 to vector<16x32xf32>
    %1031 = arith.select %19, %1029, %1030 : vector<16x32xi1>, vector<16x32xf32>
    %1032 = arith.index_cast %arg0 : i32 to index
    %c6_242 = arith.constant 6 : index
    %1033 = memref.load %arg10[%1032, %c6_242] : memref<4x36xf32, #tpu.memory_space<smem>>
    %1034 = vector.broadcast %1033 : f32 to vector<16x32xf32>
    %1035 = arith.mulf %1034, %1031 : vector<16x32xf32>
    %1036 = arith.addf %1023, %1035 : vector<16x32xf32>
    %1037 = arith.index_cast %arg0 : i32 to index
    %c7_243 = arith.constant 7 : index
    %1038 = memref.load %arg10[%1037, %c7_243] : memref<4x36xf32, #tpu.memory_space<smem>>
    %1039 = vector.broadcast %1038 : f32 to vector<16x32xf32>
    %1040 = arith.mulf %1039, %1031 : vector<16x32xf32>
    %1041 = arith.addf %1028, %1040 : vector<16x32xf32>
    %c1_i32_244 = arith.constant 1 : i32
    %1042 = tpu.dynamic_rotate %976 by %c1_i32_244 dim 0 : vector<16x32xf32>, i32 -> vector<16x32xf32>
    %c31_i32_245 = arith.constant 31 : i32
    %1043 = tpu.dynamic_rotate %1042 by %c31_i32_245 dim 1 : vector<16x32xf32>, i32 -> vector<16x32xf32>
    %cst_246 = arith.constant 0.000000e+00 : f32
    %1044 = vector.broadcast %cst_246 : f32 to vector<16x32xf32>
    %1045 = arith.select %27, %1043, %1044 : vector<16x32xi1>, vector<16x32xf32>
    %1046 = arith.index_cast %arg0 : i32 to index
    %c8_247 = arith.constant 8 : index
    %1047 = memref.load %arg10[%1046, %c8_247] : memref<4x36xf32, #tpu.memory_space<smem>>
    %1048 = vector.broadcast %1047 : f32 to vector<16x32xf32>
    %1049 = arith.mulf %1048, %1045 : vector<16x32xf32>
    %1050 = arith.addf %1036, %1049 : vector<16x32xf32>
    %1051 = arith.index_cast %arg0 : i32 to index
    %c9_248 = arith.constant 9 : index
    %1052 = memref.load %arg10[%1051, %c9_248] : memref<4x36xf32, #tpu.memory_space<smem>>
    %1053 = vector.broadcast %1052 : f32 to vector<16x32xf32>
    %1054 = arith.mulf %1053, %1045 : vector<16x32xf32>
    %1055 = arith.addf %1041, %1054 : vector<16x32xf32>
    %c1_i32_249 = arith.constant 1 : i32
    %1056 = tpu.dynamic_rotate %989 by %c1_i32_249 dim 0 : vector<16x32xf32>, i32 -> vector<16x32xf32>
    %c31_i32_250 = arith.constant 31 : i32
    %1057 = tpu.dynamic_rotate %1056 by %c31_i32_250 dim 1 : vector<16x32xf32>, i32 -> vector<16x32xf32>
    %cst_251 = arith.constant 0.000000e+00 : f32
    %1058 = vector.broadcast %cst_251 : f32 to vector<16x32xf32>
    %1059 = arith.select %27, %1057, %1058 : vector<16x32xi1>, vector<16x32xf32>
    %1060 = arith.index_cast %arg0 : i32 to index
    %c10_252 = arith.constant 10 : index
    %1061 = memref.load %arg10[%1060, %c10_252] : memref<4x36xf32, #tpu.memory_space<smem>>
    %1062 = vector.broadcast %1061 : f32 to vector<16x32xf32>
    %1063 = arith.mulf %1062, %1059 : vector<16x32xf32>
    %1064 = arith.addf %1050, %1063 : vector<16x32xf32>
    %1065 = arith.index_cast %arg0 : i32 to index
    %c11_253 = arith.constant 11 : index
    %1066 = memref.load %arg10[%1065, %c11_253] : memref<4x36xf32, #tpu.memory_space<smem>>
    %1067 = vector.broadcast %1066 : f32 to vector<16x32xf32>
    %1068 = arith.mulf %1067, %1059 : vector<16x32xf32>
    %1069 = arith.addf %1055, %1068 : vector<16x32xf32>
    %c1_i32_254 = arith.constant 1 : i32
    %1070 = tpu.dynamic_rotate %976 by %c1_i32_254 dim 1 : vector<16x32xf32>, i32 -> vector<16x32xf32>
    %cst_255 = arith.constant 0.000000e+00 : f32
    %1071 = vector.broadcast %cst_255 : f32 to vector<16x32xf32>
    %1072 = arith.select %23, %1070, %1071 : vector<16x32xi1>, vector<16x32xf32>
    %1073 = arith.index_cast %arg0 : i32 to index
    %c12_256 = arith.constant 12 : index
    %1074 = memref.load %arg10[%1073, %c12_256] : memref<4x36xf32, #tpu.memory_space<smem>>
    %1075 = vector.broadcast %1074 : f32 to vector<16x32xf32>
    %1076 = arith.mulf %1075, %1072 : vector<16x32xf32>
    %1077 = arith.addf %1064, %1076 : vector<16x32xf32>
    %1078 = arith.index_cast %arg0 : i32 to index
    %c13_257 = arith.constant 13 : index
    %1079 = memref.load %arg10[%1078, %c13_257] : memref<4x36xf32, #tpu.memory_space<smem>>
    %1080 = vector.broadcast %1079 : f32 to vector<16x32xf32>
    %1081 = arith.mulf %1080, %1072 : vector<16x32xf32>
    %1082 = arith.addf %1069, %1081 : vector<16x32xf32>
    %c1_i32_258 = arith.constant 1 : i32
    %1083 = tpu.dynamic_rotate %989 by %c1_i32_258 dim 1 : vector<16x32xf32>, i32 -> vector<16x32xf32>
    %cst_259 = arith.constant 0.000000e+00 : f32
    %1084 = vector.broadcast %cst_259 : f32 to vector<16x32xf32>
    %1085 = arith.select %23, %1083, %1084 : vector<16x32xi1>, vector<16x32xf32>
    %1086 = arith.index_cast %arg0 : i32 to index
    %c14_260 = arith.constant 14 : index
    %1087 = memref.load %arg10[%1086, %c14_260] : memref<4x36xf32, #tpu.memory_space<smem>>
    %1088 = vector.broadcast %1087 : f32 to vector<16x32xf32>
    %1089 = arith.mulf %1088, %1085 : vector<16x32xf32>
    %1090 = arith.addf %1077, %1089 : vector<16x32xf32>
    %1091 = arith.index_cast %arg0 : i32 to index
    %c15_261 = arith.constant 15 : index
    %1092 = memref.load %arg10[%1091, %c15_261] : memref<4x36xf32, #tpu.memory_space<smem>>
    %1093 = vector.broadcast %1092 : f32 to vector<16x32xf32>
    %1094 = arith.mulf %1093, %1085 : vector<16x32xf32>
    %1095 = arith.addf %1082, %1094 : vector<16x32xf32>
    %1096 = arith.index_cast %arg0 : i32 to index
    %c16_262 = arith.constant 16 : index
    %1097 = memref.load %arg10[%1096, %c16_262] : memref<4x36xf32, #tpu.memory_space<smem>>
    %1098 = vector.broadcast %1097 : f32 to vector<16x32xf32>
    %1099 = arith.mulf %1098, %976 : vector<16x32xf32>
    %1100 = arith.addf %1090, %1099 : vector<16x32xf32>
    %1101 = arith.index_cast %arg0 : i32 to index
    %c17_263 = arith.constant 17 : index
    %1102 = memref.load %arg10[%1101, %c17_263] : memref<4x36xf32, #tpu.memory_space<smem>>
    %1103 = vector.broadcast %1102 : f32 to vector<16x32xf32>
    %1104 = arith.mulf %1103, %976 : vector<16x32xf32>
    %1105 = arith.addf %1095, %1104 : vector<16x32xf32>
    %1106 = arith.index_cast %arg0 : i32 to index
    %c18_264 = arith.constant 18 : index
    %1107 = memref.load %arg10[%1106, %c18_264] : memref<4x36xf32, #tpu.memory_space<smem>>
    %1108 = vector.broadcast %1107 : f32 to vector<16x32xf32>
    %1109 = arith.mulf %1108, %989 : vector<16x32xf32>
    %1110 = arith.addf %1100, %1109 : vector<16x32xf32>
    %1111 = arith.index_cast %arg0 : i32 to index
    %c19_265 = arith.constant 19 : index
    %1112 = memref.load %arg10[%1111, %c19_265] : memref<4x36xf32, #tpu.memory_space<smem>>
    %1113 = vector.broadcast %1112 : f32 to vector<16x32xf32>
    %1114 = arith.mulf %1113, %989 : vector<16x32xf32>
    %1115 = arith.addf %1105, %1114 : vector<16x32xf32>
    %c31_i32_266 = arith.constant 31 : i32
    %1116 = tpu.dynamic_rotate %976 by %c31_i32_266 dim 1 : vector<16x32xf32>, i32 -> vector<16x32xf32>
    %cst_267 = arith.constant 0.000000e+00 : f32
    %1117 = vector.broadcast %cst_267 : f32 to vector<16x32xf32>
    %1118 = arith.select %25, %1116, %1117 : vector<16x32xi1>, vector<16x32xf32>
    %1119 = arith.index_cast %arg0 : i32 to index
    %c20_268 = arith.constant 20 : index
    %1120 = memref.load %arg10[%1119, %c20_268] : memref<4x36xf32, #tpu.memory_space<smem>>
    %1121 = vector.broadcast %1120 : f32 to vector<16x32xf32>
    %1122 = arith.mulf %1121, %1118 : vector<16x32xf32>
    %1123 = arith.addf %1110, %1122 : vector<16x32xf32>
    %1124 = arith.index_cast %arg0 : i32 to index
    %c21_269 = arith.constant 21 : index
    %1125 = memref.load %arg10[%1124, %c21_269] : memref<4x36xf32, #tpu.memory_space<smem>>
    %1126 = vector.broadcast %1125 : f32 to vector<16x32xf32>
    %1127 = arith.mulf %1126, %1118 : vector<16x32xf32>
    %1128 = arith.addf %1115, %1127 : vector<16x32xf32>
    %c31_i32_270 = arith.constant 31 : i32
    %1129 = tpu.dynamic_rotate %989 by %c31_i32_270 dim 1 : vector<16x32xf32>, i32 -> vector<16x32xf32>
    %cst_271 = arith.constant 0.000000e+00 : f32
    %1130 = vector.broadcast %cst_271 : f32 to vector<16x32xf32>
    %1131 = arith.select %25, %1129, %1130 : vector<16x32xi1>, vector<16x32xf32>
    %1132 = arith.index_cast %arg0 : i32 to index
    %c22_272 = arith.constant 22 : index
    %1133 = memref.load %arg10[%1132, %c22_272] : memref<4x36xf32, #tpu.memory_space<smem>>
    %1134 = vector.broadcast %1133 : f32 to vector<16x32xf32>
    %1135 = arith.mulf %1134, %1131 : vector<16x32xf32>
    %1136 = arith.addf %1123, %1135 : vector<16x32xf32>
    %1137 = arith.index_cast %arg0 : i32 to index
    %c23_273 = arith.constant 23 : index
    %1138 = memref.load %arg10[%1137, %c23_273] : memref<4x36xf32, #tpu.memory_space<smem>>
    %1139 = vector.broadcast %1138 : f32 to vector<16x32xf32>
    %1140 = arith.mulf %1139, %1131 : vector<16x32xf32>
    %1141 = arith.addf %1128, %1140 : vector<16x32xf32>
    %c15_i32_274 = arith.constant 15 : i32
    %1142 = tpu.dynamic_rotate %976 by %c15_i32_274 dim 0 : vector<16x32xf32>, i32 -> vector<16x32xf32>
    %c1_i32_275 = arith.constant 1 : i32
    %1143 = tpu.dynamic_rotate %1142 by %c1_i32_275 dim 1 : vector<16x32xf32>, i32 -> vector<16x32xf32>
    %cst_276 = arith.constant 0.000000e+00 : f32
    %1144 = vector.broadcast %cst_276 : f32 to vector<16x32xf32>
    %1145 = arith.select %28, %1143, %1144 : vector<16x32xi1>, vector<16x32xf32>
    %1146 = arith.index_cast %arg0 : i32 to index
    %c24_277 = arith.constant 24 : index
    %1147 = memref.load %arg10[%1146, %c24_277] : memref<4x36xf32, #tpu.memory_space<smem>>
    %1148 = vector.broadcast %1147 : f32 to vector<16x32xf32>
    %1149 = arith.mulf %1148, %1145 : vector<16x32xf32>
    %1150 = arith.addf %1136, %1149 : vector<16x32xf32>
    %1151 = arith.index_cast %arg0 : i32 to index
    %c25_278 = arith.constant 25 : index
    %1152 = memref.load %arg10[%1151, %c25_278] : memref<4x36xf32, #tpu.memory_space<smem>>
    %1153 = vector.broadcast %1152 : f32 to vector<16x32xf32>
    %1154 = arith.mulf %1153, %1145 : vector<16x32xf32>
    %1155 = arith.addf %1141, %1154 : vector<16x32xf32>
    %c15_i32_279 = arith.constant 15 : i32
    %1156 = tpu.dynamic_rotate %989 by %c15_i32_279 dim 0 : vector<16x32xf32>, i32 -> vector<16x32xf32>
    %c1_i32_280 = arith.constant 1 : i32
    %1157 = tpu.dynamic_rotate %1156 by %c1_i32_280 dim 1 : vector<16x32xf32>, i32 -> vector<16x32xf32>
    %cst_281 = arith.constant 0.000000e+00 : f32
    %1158 = vector.broadcast %cst_281 : f32 to vector<16x32xf32>
    %1159 = arith.select %28, %1157, %1158 : vector<16x32xi1>, vector<16x32xf32>
    %1160 = arith.index_cast %arg0 : i32 to index
    %c26_282 = arith.constant 26 : index
    %1161 = memref.load %arg10[%1160, %c26_282] : memref<4x36xf32, #tpu.memory_space<smem>>
    %1162 = vector.broadcast %1161 : f32 to vector<16x32xf32>
    %1163 = arith.mulf %1162, %1159 : vector<16x32xf32>
    %1164 = arith.addf %1150, %1163 : vector<16x32xf32>
    %1165 = arith.index_cast %arg0 : i32 to index
    %c27_283 = arith.constant 27 : index
    %1166 = memref.load %arg10[%1165, %c27_283] : memref<4x36xf32, #tpu.memory_space<smem>>
    %1167 = vector.broadcast %1166 : f32 to vector<16x32xf32>
    %1168 = arith.mulf %1167, %1159 : vector<16x32xf32>
    %1169 = arith.addf %1155, %1168 : vector<16x32xf32>
    %c15_i32_284 = arith.constant 15 : i32
    %1170 = tpu.dynamic_rotate %976 by %c15_i32_284 dim 0 : vector<16x32xf32>, i32 -> vector<16x32xf32>
    %cst_285 = arith.constant 0.000000e+00 : f32
    %1171 = vector.broadcast %cst_285 : f32 to vector<16x32xf32>
    %1172 = arith.select %21, %1170, %1171 : vector<16x32xi1>, vector<16x32xf32>
    %1173 = arith.index_cast %arg0 : i32 to index
    %c28_286 = arith.constant 28 : index
    %1174 = memref.load %arg10[%1173, %c28_286] : memref<4x36xf32, #tpu.memory_space<smem>>
    %1175 = vector.broadcast %1174 : f32 to vector<16x32xf32>
    %1176 = arith.mulf %1175, %1172 : vector<16x32xf32>
    %1177 = arith.addf %1164, %1176 : vector<16x32xf32>
    %1178 = arith.index_cast %arg0 : i32 to index
    %c29_287 = arith.constant 29 : index
    %1179 = memref.load %arg10[%1178, %c29_287] : memref<4x36xf32, #tpu.memory_space<smem>>
    %1180 = vector.broadcast %1179 : f32 to vector<16x32xf32>
    %1181 = arith.mulf %1180, %1172 : vector<16x32xf32>
    %1182 = arith.addf %1169, %1181 : vector<16x32xf32>
    %c15_i32_288 = arith.constant 15 : i32
    %1183 = tpu.dynamic_rotate %989 by %c15_i32_288 dim 0 : vector<16x32xf32>, i32 -> vector<16x32xf32>
    %cst_289 = arith.constant 0.000000e+00 : f32
    %1184 = vector.broadcast %cst_289 : f32 to vector<16x32xf32>
    %1185 = arith.select %21, %1183, %1184 : vector<16x32xi1>, vector<16x32xf32>
    %1186 = arith.index_cast %arg0 : i32 to index
    %c30_290 = arith.constant 30 : index
    %1187 = memref.load %arg10[%1186, %c30_290] : memref<4x36xf32, #tpu.memory_space<smem>>
    %1188 = vector.broadcast %1187 : f32 to vector<16x32xf32>
    %1189 = arith.mulf %1188, %1185 : vector<16x32xf32>
    %1190 = arith.addf %1177, %1189 : vector<16x32xf32>
    %1191 = arith.index_cast %arg0 : i32 to index
    %c31_291 = arith.constant 31 : index
    %1192 = memref.load %arg10[%1191, %c31_291] : memref<4x36xf32, #tpu.memory_space<smem>>
    %1193 = vector.broadcast %1192 : f32 to vector<16x32xf32>
    %1194 = arith.mulf %1193, %1185 : vector<16x32xf32>
    %1195 = arith.addf %1182, %1194 : vector<16x32xf32>
    %c15_i32_292 = arith.constant 15 : i32
    %1196 = tpu.dynamic_rotate %976 by %c15_i32_292 dim 0 : vector<16x32xf32>, i32 -> vector<16x32xf32>
    %c31_i32_293 = arith.constant 31 : i32
    %1197 = tpu.dynamic_rotate %1196 by %c31_i32_293 dim 1 : vector<16x32xf32>, i32 -> vector<16x32xf32>
    %cst_294 = arith.constant 0.000000e+00 : f32
    %1198 = vector.broadcast %cst_294 : f32 to vector<16x32xf32>
    %1199 = arith.select %29, %1197, %1198 : vector<16x32xi1>, vector<16x32xf32>
    %1200 = arith.index_cast %arg0 : i32 to index
    %c32_295 = arith.constant 32 : index
    %1201 = memref.load %arg10[%1200, %c32_295] : memref<4x36xf32, #tpu.memory_space<smem>>
    %1202 = vector.broadcast %1201 : f32 to vector<16x32xf32>
    %1203 = arith.mulf %1202, %1199 : vector<16x32xf32>
    %1204 = arith.addf %1190, %1203 : vector<16x32xf32>
    %1205 = arith.index_cast %arg0 : i32 to index
    %c33_296 = arith.constant 33 : index
    %1206 = memref.load %arg10[%1205, %c33_296] : memref<4x36xf32, #tpu.memory_space<smem>>
    %1207 = vector.broadcast %1206 : f32 to vector<16x32xf32>
    %1208 = arith.mulf %1207, %1199 : vector<16x32xf32>
    %1209 = arith.addf %1195, %1208 : vector<16x32xf32>
    %c15_i32_297 = arith.constant 15 : i32
    %1210 = tpu.dynamic_rotate %989 by %c15_i32_297 dim 0 : vector<16x32xf32>, i32 -> vector<16x32xf32>
    %c31_i32_298 = arith.constant 31 : i32
    %1211 = tpu.dynamic_rotate %1210 by %c31_i32_298 dim 1 : vector<16x32xf32>, i32 -> vector<16x32xf32>
    %cst_299 = arith.constant 0.000000e+00 : f32
    %1212 = vector.broadcast %cst_299 : f32 to vector<16x32xf32>
    %1213 = arith.select %29, %1211, %1212 : vector<16x32xi1>, vector<16x32xf32>
    %1214 = arith.index_cast %arg0 : i32 to index
    %c34_300 = arith.constant 34 : index
    %1215 = memref.load %arg10[%1214, %c34_300] : memref<4x36xf32, #tpu.memory_space<smem>>
    %1216 = vector.broadcast %1215 : f32 to vector<16x32xf32>
    %1217 = arith.mulf %1216, %1213 : vector<16x32xf32>
    %1218 = arith.addf %1204, %1217 : vector<16x32xf32>
    %1219 = arith.index_cast %arg0 : i32 to index
    %c35_301 = arith.constant 35 : index
    %1220 = memref.load %arg10[%1219, %c35_301] : memref<4x36xf32, #tpu.memory_space<smem>>
    %1221 = vector.broadcast %1220 : f32 to vector<16x32xf32>
    %1222 = arith.mulf %1221, %1213 : vector<16x32xf32>
    %1223 = arith.addf %1209, %1222 : vector<16x32xf32>
    %1224 = arith.index_cast %arg0 : i32 to index
    %c0_302 = arith.constant 0 : index
    %1225 = memref.load %arg11[%1224, %c0_302] : memref<4x2xf32, #tpu.memory_space<smem>>
    %1226 = vector.broadcast %1225 : f32 to vector<16x32xf32>
    %1227 = arith.addf %1218, %1226 : vector<16x32xf32>
    %1228 = arith.index_cast %arg0 : i32 to index
    %c1_303 = arith.constant 1 : index
    %1229 = memref.load %arg11[%1228, %c1_303] : memref<4x2xf32, #tpu.memory_space<smem>>
    %1230 = vector.broadcast %1229 : f32 to vector<16x32xf32>
    %1231 = arith.addf %1223, %1230 : vector<16x32xf32>
    %1232 = arith.addf %1227, %31 : vector<16x32xf32>
    %c0_304 = arith.constant 0 : index
    %c0_305 = arith.constant 0 : index
    %c0_306 = arith.constant 0 : index
    %1233 = vector.load %arg13[%c0_304, %c0_305, %c0_306] : memref<2x16x32xf32, #tpu.memory_space<vmem>>, vector<1x16x32xf32>
    %1234 = vector.shape_cast %1233 : vector<1x16x32xf32> to vector<16x32xf32>
    %1235 = vector.shape_cast %1232 : vector<16x32xf32> to vector<1x16x32xf32>
    tpu.vector_store %arg13[%c0_304, %c0_305, %c0_306], %1235 {strides = array<i32>} : memref<2x16x32xf32, #tpu.memory_space<vmem>>, vector<1x16x32xf32>,
    %1236 = arith.addf %1231, %33 : vector<16x32xf32>
    %c1_307 = arith.constant 1 : index
    %c0_308 = arith.constant 0 : index
    %c0_309 = arith.constant 0 : index
    %1237 = vector.load %arg13[%c1_307, %c0_308, %c0_309] : memref<2x16x32xf32, #tpu.memory_space<vmem>>, vector<1x16x32xf32>
    %1238 = vector.shape_cast %1237 : vector<1x16x32xf32> to vector<16x32xf32>
    %1239 = vector.shape_cast %1236 : vector<16x32xf32> to vector<1x16x32xf32>
    tpu.vector_store %arg13[%c1_307, %c0_308, %c0_309], %1239 {strides = array<i32>} : memref<2x16x32xf32, #tpu.memory_space<vmem>>, vector<1x16x32xf32>,
    return
  }
  func.func @transform_0(%arg0: i32) -> (i32, i32, i32) {
    %c0_i32 = arith.constant 0 : i32
    %c0_i32_0 = arith.constant 0 : i32
    %c0_i32_1 = arith.constant 0 : i32
    return %arg0, %c0_i32, %c0_i32_0 : i32, i32, i32
  }
  func.func @transform_1(%arg0: i32) -> (i32, i32, i32) {
    %c0_i32 = arith.constant 0 : i32
    %c0_i32_0 = arith.constant 0 : i32
    %c0_i32_1 = arith.constant 0 : i32
    return %arg0, %c0_i32, %c0_i32_0 : i32, i32, i32
  }
  func.func @transform_2(%arg0: i32) -> (i32, i32, i32) {
    %c0_i32 = arith.constant 0 : i32
    %c0_i32_0 = arith.constant 0 : i32
    %c0_i32_1 = arith.constant 0 : i32
    %c0_i32_2 = arith.constant 0 : i32
    return %c0_i32, %c0_i32_0, %c0_i32_1 : i32, i32, i32
  }
  func.func @transform_3(%arg0: i32) -> (i32, i32) {
    %c0_i32 = arith.constant 0 : i32
    %c0_i32_0 = arith.constant 0 : i32
    %c0_i32_1 = arith.constant 0 : i32
    return %c0_i32, %c0_i32_0 : i32, i32
  }
  func.func @transform_4(%arg0: i32) -> (i32, i32) {
    %c0_i32 = arith.constant 0 : i32
    %c0_i32_0 = arith.constant 0 : i32
    %c0_i32_1 = arith.constant 0 : i32
    return %c0_i32, %c0_i32_0 : i32, i32
  }
  func.func @transform_5(%arg0: i32) -> (i32, i32) {
    %c0_i32 = arith.constant 0 : i32
    %c0_i32_0 = arith.constant 0 : i32
    %c0_i32_1 = arith.constant 0 : i32
    return %c0_i32, %c0_i32_0 : i32, i32
  }
  func.func @transform_6(%arg0: i32) -> (i32, i32) {
    %c0_i32 = arith.constant 0 : i32
    %c0_i32_0 = arith.constant 0 : i32
    %c0_i32_1 = arith.constant 0 : i32
    return %c0_i32, %c0_i32_0 : i32, i32
  }
  func.func @transform_7(%arg0: i32) -> (i32, i32) {
    %c0_i32 = arith.constant 0 : i32
    %c0_i32_0 = arith.constant 0 : i32
    %c0_i32_1 = arith.constant 0 : i32
    return %c0_i32, %c0_i32_0 : i32, i32
  }
  func.func @transform_8(%arg0: i32) -> (i32, i32) {
    %c0_i32 = arith.constant 0 : i32
    %c0_i32_0 = arith.constant 0 : i32
    %c0_i32_1 = arith.constant 0 : i32
    return %c0_i32, %c0_i32_0 : i32, i32
  }
  func.func @transform_9(%arg0: i32) -> (i32, i32) {
    %c0_i32 = arith.constant 0 : i32
    %c0_i32_0 = arith.constant 0 : i32
    %c0_i32_1 = arith.constant 0 : i32
    return %c0_i32, %c0_i32_0 : i32, i32
  }
  func.func @transform_10(%arg0: i32) -> (i32, i32) {
    %c0_i32 = arith.constant 0 : i32
    %c0_i32_0 = arith.constant 0 : i32
    %c0_i32_1 = arith.constant 0 : i32
    return %c0_i32, %c0_i32_0 : i32, i32
  }
  func.func @transform_11(%arg0: i32) -> (i32, i32) {
    %c0_i32 = arith.constant 0 : i32
    %c0_i32_0 = arith.constant 0 : i32
    %c0_i32_1 = arith.constant 0 : i32
    return %c0_i32, %c0_i32_0 : i32, i32
  }
  func.func @transform_12(%arg0: i32) -> (i32, i32, i32) {
    %c0_i32 = arith.constant 0 : i32
    %c0_i32_0 = arith.constant 0 : i32
    %c0_i32_1 = arith.constant 0 : i32
    return %arg0, %c0_i32, %c0_i32_0 : i32, i32, i32
  }
}

</mosaic_0001>

<bundles_post_ra>
// kernel: tpu_custom_call.1
= control target key start
LH: loop header
LB: loop body
LE: loop exit
PB: predicated region body
PF: predicated region fallthrough
CT: control target
= control target key end

     0   :  { %s6905_s0 = inlined_call_operand.hbm [shape: f32[8,16,32], index: 0, kind: input, shape index: {}]   ;;  %s6906_s1 = inlined_call_operand.hbm [shape: f32[4,16,32], index: 1, kind: input, shape index: {}]   ;;  %s6907_s2 = inlined_call_operand.vmem [shape: f32[1,16,32], index: 2, kind: input, shape index: {}]   ;;  %s6908_s3 = inlined_call_operand.vmem [shape: f32[4,54], index: 3, kind: input, shape index: {}]   ;;  %s6909_s4 = inlined_call_operand.vmem [shape: f32[4,2], index: 4, kind: input, shape index: {}]   ;;  %s6910_s5 = inlined_call_operand.vmem [shape: f32[4,18], index: 5, kind: input, shape index: {}]   ;;  %s6911_s6 = inlined_call_operand.vmem [shape: f32[4,2], index: 6, kind: input, shape index: {}]   ;;  %s6912_s7 = inlined_call_operand.vmem [shape: f32[4,72], index: 7, kind: input, shape index: {}]   ;;  %s6913_s8 = inlined_call_operand.vmem [shape: f32[4,4], index: 8, kind: input, shape index: {}]   ;;  %s6914_s9 = inlined_call_operand.vmem [shape: f32[4,36], index: 9, kind: input, shape index: {}]   ;;  %s6915_s10 = inlined_call_operand.vmem [shape: f32[4,2], index: 10, kind: input, shape index: {}]   ;;  %s6916_s11 = inlined_call_operand.vmem [shape: f32[4,2], index: 11, kind: input, shape index: {}]   ;;  %s6917_s12 = inlined_call_operand.hbm [shape: f32[8,16,32], index: 12, kind: output, shape index: {}]  }
   0x1   :  { %7141 = sst [smem:[#allocation215_spill]] %s6905_s0 }
   0x2   :  { %7142 = sst [smem:[#allocation216_spill]] %s6906_s1 }
   0x3   :  { %7143 = sst [smem:[#allocation217_spill]] %s6907_s2 }
   0x4   :  { %7144 = sst [smem:[#allocation218_spill]] %s6908_s3 }
   0x5   :  { %7145 = sst [smem:[#allocation219_spill]] %s6909_s4 }
   0x6   :  { %7146 = sst [smem:[#allocation220_spill]] %s6910_s5 }
   0x7   :  { %7147 = sst [smem:[#allocation221_spill]] %s6911_s6 }
   0x8   :  { %7148 = sst [smem:[#allocation222_spill]] %s6912_s7 }
   0x9   :  { %7149 = sst [smem:[#allocation223_spill]] %s6913_s8 }
   0xa   :  { %7150 = sst [smem:[#allocation224_spill]] %s6914_s9 }
   0xb   :  { %7151 = sst [smem:[#allocation225_spill]] %s6915_s10 }
   0xc   :  { %7152 = sst [smem:[#allocation226_spill]] %s6916_s11 }
   0xd   :  { %7153 = sst [smem:[#allocation227_spill]] %s6917_s12 }
   0xe   :  { %17 = vsyncpa [#allocation3], 0 }
   0xf   :  { %19 = vsyncpa [#allocation3 + $0x1], 0 }
  0x10   :  { %20 = vsyncpa [#allocation7], 0 }
  0x11   :  { %22 = vsyncpa [#allocation7 + $0x1], 0 }
  0x12   :  { %23 = vsyncpa [#allocation5], 0 }
  0x13   :  { %24 = vsyncpa [#allocation10], 0 }
  0x14   :  { %25 = vsyncpa [#allocation13], 0 }
  0x15   :  { %26 = vsyncpa [#allocation16], 0 }
  0x16   :  { %27 = vsyncpa [#allocation19], 0 }
  0x17   :  { %28 = vsyncpa [#allocation4], 0 }
  0x18   :  { %30 = vsyncpa [#allocation4 + $0x1], 0  ;;  %s3473_s21 = smov 0   ;;  %s3475_s22 = smov 0  }
  0x19   :  { %s3477_s23 = smov 0   ;;  %s3479_s24 = smov 0  }
  0x1a LB: > { %7154 = sst [smem:[#allocation30_spill]] %s3375_s21  ;;  %s3497_s28 = sadd.s32 4294967295, %s3387_s24   ;;  %s3387_s24 = sphi %s3479_s24, %s7911_s24   ;;  %s3383_s23 = sphi %s3477_s23, %s7914_s23   ;;  %s3379_s22 = sphi %s3475_s22, %s7913_s22   ;;  %s3375_s21 = sphi %s3473_s21, %s7912_s21  }
  0x1b   : > { %7155 = sst [smem:[#allocation31_spill]] %s3379_s22  ;;  %p2886_p0 = scmp.ge.s32.totalorder %s3387_s24, 1 }
  0x1c   : > { %7156 = sst [smem:[#allocation32_spill]] %s3383_s23  ;;  %p6918_p1 = scmp.eq.s32.totalorder %s3497_s28, 0 }
  0x1d   : > { %7157 = sst [smem:[#allocation33_spill]] %s3387_s24  ;;  %p329_p2 = scmp.lt.s32.totalorder %s3387_s24, 5 }
  0x1e   : > { %s7158_s4 = sld [smem:[#allocation219_spill]] }
  0x1f   : > { %7159 = sst [smem:[#allocation34_spill]] %s3497_s28  ;;  %p3502_p3 = pnand %p2886_p0, %p329_p2 }
  0x20   : > { %s7161_s6 = sld [smem:[#allocation221_spill]] }
  0x21   : > { %s7160_s29 = scalar_select %p3502_p3, 1, 0 }
  0x22   : > { %p2975_p4 = pneg %p3502_p3  ;;  %s7162_s8 = sld [smem:[#allocation223_spill]] }
  0x23   : > { %s7164_s10 = sld [smem:[#allocation225_spill]] }
  0x24   : > { %s356_s27 = sshll.u32 %s7158_s4, 4  ;;  %p3516_p5 = pnand %p2975_p4, %p6918_p1  ;;  %s357_s27 = int_to_ptr.vmem [resolvable:$true] %s356_s27 }
  0x25   : > { %s3108_s26 = scalar_lea.vmem %s357_s27, 64  ;;  %p3116_p10 = scmp.lt.s32.totalorder %s357_s27, %s357_s27 }
  0x26   : > { %s378_s14 = sshll.u32 %s7161_s6, 4  ;;  %p3109_p6 = scmp.ne.s32.totalorder %s357_s27, %s3108_s26  ;;  %s379_s14 = int_to_ptr.vmem [resolvable:$true] %s378_s14 }
  0x27   : > { %p3529_p7 = pneg %p3516_p5  ;;  %p3117_p11 = scmp.lt.s32.totalorder %s3108_s26, %s3108_s26 }
  0x28   : > { %s400_s17 = sshll.u32 %s7162_s8, 4  ;;  %s3520_s17 = int_to_ptr.vmem [resolvable:$true] %s400_s17 }
  0x29   : > { %s422_s25 = sshll.u32 %s7164_s10, 4  ;;  %p3111_p8 = pnand %p3529_p7, %p3109_p6  ;;  %s3525_s25 = int_to_ptr.vmem [resolvable:$true] %s422_s25 }
  0x2a   : > { %p3118_p12 = por %p3117_p11, %p3116_p10 }
  0x2b   : > { %p3112_p9 = pneg %p3111_p8 }
  0x2d   : > { %p3119_p13 = pnand %p3118_p12, %p3112_p9 }
  0x2f   : > { %3122 = shalt.err (!%p3119_p13)
}
  0x30   : > { %s3389_s13 = smov [#allocation9]   ;;  %s3123_s15 = scalar_lea.vmem %s379_s14, 64 }
  0x31   : > { %2981 = dma.vmem_to_smem (!%p3516_p5), %s357_s27, 64, %s3389_s13, [#allocation10]  }
  0x32   : > { %p3124_p0 = scmp.ne.s32.totalorder %s379_s14, %s3123_s15  ;;  %p3131_p1 = scmp.lt.s32.totalorder %s379_s14, %s379_s14 }
  0x33   : > { %p3132_p3 = scmp.lt.s32.totalorder %s3123_s15, %s3123_s15 }
  0x34   : > { %p3126_p2 = pnand %p3124_p0, %p3529_p7 }
  0x35   : > { %p3133_p6 = por %p3132_p3, %p3131_p1 }
  0x36   : > { %p3127_p4 = pneg %p3126_p2 }
  0x38   : > { %p3134_p8 = pnand %p3133_p6, %p3127_p4 }
  0x3a   : > { %3137 = shalt.err (!%p3134_p8)
}
  0x3b   : > { %s3390_s16 = smov [#allocation12]   ;;  %s3138_s19 = scalar_lea.vmem %s3520_s17, 64 }
  0x3c   : > { %2987 = dma.vmem_to_smem (!%p3516_p5), %s379_s14, 64, %s3390_s16, [#allocation13]  }
  0x3d   : > { %p3139_p9 = scmp.ne.s32.totalorder %s3520_s17, %s3138_s19  ;;  %p3146_p12 = scmp.lt.s32.totalorder %s3520_s17, %s3520_s17 }
  0x3e   : > { %p3147_p13 = scmp.lt.s32.totalorder %s3138_s19, %s3138_s19 }
  0x3f   : > { %p3141_p10 = pnand %p3139_p9, %p3529_p7 }
  0x40   : > { %p3148_p0 = por %p3147_p13, %p3146_p12 }
  0x41   : > { %p3142_p11 = pneg %p3141_p10 }
  0x43   : > { %p3149_p1 = pnand %p3148_p0, %p3142_p11 }
  0x45   : > { %3152 = shalt.err (!%p3149_p1)
}
  0x46   : > { %s3391_s27 = smov [#allocation15]   ;;  %s3153_s14 = scalar_lea.vmem %s3525_s25, 64 }
  0x47   : > { %2993 = dma.vmem_to_smem (!%p3516_p5), %s3520_s17, 64, %s3391_s27, [#allocation16]  }
  0x48   : > { %p3154_p3 = scmp.ne.s32.totalorder %s3525_s25, %s3153_s14  ;;  %p3161_p6 = scmp.lt.s32.totalorder %s3525_s25, %s3525_s25 }
  0x49   : > { %p3162_p8 = scmp.lt.s32.totalorder %s3153_s14, %s3153_s14 }
  0x4a   : > { %p3156_p2 = pnand %p3154_p3, %p3529_p7 }
  0x4b   : > { %p3163_p9 = por %p3162_p8, %p3161_p6 }
  0x4c   : > { %p3157_p4 = pneg %p3156_p2 }
  0x4e   : > { %p3164_p10 = pnand %p3163_p9, %p3157_p4 }
  0x50   : > { %3167 = shalt.err (!%p3164_p10)
}
  0x51   : > { %s3392_s20 = smov [#allocation18]   ;;  %s7166_s3 = sld [smem:[#allocation218_spill]] }
  0x52   : > { %2999 = dma.vmem_to_smem (!%p3516_p5), %s3525_s25, 64, %s3392_s20, [#allocation19]  }
  0x53   : > { %s7167_s5 = sld [smem:[#allocation220_spill]] }
  0x57   : > { %s345_s17 = sshll.u32 %s7166_s3, 4  ;;  %s346_s17 = int_to_ptr.vmem [resolvable:$true] %s345_s17 }
  0x58   : > { %s3168_s27 = scalar_lea.vmem %s346_s17, 64  ;;  %p3176_p0 = scmp.lt.s32.totalorder %s346_s17, %s346_s17 }
  0x59   : > { %s367_s19 = sshll.u32 %s7167_s5, 4  ;;  %p3169_p11 = scmp.ne.s32.totalorder %s346_s17, %s3168_s27  ;;  %s368_s19 = int_to_ptr.vmem [resolvable:$true] %s367_s19 }
  0x5a   : > { %p3177_p1 = scmp.lt.s32.totalorder %s3168_s27, %s3168_s27 }
  0x5b   : > { %p3171_p12 = pnand %p3169_p11, %p3529_p7 }
  0x5c   : > { %p3178_p3 = por %p3177_p1, %p3176_p0 }
  0x5d   : > { %p3172_p13 = pneg %p3171_p12 }
  0x5f   : > { %p3179_p2 = pnand %p3178_p3, %p3172_p13 }
  0x61   : > { %3182 = shalt.err (!%p3179_p2)
}
  0x62   : > { %s3393_s25 = smov [#allocation8]   ;;  %s3183_s14 = scalar_lea.vmem %s368_s19, 64 }
  0x63   : > { %2978 = dma.vmem_to_smem (!%p3516_p5), %s346_s17, 64, %s3393_s25, [#allocation5]  }
  0x64   : > { %p3184_p4 = scmp.ne.s32.totalorder %s368_s19, %s3183_s14  ;;  %p3191_p9 = scmp.lt.s32.totalorder %s368_s19, %s368_s19 }
  0x65   : > { %p3192_p10 = scmp.lt.s32.totalorder %s3183_s14, %s3183_s14 }
  0x66   : > { %p3186_p6 = pnand %p3184_p4, %p3529_p7 }
  0x67   : > { %p3193_p11 = por %p3192_p10, %p3191_p9 }
  0x68   : > { %p3187_p8 = pneg %p3186_p6 }
  0x6a   : > { %p3194_p12 = pnand %p3193_p11, %p3187_p8 }
  0x6c   : > { %3197 = shalt.err (!%p3194_p12)
}
  0x6d   : > { %s3394_s20 = smov [#allocation11]   ;;  %s7168_s7 = sld [smem:[#allocation222_spill]] }
  0x6e   : > { %2984 = dma.vmem_to_smem (!%p3516_p5), %s368_s19, 64, %s3394_s20, [#allocation10]  }
  0x6f   : > { %s7169_s9 = sld [smem:[#allocation224_spill]] }
  0x73   : > { %s389_s17 = sshll.u32 %s7168_s7, 4  ;;  %s390_s17 = int_to_ptr.vmem [resolvable:$true] %s389_s17 }
  0x74   : > { %s3198_s25 = scalar_lea.vmem %s390_s17, 64  ;;  %p3206_p3 = scmp.lt.s32.totalorder %s390_s17, %s390_s17 }
  0x75   : > { %s411_s27 = sshll.u32 %s7169_s9, 4  ;;  %p3199_p13 = scmp.ne.s32.totalorder %s390_s17, %s3198_s25  ;;  %s412_s27 = int_to_ptr.vmem [resolvable:$true] %s411_s27 }
  0x76   : > { %p3207_p2 = scmp.lt.s32.totalorder %s3198_s25, %s3198_s25 }
  0x77   : > { %p3201_p0 = pnand %p3199_p13, %p3529_p7 }
  0x78   : > { %p3208_p4 = por %p3207_p2, %p3206_p3 }
  0x79   : > { %p3202_p1 = pneg %p3201_p0 }
  0x7b   : > { %p3209_p6 = pnand %p3208_p4, %p3202_p1 }
  0x7d   : > { %3212 = shalt.err (!%p3209_p6)
}
  0x7e   : > { %s3395_s19 = smov [#allocation14]   ;;  %s3213_s14 = scalar_lea.vmem %s412_s27, 64 }
  0x7f   : > { %2990 = dma.vmem_to_smem (!%p3516_p5), %s390_s17, 64, %s3395_s19, [#allocation13]  }
  0x80   : > { %p3214_p8 = scmp.ne.s32.totalorder %s412_s27, %s3213_s14  ;;  %p3221_p11 = scmp.lt.s32.totalorder %s412_s27, %s412_s27 }
  0x81   : > { %p3222_p12 = scmp.lt.s32.totalorder %s3213_s14, %s3213_s14 }
  0x82   : > { %p3216_p9 = pnand %p3214_p8, %p3529_p7 }
  0x83   : > { %p3223_p13 = por %p3222_p12, %p3221_p11 }
  0x84   : > { %p3217_p10 = pneg %p3216_p9 }
  0x86   : > { %p3224_p0 = pnand %p3223_p13, %p3217_p10 }
  0x88   : > { %3227 = shalt.err (!%p3224_p0)
}
  0x89   : > { %s3396_s20 = smov [#allocation17]   ;;  %s7170_s11 = sld [smem:[#allocation226_spill]] }
  0x8a   : > { %2996 = dma.vmem_to_smem (!%p3516_p5), %s412_s27, 64, %s3396_s20, [#allocation16]  }
  0x8f   : > { %s433_s17 = sshll.u32 %s7170_s11, 4  ;;  %s434_s17 = int_to_ptr.vmem [resolvable:$true] %s433_s17 }
  0x90   : > { %s3228_s15 = scalar_lea.vmem %s434_s17, 64  ;;  %p3236_p4 = scmp.lt.s32.totalorder %s434_s17, %s434_s17 }
  0x91   : > { %p3229_p1 = scmp.ne.s32.totalorder %s434_s17, %s3228_s15  ;;  %p3237_p6 = scmp.lt.s32.totalorder %s3228_s15, %s3228_s15 }
  0x93   : > { %p3231_p3 = pnand %p3229_p1, %p3529_p7  ;;  %p3238_p8 = por %p3237_p6, %p3236_p4 }
  0x95   : > { %p3232_p2 = pneg %p3231_p3 }
  0x97   : > { %p3239_p9 = pnand %p3238_p8, %p3232_p2 }
  0x99   : > { %3242 = shalt.err (!%p3239_p9)
}
  0x9a   : > { %s3397_s16 = smov [#allocation20]   ;;  %s2885_s30 = sadd.s32 4294967294, %s3387_s24  }
  0x9b   : > { %3002 = dma.vmem_to_smem (!%p3516_p5), %s434_s17, 64, %s3397_s16, [#allocation19]  }
  0x9c   : > { %s3596_s27 = sadd.s32 1, %s3387_s24   ;;  %s43_s18 = sadd.s32 1, %s3383_s23 }
  0x9d   : > { %7171 = sst [smem:[#allocation35_spill]] %s3596_s27  ;;  %s40_s25 = ssub.s32 %s3387_s24, %s3596_s27 }
  0x9e   : > { %p50_p7 = scmp.ne.s32.totalorder %s3383_s23, %s3379_s22  ;;  %p41_p10 = scmp.eq.s32.totalorder %s40_s25, 0 }
  0x9f   : > { %p51_p11 = scmp.eq.s32.totalorder %s3387_s24, 0  ;;  %p56_p12 = scmp.ne.s32.totalorder %s3379_s22, %s3375_s21 }
  0xa0   : > { %p316_p13 = scmp.eq.s32.totalorder %s3497_s28, 3  ;;  %p7173_p1 = scmp.eq.s32.totalorder %s3497_s28, 0 }
  0xa1   : > { %s3608_s19 = scalar_select %p41_p10, %s3383_s23, %s43_s18  }
  0xa2   : > { %p52_p0 = por %p51_p11, %p50_p7  ;;  %p3612_p3 = por %p7173_p1, %p56_p12 }
  0xa3   : > { %7172 = sst [smem:[#allocation36_spill]] %s3608_s19  ;;  %p3616_p5 = por %p316_p13, %p50_p7 }
  0xa4   : > { %p322_p2 = scmp.eq.s32.totalorder %s2885_s30, 3  ;;  %p3023_p4 = scmp.lt.s32.totalorder %s3387_s24, 4 }
  0xa5   : > { %s7175_s20 = scalar_select %p3616_p5, 1, 0 }
  0xa6   : > { %s3622_s26 = sand.u32 1, %s3383_s23   ;;  %p3624_p6 = por %p322_p2, %p56_p12 }
  0xa7   : > { %7176 = sst [smem:[#allocation37_spill]] %s7175_s20  ;;  %s2897_s17 = sshll.u32 %s3622_s26, 5 }
  0xa8   : > { %s7177_s13 = scalar_select %p3624_p6, 1, 0 }
  0xa9   : > { %s2929_s15 = sshll.u32 %s3387_s24, 9  ;;  %s7179_s0 = sld [smem:[#allocation215_spill]] }
  0xaa   : > { %7178 = sst [smem:[#allocation38_spill]] %s7177_s13  ;;  %s448_s30 = scalar_lea.vmem [#allocation2], %s2897_s17 }
  0xab   : > { %s456_s3 = sshll.u32 %s448_s30, 4  ;;  %p3635_p8 = pnand %p3023_p4, %p52_p0  ;;  %s3639_s3 = int_to_ptr.vmem [resolvable:$true] %s456_s3 }
  0xad   : > { %p3245_p7 = pneg %p3635_p8 }
  0xaf   : > { %s3633_s25 = scalar_lea.hbm %s7179_s0, %s2929_s15  ;;  %s3248_s16 = scalar_lea.hbm %s7179_s0, 2048 }
  0xb0   : > { %s3243_s6 = scalar_lea.hbm %s3633_s25, 512  ;;  %p3249_p12 = scmp.lt.s32.totalorder %s3633_s25, %s7179_s0 }
  0xb1   : > { %p3244_p9 = scmp.ne.s32.totalorder %s3633_s25, %s3243_s6  ;;  %p3250_p13 = scmp.lt.s32.totalorder %s3248_s16, %s3243_s6 }
  0xb3   : > { %p3246_p10 = pnand %p3245_p7, %p3244_p9  ;;  %p3251_p0 = por %p3250_p13, %p3249_p12 }
  0xb5   : > { %p3247_p11 = pneg %p3246_p10 }
  0xb7   : > { %p3252_p1 = pnand %p3251_p0, %p3247_p11 }
  0xb9   : > { %3255 = shalt.err (!%p3252_p1)
}
  0xba   : > { %s3256_s5 = scalar_lea.vmem %s3639_s3, 512  ;;  %s3398_s15 = smov [#allocation2]  }
  0xbb   : > { %p3257_p2 = scmp.ne.s32.totalorder %s3639_s3, %s3256_s5  ;;  %s3261_s17 = sshll.u32 %s3398_s15, 4  ;;  %s3262_s17 = int_to_ptr.vmem [resolvable:$false] %s3261_s17 }
  0xbc   : > { %s3263_s7 = scalar_lea.vmem %s3262_s17, 1024  ;;  %p3264_p10 = scmp.lt.s32.totalorder %s3639_s3, %s3262_s17 }
  0xbd   : > { %p3259_p4 = pnand %p3257_p2, %p3245_p7  ;;  %p3265_p6 = scmp.lt.s32.totalorder %s3263_s7, %s3256_s5 }
  0xbf   : > { %p3260_p9 = pneg %p3259_p4  ;;  %p3266_p5 = por %p3265_p6, %p3264_p10 }
  0xc1   : > { %p3267_p12 = pnand %p3266_p5, %p3260_p9 }
  0xc3   : > { %3270 = shalt.err (!%p3267_p12)
}
  0xc4   : > { %s3399_s6 = smov 128   ;;  %s3400_s16 = smov 8  }
  0xc5   : > { %s7181_s18 = scalar_lea.sflag [#allocation3], %s3622_s26  ;;  %s2901_s5 = sshll.u32 %s3622_s26, 4 }
  0xc6   : > { %3006 = dma.hbm_to_vmem [thread:$0]  (!%p3635_p8), %s3633_s25, 512, %s3639_s3, %s7181_s18, %s3399_s6, %s3399_s6, %s3400_s16  }
  0xc7   : > { %s2930_s7 = sshll.u32 %s3387_s24, 8  ;;  %s7182_s1 = sld [smem:[#allocation216_spill]] }
  0xc8   : > { %s470_s0 = scalar_lea.vmem [#allocation6], %s2901_s5  ;;  %s467_s9 = scalar_lea.sflag [#allocation7], %s3622_s26 }
  0xc9   : > { %s477_s8 = sshll.u32 %s470_s0, 4  ;;  %s3678_s8 = int_to_ptr.vmem [resolvable:$true] %s477_s8 }
  0xcd   : > { %s3676_s17 = scalar_lea.hbm %s7182_s1, %s2930_s7  ;;  %s3276_s18 = scalar_lea.hbm %s7182_s1, 1024 }
  0xce   : > { %s3271_s10 = scalar_lea.hbm %s3676_s17, 256  ;;  %p3277_p13 = scmp.lt.s32.totalorder %s3676_s17, %s7182_s1 }
  0xcf   : > { %p3272_p5 = scmp.ne.s32.totalorder %s3676_s17, %s3271_s10  ;;  %p3278_p0 = scmp.lt.s32.totalorder %s3276_s18, %s3271_s10 }
  0xd1   : > { %p3274_p6 = pnand %p3272_p5, %p3245_p7  ;;  %p3279_p1 = por %p3278_p0, %p3277_p13 }
  0xd3   : > { %p3275_p11 = pneg %p3274_p6 }
  0xd5   : > { %p3280_p2 = pnand %p3279_p1, %p3275_p11 }
  0xd7   : > { %3283 = shalt.err (!%p3280_p2)
}
  0xd8   : > { %s3284_s0 = scalar_lea.vmem %s3678_s8, 256  ;;  %s3401_s26 = smov [#allocation6]  }
  0xd9   : > { %p3285_p4 = scmp.ne.s32.totalorder %s3678_s8, %s3284_s0  ;;  %s3289_s5 = sshll.u32 %s3401_s26, 4  ;;  %s3290_s5 = int_to_ptr.vmem [resolvable:$false] %s3289_s5 }
  0xda   : > { %s3291_s15 = scalar_lea.vmem %s3290_s5, 512  ;;  %p3292_p12 = scmp.lt.s32.totalorder %s3678_s8, %s3290_s5 }
  0xdb   : > { %p3287_p9 = pnand %p3285_p4, %p3245_p7  ;;  %p3293_p5 = scmp.lt.s32.totalorder %s3291_s15, %s3284_s0 }
  0xdd   : > { %p3288_p10 = pneg %p3287_p9  ;;  %p3294_p6 = por %p3293_p5, %p3292_p12 }
  0xdf   : > { %p3295_p13 = pnand %p3294_p6, %p3288_p10 }
  0xe1   : > { %3298 = shalt.err (!%p3295_p13)
}
  0xe2   : > { %3009 = dma.hbm_to_vmem [thread:$0]  (!%p3635_p8), %s3676_s17, 256, %s3678_s8, %s467_s9, %s3399_s6, %s3399_s6, %s3400_s16  }
  0xe3   : > { %p7183_p7 = scmp.ne.s32.totalorder %s7160_s29, 0 }
  0xe5   : > { %489 = sbr.rel (%p7183_p7) target bundleno = 1696 (0x6a0), region = 68 }
  0xea   : > { %s3709_s10 = sand.u32 1, %s3379_s22  }
  0xeb   : > { %7184 = sst [smem:[#allocation39_spill]] %s3709_s10  ;;  %s6921_s3 = sshll.u32 %s3709_s10, 5 }
  0xec   : > { %s492_s25 = scalar_lea.sflag [#allocation3], %s3709_s10  ;;  %s3715_s4 = scalar_lea.vmem [#allocation2], %s6921_s3 }
  0xed   : > { %7185 = sst [smem:[#allocation40_spill]] %s3715_s4 }
  0xee   : > { %3342 = dma.done.wait (%p3612_p3), %s492_s25, 512  }
  0xef   : > { %3344 = vsyncadd (%p3612_p3), %s492_s25, 4294966784  ;;  %s2906_s8 = sshll.u32 %s3709_s10, 4  ;;  %s501_s9 = scalar_lea.sflag [#allocation7], %s3709_s10 }
  0xf0   : > { %s3723_s29 = scalar_lea.vmem [#allocation6], %s2906_s8 }
  0xf1   : > { %7186 = sst [smem:[#allocation41_spill]] %s3723_s29 }
  0xf2   : > { %3346 = dma.done.wait (%p3612_p3), %s501_s9, 256  }
  0xf3   : > { %3348 = vsyncadd (%p3612_p3), %s501_s9, 4294967040  ;;  %p7187_p8 = scmp.eq.s32.totalorder %s3497_s28, 0 }
  0xf5   : > { %3350 = dma.done.wait (%p7187_p8), [#allocation5], 64   ;;  %p7188_p11 = pmov %p7187_p8 }
  0xf6   : > { %p7189_p0 = pmov %p7187_p8 }
  0xf7   : > { %3352 = vsyncadd (%p7188_p11), [#allocation5], 4294967232 }
  0xf8   : > { %3354 = dma.done.wait (%p7189_p0), [#allocation10], 128   ;;  %p7190_p1 = pmov %p7189_p0 }
  0xf9   : > { %p7191_p2 = pmov %p7189_p0 }
  0xfa   : > { %3356 = vsyncadd (%p7190_p1), [#allocation10], 4294967168 }
  0xfb   : > { %3358 = dma.done.wait (%p7191_p2), [#allocation13], 128   ;;  %p7192_p4 = pmov %p7189_p0 }
  0xfc   : > { %p7193_p3 = pmov %p7189_p0 }
  0xfd   : > { %3360 = vsyncadd (%p7192_p4), [#allocation13], 4294967168 }
  0xfe   : > { %3362 = dma.done.wait (%p7193_p3), [#allocation16], 128   ;;  %p7194_p9 = pmov %p7189_p0 }
  0xff   : > { %p7195_p10 = pmov %p7189_p0 }
 0x100   : > { %3364 = vsyncadd (%p7194_p9), [#allocation16], 4294967168 }
 0x101   : > { %3366 = dma.done.wait (%p7195_p10), [#allocation19], 128   ;;  %p7196_p12 = pmov %p7189_p0 }
 0x103   : > { %3368 = vsyncadd (%p7196_p12), [#allocation19], 4294967168 }
 0x104   : > { %545 = sfence }
 0x105   : > { %v589_v0 = vlaneseq  ;;  %s7197_s2 = sld [smem:[#allocation217_spill]]  ;;  %s6926_s18 = smov 32   ;;  %vm632_vm2 = vcmask 1047808   ;;  %v3832_v35 = vld [vmem:[%s3715_s4] sm:$0xff]  ;;  %v3835_v36 = vld [vmem:[%s3715_s4 + $0x8] sm:$0xff]  ;;  %v3844_v40 = vld [vmem:[%s3715_s4 + $0x10] sm:$0xff] }
 0x106   : > { %s6924_s7 = smov 97   ;;  %s6922_s30 = smov 127   ;;  %v627_v38 = vrot.slane %v3832_v35, 7  ;;  %v628_v39 = vrot.slane %v3835_v36, 7  ;;  %v3847_v41 = vld [vmem:[%s3715_s4 + $0x18] sm:$0xff]  ;;  %v665_v43 = vrot.slane %v3844_v40, 7 }
 0x107   : > { %v3764_v5 = vshrl.u32 %v589_v0, 7  ;;  %v666_v44 = vrot.slane %v3847_v41, 7  ;;  %v3858_v45 = vld [vmem:[%s3723_s29] sm:$0xff]  ;;  %v3861_v46 = vld [vmem:[%s3723_s29 + $0x8] sm:$0xff]  ;;  %v1075_v54 = vrot.slane %v3832_v35, 1  ;;  %v1076_v55 = vrot.slane %v3835_v36, 1 }
 0x108   : > { %v705_v49 = vrot.slane %v3858_v45, 7  ;;  %v706_v50 = vrot.slane %v3861_v46, 7  ;;  %v1116_v57 = vrot.slane %v3844_v40, 1  ;;  %v1117_v58 = vrot.slane %v3847_v41, 1  ;;  %s3953_s0 = sshll.u32 %s3497_s28, 7 }
 0x109   : > { %7198 = vst [vmem:[#allocation42_spill] sm:$0xff] %v3764_v5  ;;  %vm629_vm0 = vcmp.lt.s32.totalorder %v3764_v5, 1  ;;  %vm1077_vm1 = vcmp.lt.s32.totalorder %v3764_v5, 7  ;;  %v1156_v61 = vrot.slane %v3858_v45, 1  ;;  %v1157_v62 = vrot.slane %v3861_v46, 1  ;;  %7199 = sst [smem:[#allocation43_spill]] %s3953_s0 }
 0x10a   : > { %v3853_v42 = vsel %vm629_vm0, %v628_v39, %v627_v38  ;;  %v3868_v47 = vsel %vm629_vm0, %v627_v38, %v628_v39  ;;  %v3872_v48 = vsel %vm629_vm0, %v666_v44, %v665_v43  ;;  %v3882_v51 = vsel %vm629_vm0, %v706_v50, %v705_v49  ;;  %s3956_s26 = sadd.s32 14, %s3953_s0  ;;  %s3959_s5 = sadd.s32 15, %s3953_s0 }
 0x10b   : > { %v3752_v1 = vld [vmem:[%s7197_s2] sm:$0xff]  ;;  %v3757_v2 = vld [vmem:[%s7197_s2 + $0x8] sm:$0xff]  ;;  %v3886_v52 = vsel %vm629_vm0, %v665_v43, %v666_v44  ;;  %v3894_v53 = vsel %vm629_vm0, %v705_v49, %v706_v50  ;;  %v3912_v56 = vsel %vm1077_vm1, %v1075_v54, %v1076_v55  ;;  %v3922_v59 = vsel %vm1077_vm1, %v1116_v57, %v1117_v58  ;;  %7200 = sst [smem:[#allocation44_spill]] %s3956_s26  ;;  %s3962_s15 = sadd.s32 6, %s3953_s0 }
 0x10c   : > { %v1321_v3 = vrot.slane %v3752_v1, 7  ;;  %v1322_v4 = vrot.slane %v3757_v2, 7  ;;  %1389 = vrot.lane.b32.xlu1 %v3752_v1, %s6926_s18  ;;  %v1455_v6 = vrot.slane %v3752_v1, 1  ;;  %v1456_v7 = vrot.slane %v3757_v2, 1  ;;  %7201 = sst [smem:[#allocation45_spill]] %s3959_s5  ;;  %s3968_s8 = sadd.s32 7, %s3953_s0 }
 0x10d   : > { %v3926_v60 = vsel %vm1077_vm1, %v1076_v55, %v1075_v54  ;;  %v3936_v63 = vsel %vm1077_vm1, %v1156_v61, %v1157_v62  ;;  %7202 = sst [smem:[#allocation46_spill]] %s3962_s15  ;;  %s3977_s6 = sadd.s32 1, %s3953_s0  ;;  %vm606_vm3 = vcmp.gt.s32.totalorder %v3764_v5, 0  ;;  %v7223_v43 = vmov 0 }
 0x10e   : > { %v3771_v8 = vsel %vm629_vm0, %v1322_v4, %v1321_v3  ;;  %v3780_v9 = vsel %vm1077_vm1, %v1456_v7, %v1455_v6  ;;  %v3784_v10 = vsel %vm629_vm0, %v1321_v3, %v1322_v4  ;;  %v3792_v11 = vsel %vm1077_vm1, %v1455_v6, %v1456_v7  ;;  %s3965_s25 = sld [smem:[#allocation11 + %s3956_s26]]  ;;  %s3983_s17 = sadd.s32 2, %s3953_s0 }
 0x10f   : > { %1325 = vrot.lane.b32.xlu0 %v3771_v8, %s6926_s18  ;;  %v3940_v3 = vsel %vm1077_vm1, %v1117_v58, %v1116_v57  ;;  %v3948_v4 = vsel %vm1077_vm1, %v1157_v62, %v1156_v61  ;;  %7203 = sst [smem:[#allocation47_spill]] %s3968_s8  ;;  %s3986_s3 = sadd.s32 3, %s3953_s0  ;;  %v593_v6 = vand.u32 127, %v589_v0  ;;  %v4011_v7 = vadd.s32 8, %v3764_v5 }
 0x110   : > { %1392 = vrot.lane.b32.xlu1 %v3757_v2, %s6926_s18  ;;  %s3971_s9 = sld [smem:[#allocation11 + %s3959_s5]]  ;;  %s3999_s1 = sadd.s32 9, %s3953_s0 }
 0x111   : > { %s3974_s14 = sld [smem:[#allocation11 + %s3962_s15]]  ;;  %s4008_s19 = sadd.s32 4, %s3953_s0  ;;  %7210 = vst [vmem:[#allocation54_spill] sm:$0xff] %v4011_v7  ;;  %v598_v0 = vand.u32 15, %v593_v6  ;;  %vm609_vm4 = vcmp.lt.s32.totalorder %v4011_v7, 15 }
 0x112   : > { %7204 = sst [smem:[#allocation48_spill]] %s3977_s6  ;;  %s4014_s23 = sadd.s32 5, %s3953_s0 }
 0x113   : > { %1328 = vrot.lane.b32.xlu0 %v3784_v10, %s6926_s18  ;;  %s3980_s16 = sld [smem:[#allocation11 + %s3968_s8]]  ;;  %s4020_s27 = sadd.s32 10, %s3953_s0  ;;  %vm4051_vm5 = vcmp.gt.s32.totalorder %v598_v0, 0  ;;  %vm4055_vm6 = vcmp.lt.s32.totalorder %v598_v0, 15 }
 0x114   : > { %1462 = vrot.lane.b32.xlu1 %v3780_v9, %s6926_s18  ;;  %7205 = sst [smem:[#allocation49_spill]] %s3983_s17  ;;  %s4026_s21 = sadd.s32 11, %s3953_s0  ;;  %vm4070_vm7 = vmand %vm606_vm3, %vm4051_vm5 }
 0x115   : > { %7206 = sst [smem:[#allocation50_spill]] %s3986_s3  ;;  %s4040_s10 = sadd.s32 12, %s3953_s0  ;;  %vm4101_vm8 = vmand %vm606_vm3, %vm4055_vm6 }
 0x116   : > { %7208 = sst [smem:[#allocation52_spill]] %s3999_s1  ;;  %s4049_s29 = sadd.s32 13, %s3953_s0  ;;  %v7224_v43 = vsel %vm4101_vm8, 4294967295, %v7223_v43  ;;  %vm4162_vm9 = vmand %vm609_vm4, %vm4051_vm5 }
 0x117   : > { %1459 = vrot.lane.b32.xlu0 %v3792_v11, %s6926_s18  ;;  %s4002_s2 = sld [smem:[#allocation11 + %s3983_s17]]  ;;  %7225 = vst [vmem:[#allocation61_spill] sm:$0xff] %v7224_v43  ;;  %vm4178_vm10 = vmand %vm609_vm4, %vm4055_vm6 }
 0x118   : > { %s4005_s11 = sld [smem:[#allocation11 + %s3986_s3]] }
 0x119   : > { %7209 = sst [smem:[#allocation53_spill]] %s4008_s19 }
 0x11a   : > { %7211 = sst [smem:[#allocation55_spill]] %s4014_s23 }
 0x11b   : > { %7212 = sst [smem:[#allocation56_spill]] %s4020_s27 }
 0x11c   : > { %s4023_s13 = sld [smem:[#allocation11 + %s3999_s1]] }
 0x11d   : > { %7213 = sst [smem:[#allocation57_spill]] %s4026_s21 }
 0x11e   : > { %s4029_s24 = sld [smem:[#allocation11 + %s4008_s19]] }
 0x11f   : > { %s4033_s20 = sld [smem:[#allocation11 + %s4014_s23]] }
 0x120   : > { %s4037_s12 = sld [smem:[#allocation11 + %s4020_s27]] }
 0x121   : > { %7214 = sst [smem:[#allocation58_spill]] %s4040_s10 }
 0x122   : > { %s4046_s28 = sld [smem:[#allocation11 + %s4026_s21]] }
 0x123   : > { %7215 = sst [smem:[#allocation59_spill]] %s4049_s29 }
 0x124   : > { %s4075_s4 = sld [smem:[#allocation11 + %s4040_s10]] }
 0x125   : > { %v1384_v44 = vstv %s4033_s20  ;;  %s4134_s20 = sld [smem:[#allocation12 + %s3953_s0]] }
 0x126   : > { %v1444_v54 = vstv %s4037_s12  ;;  %s7235_s12 = smov 32  }
 0x128   : > { %v1450_v58 = vstv %s4046_s28 }
 0x17e   : > { %v1390_v12 = vpop.permute.xlu1 %1389 }
 0x17f   : > { %v1391_v15 = vsel %vm632_vm2, %v1390_v12, %v3752_v1  ;;  %v1494_v12 = vsel %vm609_vm4, %v3780_v9, 0.0 }
 0x181   : > { %v1326_v13 = vpop.permute.xlu0 %1325 }
 0x182   : > { %v1327_v14 = vsel %vm632_vm2, %v1326_v13, %v3771_v8  ;;  %v1393_v17 = vpop.permute.xlu1 %1392 }
 0x183   : > { %1331 = vrot.lane.b32.xlu0 %v1327_v14, %s6926_s18  ;;  %v1394_v19 = vsel %vm632_vm2, %v1393_v17, %v3757_v2  ;;  %v6945_v17 = vstv %s3971_s9 }
 0x185   : > { %v1329_v16 = vpop.permute.xlu0 %1328 }
 0x186   : > { %v1330_v18 = vsel %vm632_vm2, %v1329_v16, %v3784_v10  ;;  %v1463_v21 = vpop.permute.xlu1 %1462  ;;  %v1496_v16 = vstv %s3965_s25  ;;  %s4422_s25 = sld [smem:[#allocation8 + %s3962_s15]]  ;;  %s2094_s15 = sadd.s32 60, %s3953_s0 }
 0x187   : > { %1395 = vrot.lane.b32.xlu0 %v1391_v15, %s6926_s18  ;;  %1333 = vrot.lane.b32.xlu1 %v1330_v18, %s6926_s18  ;;  %v1464_v23 = vsel %vm632_vm2, %v1463_v21, %v3780_v9  ;;  %v1358_v18 = vstv %s4002_s2  ;;  %v4077_v21 = vmul.f32 %v1496_v16, %v1494_v12  ;;  %s4086_s2 = sld [smem:[#allocation11 + %s4049_s29]] }
 0x188   : > { %v1360_v38 = vmul.f32 %v1358_v18, %v3784_v10 }
 0x189   : > { %v1460_v20 = vpop.permute.xlu0 %1459 }
 0x18a   : > { %v1461_v22 = vsel %vm632_vm2, %v1460_v20, %v3792_v11  ;;  %v7220_v20 = vmov 0 }
 0x18b   : > { %1397 = vrot.lane.b32.xlu1 %v1394_v19, %s6926_s18  ;;  %1465 = vrot.lane.b32.xlu0 %v1461_v22, %s6926_s18  ;;  %v1364_v19 = vstv %s4005_s11  ;;  %v7221_v20 = vsel %vm4070_vm7, 4294967295, %v7220_v20  ;;  %s4106_s11 = sadd.s32 16, %s3953_s0 }
 0x18c   : > { %7222 = vst [vmem:[#allocation60_spill] sm:$0xff] %v7221_v20  ;;  %v1366_v39 = vmul.f32 %v1364_v19, %v3784_v10  ;;  %7226 = sst [smem:[#allocation62_spill]] %s4106_s11 }
 0x18d   : > { %7238 = sst [smem:[#allocation66_spill]] %s4422_s25 }
 0x18f   : > { %1467 = vrot.lane.b32.xlu1 %v1464_v23, %s6926_s18 }
 0x1f5   : > { %v1332_v24 = vpop.permute.xlu0 %1331 }
 0x1f6   : > { %v1335_v30 = vsel %vm632_vm2, %v1332_v24, %v3771_v8  ;;  %v1412_v24 = vstv %s3974_s14 }
 0x1f9   : > { %v1334_v25 = vpop.permute.xlu1 %1333  ;;  %v1396_v26 = vpop.permute.xlu0 %1395 }
 0x1fa   : > { %v1399_v27 = vsel %vm632_vm2, %v1396_v26, %v3752_v1  ;;  %v1336_v31 = vsel %vm632_vm2, %v1334_v25, %v3784_v10  ;;  %v1418_v25 = vstv %s3980_s16  ;;  %s4437_s16 = sld [smem:[#allocation8 + %s3999_s1]] }
 0x1fb   : > { %1403 = vrot.lane.b32.xlu0 %v1399_v27, %s6924_s7 }
 0x1fd   : > { %v1398_v28 = vpop.permute.xlu1 %1397  ;;  %v1466_v32 = vpop.permute.xlu0 %1465 }
 0x1fe   : > { %v1400_v29 = vsel %vm632_vm2, %v1398_v28, %v3757_v2  ;;  %v1469_v33 = vsel %vm632_vm2, %v1466_v32, %v3792_v11 }
 0x1ff   : > { %1405 = vrot.lane.b32.xlu1 %v1400_v29, %s6924_s7  ;;  %1339 = vrot.lane.b32.xlu0 %v1335_v30, %s6924_s7 }
 0x200   : > { %7241 = sst [smem:[#allocation69_spill]] %s4437_s16 }
 0x201   : > { %v1468_v34 = vpop.permute.xlu1 %1467 }
 0x202   : > { %v1470_v37 = vsel %vm632_vm2, %v1468_v34, %v3780_v9  ;;  %v1355_v9 = vsel %vm606_vm3, %v3771_v8, 0.0  ;;  %v4081_v8 = vmul.f32 %v6945_v17, %v1494_v12 }
 0x203   : > { %1341 = vrot.lane.b32.xlu1 %v1336_v31, %s6924_s7  ;;  %1369 = vrot.lane.b32.xlu0 %v1335_v30, %s6922_s30  ;;  %v1365_v32 = vmul.f32 %v1364_v19, %v1355_v9 }
 0x207   : > { %1371 = vrot.lane.b32.xlu1 %v1336_v31, %s6922_s30  ;;  %1435 = vrot.lane.b32.xlu0 %v1399_v27, %s6922_s30  ;;  %v1359_v31 = vmul.f32 %v1358_v18, %v1355_v9 }
 0x20b   : > { %1437 = vrot.lane.b32.xlu1 %v1400_v29, %s6922_s30  ;;  %1473 = vrot.lane.b32.xlu0 %v1469_v33, %s6924_s7  ;;  %v1430_v29 = vstv %s4023_s13  ;;  %s4145_s13 = sld [smem:[#allocation12 + %s3977_s6]] }
 0x20c   : > { %v1431_v50 = vmul.f32 %v1430_v29, %v3752_v1  ;;  %v1432_v62 = vmul.f32 %v1430_v29, %v3757_v2 }
 0x20f   : > { %1475 = vrot.lane.b32.xlu1 %v1470_v37, %s6924_s7  ;;  %1507 = vrot.lane.b32.xlu0 %v1469_v33, %s6922_s30  ;;  %s3992_s7 = sadd.s32 8, %s3953_s0  ;;  %v1378_v33 = vstv %s4029_s24  ;;  %s4125_s24 = sld [smem:[#allocation11 + %s4106_s11]] }
 0x210   : > { %7207 = sst [smem:[#allocation51_spill]] %s3992_s7 }
 0x211   : > { %s4017_s22 = sld [smem:[#allocation11 + %s3992_s7]] }
 0x212   : > { %s4433_s14 = sld [smem:[#allocation8 + %s3992_s7]] }
 0x213   : > { %1509 = vrot.lane.b32.xlu1 %v1470_v37, %s6922_s30  ;;  %633 = vrot.lane.b32.xlu0 %v3853_v42, %s6926_s18  ;;  %s3989_s30 = sld [smem:[#allocation11 + %s3953_s0]] }
 0x217   : > { %636 = vrot.lane.b32.xlu1 %v3868_v47, %s6926_s18  ;;  %669 = vrot.lane.b32.xlu0 %v3872_v48, %s6926_s18  ;;  %v1424_v28 = vstv %s4017_s22  ;;  %s4113_s22 = sadd.s32 17, %s3953_s0 }
 0x218   : > { %v1425_v49 = vmul.f32 %v1424_v28, %v3752_v1  ;;  %7227 = sst [smem:[#allocation63_spill]] %s4113_s22  ;;  %v1426_v61 = vmul.f32 %v1424_v28, %v3757_v2  ;;  %v1482_v28 = vstv %s4075_s4  ;;  %v1497_v2 = vmul.f32 %v1496_v16, %v3792_v11 }
 0x219   : > { %v1348_v22 = vstv %s3989_s30  ;;  %s4128_s28 = sld [smem:[#allocation11 + %s4113_s22]]  ;;  %s7237_s30 = smov 127  }
 0x21a   : > { %s4148_s4 = sld [smem:[#allocation20 + %s3953_s0]] }
 0x21b   : > { %709 = vrot.lane.b32.xlu0 %v3882_v51, %s6926_s18  ;;  %672 = vrot.lane.b32.xlu1 %v3886_v52, %s6926_s18  ;;  %7240 = sst [smem:[#allocation68_spill]] %s4433_s14 }
 0x21f   : > { %859 = vrot.lane.b32.xlu0 %v3832_v35, %s6926_s18  ;;  %712 = vrot.lane.b32.xlu1 %v3894_v53, %s6926_s18 }
 0x223   : > { %895 = vrot.lane.b32.xlu0 %v3844_v40, %s6926_s18  ;;  %862 = vrot.lane.b32.xlu1 %v3835_v36, %s6926_s18 }
 0x227   : > { %898 = vrot.lane.b32.xlu1 %v3847_v41, %s6926_s18  ;;  %931 = vrot.lane.b32.xlu0 %v3858_v45, %s6926_s18 }
 0x22b   : > { %1080 = vrot.lane.b32.xlu0 %v3912_v56, %s6926_s18  ;;  %934 = vrot.lane.b32.xlu1 %v3861_v46, %s6926_s18 }
 0x22f   : > { %1120 = vrot.lane.b32.xlu0 %v3922_v59, %s6926_s18  ;;  %1083 = vrot.lane.b32.xlu1 %v3926_v60, %s6926_s18 }
 0x233   : > { %1160 = vrot.lane.b32.xlu0 %v3936_v63, %s6926_s18  ;;  %1123 = vrot.lane.b32.xlu1 %v3940_v3, %s6926_s18 }
 0x237   : > { %1163 = vrot.lane.b32.xlu1 %v3948_v4, %s6926_s18  ;;  %s3995_s18 = sld [smem:[#allocation11 + %s3977_s6]] }
 0x23d   : > { %v1352_v23 = vstv %s3995_s18  ;;  %s7236_s18 = smov 97  }
 0x26d   : > { %v1404_v13 = vpop.permute.xlu0 %1403 }
 0x26e   : > { %v1409_v10 = vsel %vm4051_vm5, %v1404_v13, 0.0 }
 0x26f   : > { %v1419_v29 = vmul.f32 %v1418_v25, %v1409_v10 }
 0x271   : > { %v1406_v26 = vpop.permute.xlu1 %1405  ;;  %v1340_v27 = vpop.permute.xlu0 %1339 }
 0x272   : > { %v1345_v30 = vsel %vm4070_vm7, %v1340_v27, 0.0  ;;  %v1413_v27 = vmul.f32 %v1412_v24, %v1409_v10 }
 0x273   : > { %v1349_v34 = vmul.f32 %v1348_v22, %v1345_v30  ;;  %v1353_v37 = vmul.f32 %v1352_v23, %v1345_v30  ;;  %v1488_v30 = vstv %s4086_s2  ;;  %s2064_s2 = sadd.s32 56, %s3953_s0 }
 0x275   : > { %v1342_v55 = vpop.permute.xlu1 %1341  ;;  %v1370_v57 = vpop.permute.xlu0 %1369  ;;  %v1361_v6 = vadd.f32 %v1359_v31, %v1349_v34  ;;  %v1367_v0 = vadd.f32 %v1365_v32, %v1353_v37  ;;  %v1410_v31 = vsel %vm4051_vm5, %v1406_v26, 0.0 }
 0x276   : > { %v1346_v1 = vsel %vm4051_vm5, %v1342_v55, 0.0  ;;  %v1375_v12 = vsel %vm4101_vm8, %v1370_v57, 0.0  ;;  %v1414_v26 = vmul.f32 %v1412_v24, %v1410_v31 }
 0x277   : > { %v1350_v13 = vmul.f32 %v1348_v22, %v1346_v1  ;;  %v1354_v9 = vmul.f32 %v1352_v23, %v1346_v1  ;;  %v1379_v18 = vmul.f32 %v1378_v33, %v1375_v12  ;;  %v1385_v19 = vmul.f32 %v1384_v44, %v1375_v12 }
 0x279   : > { %v1381_v32 = vadd.f32 %v1379_v18, %v1361_v6  ;;  %v1387_v22 = vadd.f32 %v1385_v19, %v1367_v0  ;;  %v1372_v23 = vpop.permute.xlu1 %1371  ;;  %v1436_v34 = vpop.permute.xlu0 %1435  ;;  %v1362_v37 = vadd.f32 %v1360_v38, %v1350_v13  ;;  %v1368_v55 = vadd.f32 %v1366_v39, %v1354_v9 }
 0x27a   : > { %v1376_v57 = vsel %vm4055_vm6, %v1372_v23, 0.0  ;;  %v1441_v16 = vsel %vm4055_vm6, %v1436_v34, 0.0  ;;  %v1420_v6 = vmul.f32 %v1418_v25, %v1410_v31  ;;  %v1522_v34 = vstv %s4128_s28  ;;  %s2071_s28 = sadd.s32 57, %s3953_s0 }
 0x27b   : > { %v1415_v1 = vadd.f32 %v1413_v27, %v1381_v32  ;;  %v1421_v10 = vadd.f32 %v1419_v29, %v1387_v22  ;;  %v1380_v12 = vmul.f32 %v1378_v33, %v1376_v57  ;;  %v1386_v17 = vmul.f32 %v1384_v44, %v1376_v57 }
 0x27c   : > { %v1445_v0 = vmul.f32 %v1444_v54, %v1441_v16  ;;  %v1451_v18 = vmul.f32 %v1450_v58, %v1441_v16  ;;  %v7228_v33 = vstv %s3971_s9  ;;  %v1516_v29 = vstv %s4125_s24  ;;  %s4427_s9 = sld [smem:[#allocation8 + %s3968_s8]] }
 0x27d   : > { %v1382_v38 = vadd.f32 %v1380_v12, %v1362_v37  ;;  %v1388_v39 = vadd.f32 %v1386_v17, %v1368_v55  ;;  %v1427_v13 = vadd.f32 %v1425_v49, %v1415_v1  ;;  %v1433_v9 = vadd.f32 %v1431_v50, %v1421_v10  ;;  %v1438_v19 = vpop.permute.xlu1 %1437  ;;  %v1474_v27 = vpop.permute.xlu0 %1473  ;;  %s4443_s24 = sld [smem:[#allocation8 + %s4020_s27]] }
 0x27e   : > { %v1442_v24 = vsel %vm4055_vm6, %v1438_v19, 0.0  ;;  %v1479_v25 = vsel %vm4051_vm5, %v1474_v27, 0.0  ;;  %v1503_v44 = vmul.f32 %v7228_v33, %v3792_v11  ;;  %v7229_v32 = vmov 0  ;;  %s4461_s8 = sld [smem:[#allocation14 + %s2071_s28]] }
 0x27f   : > { %v1416_v17 = vadd.f32 %v1414_v26, %v1382_v38  ;;  %v1422_v49 = vadd.f32 %v1420_v6, %v1388_v39  ;;  %v1447_v31 = vadd.f32 %v1445_v0, %v1427_v13  ;;  %v1453_v50 = vadd.f32 %v1451_v18, %v1433_v9  ;;  %s4477_s28 = sld [smem:[#allocation14 + %s2094_s15]] }
 0x280   : > { %v7230_v32 = vsel %vm4162_vm9, 4294967295, %v7229_v32  ;;  %v1483_v22 = vmul.f32 %v1482_v28, %v1479_v25  ;;  %v1489_v23 = vmul.f32 %v1488_v30, %v1479_v25  ;;  %v1528_v37 = vstv %s4134_s20  ;;  %s4451_s20 = sld [smem:[#allocation8 + %s4026_s21]] }
 0x281   : > { %7231 = vst [vmem:[#allocation64_spill] sm:$0xff] %v7230_v32  ;;  %v1428_v55 = vadd.f32 %v1426_v61, %v1416_v17  ;;  %v1434_v57 = vadd.f32 %v1432_v62, %v1422_v49  ;;  %v1446_v11 = vmul.f32 %v1444_v54, %v1442_v24  ;;  %v1452_v16 = vmul.f32 %v1450_v58, %v1442_v24  ;;  %v1476_v1 = vpop.permute.xlu1 %1475  ;;  %v1508_v10 = vpop.permute.xlu0 %1507  ;;  %s4494_s15 = sld [smem:[#allocation14 + %s3992_s7]]  ;;  %s4533_s7 = sadd.s32 33, %s3953_s0 }
 0x282   : > { %v1485_v12 = vadd.f32 %v1483_v22, %v1447_v31  ;;  %v1491_v26 = vadd.f32 %v1489_v23, %v1453_v50  ;;  %v1480_v6 = vsel %vm4162_vm9, %v1476_v1, 0.0  ;;  %v1513_v0 = vsel %vm4055_vm6, %v1508_v10, 0.0  ;;  %7239 = sst [smem:[#allocation67_spill]] %s4427_s9 }
 0x283   : > { %v1448_v18 = vadd.f32 %v1446_v11, %v1428_v55  ;;  %v1454_v38 = vadd.f32 %v1452_v16, %v1434_v57  ;;  %v1484_v39 = vmul.f32 %v1482_v28, %v1480_v6  ;;  %v1490_v61 = vmul.f32 %v1488_v30, %v1480_v6  ;;  %7242 = sst [smem:[#allocation70_spill]] %s4443_s24 }
 0x284   : > { %v7232_v54 = vmov 0  ;;  %v1499_v58 = vadd.f32 %v1497_v2, %v1485_v12  ;;  %v1505_v62 = vadd.f32 %v1503_v44, %v1491_v26  ;;  %v1517_v13 = vmul.f32 %v1516_v29, %v1513_v0  ;;  %7245 = sst [smem:[#allocation73_spill]] %s4461_s8  ;;  %s2115_s8 = sadd.s32 63, %s3953_s0 }
 0x285   : > { %v7233_v54 = vsel %vm4178_vm10, 4294967295, %v7232_v54  ;;  %v1523_v9 = vmul.f32 %v1522_v34, %v1513_v0  ;;  %v1486_v19 = vadd.f32 %v1484_v39, %v1448_v18  ;;  %v1492_v27 = vadd.f32 %v1490_v61, %v1454_v38  ;;  %v1510_v33 = vpop.permute.xlu1 %1509  ;;  %v634_v17 = vpop.permute.xlu0 %633  ;;  %7256 = sst [smem:[#allocation84_spill]] %s4533_s7 }
 0x286   : > { %7234 = vst [vmem:[#allocation65_spill] sm:$0xff] %v7233_v54  ;;  %v1532_v24 = vstv %s4145_s13  ;;  %v1537_v25 = vstv %s4148_s4  ;;  %v1519_v28 = vadd.f32 %v1517_v13, %v1499_v58  ;;  %v1514_v49 = vsel %vm4178_vm10, %v1510_v33, 0.0  ;;  %7243 = sst [smem:[#allocation71_spill]] %s4451_s20  ;;  %s2078_s13 = sadd.s32 58, %s3953_s0 }
 0x287   : > { %v1525_v30 = vadd.f32 %v1523_v9, %v1505_v62  ;;  %v635_v31 = vsel %vm632_vm2, %v634_v17, %v3853_v42  ;;  %v1500_v50 = vadd.f32 %v4077_v21, %v1486_v19  ;;  %v1506_v2 = vadd.f32 %v4081_v8, %v1492_v27  ;;  %s4457_s4 = sld [smem:[#allocation14 + %s2064_s2]]  ;;  %s2101_s20 = sadd.s32 61, %s3953_s0 }
 0x288   : > { %v1518_v44 = vmul.f32 %v1516_v29, %v1514_v49  ;;  %v1524_v22 = vmul.f32 %v1522_v34, %v1514_v49  ;;  %639 = vrot.lane.b32.xlu0 %v635_v31, %s7235_s12  ;;  %v1529_v23 = vadd.f32 %v1528_v37, %v1519_v28  ;;  %s4466_s24 = sld [smem:[#allocation14 + %s2078_s13]] }
 0x289   : > { %v1533_v55 = vadd.f32 %v1532_v24, %v1525_v30  ;;  %v637_v16 = vpop.permute.xlu1 %636  ;;  %v670_v39 = vpop.permute.xlu0 %669  ;;  %s4481_s13 = sld [smem:[#allocation14 + %s2101_s20]] }
 0x28a   : > { %v1520_v57 = vadd.f32 %v1518_v44, %v1500_v50  ;;  %v1526_v11 = vadd.f32 %v1524_v22, %v1506_v2  ;;  %vm1535_vm11 = vcmp.ge.f32.partialorder %v1529_v23, 0.0  ;;  %v1538_v1 = vmul.f32 %v1537_v25, %v1529_v23  ;;  %7248 = sst [smem:[#allocation76_spill]] %s4494_s15  ;;  %s6977_s15 = sadd.s32 39, %s3953_s0 }
 0x28b   : > { %v638_v26 = vsel %vm632_vm2, %v637_v16, %v3868_v47  ;;  %v1544_v21 = vmul.f32 %v1537_v25, %v1533_v55  ;;  %vm1542_vm12 = vcmp.ge.f32.partialorder %v1533_v55, 0.0  ;;  %s4497_s20 = sld [smem:[#allocation14 + %s3999_s1]]  ;;  %s4522_s1 = sadd.s32 32, %s3953_s0 }
 0x28c   : > { %v1530_v10 = vadd.f32 %v1528_v37, %v1520_v57  ;;  %v1534_v12 = vadd.f32 %v1532_v24, %v1526_v11  ;;  %v4193_v6 = vsel %vm1535_vm11, %v1529_v23, %v1538_v1  ;;  %641 = vrot.lane.b32.xlu1 %v638_v26, %s7235_s12  ;;  %v671_v24 = vsel %vm632_vm2, %v670_v39, %v3872_v48  ;;  %7254 = sst [smem:[#allocation82_spill]] %s4522_s1 }
 0x28d   : > { %1756 = vrot.lane.b32.xlu0 %v4193_v6, %s7235_s12  ;;  %v4200_v37 = vsel %vm1542_vm12, %v1533_v55, %v1544_v21  ;;  %v1548_v0 = vrot.slane %v4193_v6, 7  ;;  %v673_v62 = vpop.permute.xlu1 %672  ;;  %v710_v19 = vpop.permute.xlu0 %709  ;;  %v1960_v11 = vrot.slane %v4193_v6, 1  ;;  %7244 = sst [smem:[#allocation72_spill]] %s4457_s4  ;;  %s2108_s4 = sadd.s32 62, %s3953_s0 }
 0x28e   : > { %vm1536_vm13 = vcmp.ge.f32.partialorder %v1530_v10, 0.0  ;;  %v1539_v8 = vmul.f32 %v1537_v25, %v1530_v10  ;;  %v1545_v29 = vmul.f32 %v1537_v25, %v1534_v12  ;;  %vm1543_vm14 = vcmp.ge.f32.partialorder %v1534_v12, 0.0  ;;  %7246 = sst [smem:[#allocation74_spill]] %s4466_s24 }
 0x28f   : > { %v1590_v13 = vrot.slane %v4200_v37, 7  ;;  %v674_v17 = vsel %vm632_vm2, %v673_v62, %v3886_v52  ;;  %v711_v30 = vsel %vm632_vm2, %v710_v19, %v3882_v51  ;;  %v2010_v26 = vrot.slane %v4200_v37, 1  ;;  %7247 = sst [smem:[#allocation75_spill]] %s4481_s13 }
 0x290   : > { %v4198_v34 = vsel %vm1536_vm13, %v1530_v10, %v1539_v8  ;;  %v4206_v38 = vsel %vm1543_vm14, %v1534_v12, %v1545_v29  ;;  %s4485_s24 = sld [smem:[#allocation14 + %s2108_s4]] }
 0x291   : > { %1759 = vrot.lane.b32.xlu1 %v4198_v34, %s7235_s12  ;;  %v1549_v18 = vrot.slane %v4198_v34, 7  ;;  %1802 = vrot.lane.b32.xlu0 %v4200_v37, %s7235_s12  ;;  %v1591_v58 = vrot.slane %v4206_v38, 7  ;;  %v713_v25 = vpop.permute.xlu1 %712  ;;  %v860_v28 = vpop.permute.xlu0 %859  ;;  %v1961_v55 = vrot.slane %v4198_v34, 1  ;;  %v2011_v10 = vrot.slane %v4206_v38, 1  ;;  %7249 = sst [smem:[#allocation77_spill]] %s4497_s20  ;;  %s6974_s20 = sadd.s32 38, %s3953_s0 }
 0x292   : > { %v714_v31 = vsel %vm632_vm2, %v713_v25, %v3894_v53  ;;  %v861_v50 = vsel %vm632_vm2, %v860_v28, %v3832_v35  ;;  %s4500_s13 = sld [smem:[#allocation14 + %s4020_s27]] }
 0x293   : > { %v4212_v61 = vsel %vm629_vm0, %v1549_v18, %v1548_v0  ;;  %v4222_v9 = vsel %vm629_vm0, %v1548_v0, %v1549_v18  ;;  %v4226_v27 = vsel %vm629_vm0, %v1591_v58, %v1590_v13  ;;  %v4236_v33 = vsel %vm629_vm0, %v1590_v13, %v1591_v58  ;;  %s4516_s4 = sld [smem:[#allocation14 + %s4040_s10]] }
 0x294   : > { %v4265_v1 = vsel %vm1077_vm1, %v1960_v11, %v1961_v55  ;;  %v4274_v21 = vsel %vm1077_vm1, %v1961_v55, %v1960_v11  ;;  %v4278_v8 = vsel %vm1077_vm1, %v2010_v26, %v2011_v10  ;;  %v4288_v39 = vsel %vm1077_vm1, %v2011_v10, %v2010_v26  ;;  %s4519_s27 = sld [smem:[#allocation14 + %s4049_s29]] }
 0x295   : > { %1805 = vrot.lane.b32.xlu1 %v4206_v38, %s7235_s12  ;;  %1552 = vrot.lane.b32.xlu0 %v4212_v61, %s7235_s12  ;;  %v863_v49 = vpop.permute.xlu1 %862  ;;  %v896_v2 = vpop.permute.xlu0 %895 }
 0x296   : > { %v864_v44 = vsel %vm632_vm2, %v863_v49, %v3835_v36  ;;  %v897_v22 = vsel %vm632_vm2, %v896_v2, %v3844_v40 }
 0x298   : > { %7250 = sst [smem:[#allocation78_spill]] %s4500_s13 }
 0x299   : > { %1555 = vrot.lane.b32.xlu1 %v4222_v9, %s7235_s12  ;;  %1594 = vrot.lane.b32.xlu0 %v4226_v27, %s7235_s12  ;;  %v899_v23 = vpop.permute.xlu1 %898  ;;  %v932_v16 = vpop.permute.xlu0 %931  ;;  %7252 = sst [smem:[#allocation80_spill]] %s4516_s4  ;;  %s4546_s4 = sadd.s32 34, %s3953_s0 }
 0x29a   : > { %v900_v57 = vsel %vm632_vm2, %v899_v23, %v3847_v41  ;;  %v933_v0 = vsel %vm632_vm2, %v932_v16, %v3858_v45  ;;  %7253 = sst [smem:[#allocation81_spill]] %s4519_s27 }
 0x29b   : > { %s4543_s27 = sld [smem:[#allocation14 + %s3959_s5]] }
 0x29c   : > { %7258 = sst [smem:[#allocation86_spill]] %s4546_s4 }
 0x29d   : > { %1597 = vrot.lane.b32.xlu1 %v4236_v33, %s7235_s12  ;;  %675 = vrot.lane.b32.xlu0 %v671_v24, %s7235_s12  ;;  %v935_v12 = vpop.permute.xlu1 %934  ;;  %v1081_v29 = vpop.permute.xlu0 %1080  ;;  %s4557_s13 = sld [smem:[#allocation14 + %s4533_s7]] }
 0x29e   : > { %v936_v58 = vsel %vm632_vm2, %v935_v12, %v3861_v46  ;;  %v1082_v62 = vsel %vm632_vm2, %v1081_v29, %v3912_v56 }
 0x2a1   : > { %677 = vrot.lane.b32.xlu1 %v674_v17, %s7235_s12  ;;  %715 = vrot.lane.b32.xlu0 %v711_v30, %s7235_s12  ;;  %v1084_v18 = vpop.permute.xlu1 %1083  ;;  %v1121_v13 = vpop.permute.xlu0 %1120  ;;  %7257 = sst [smem:[#allocation85_spill]] %s4543_s27 }
 0x2a2   : > { %v1085_v24 = vsel %vm632_vm2, %v1084_v18, %v3926_v60  ;;  %v1122_v25 = vsel %vm632_vm2, %v1121_v13, %v3922_v59  ;;  %s4566_s27 = sld [smem:[#allocation14 + %s4546_s4]]  ;;  %s7262_s4 = sadd.s32 36, %s3953_s0 }
 0x2a3   : > { %7260 = sst [smem:[#allocation88_spill]] %s4557_s13 }
 0x2a5   : > { %717 = vrot.lane.b32.xlu1 %v714_v31, %s7235_s12  ;;  %865 = vrot.lane.b32.xlu0 %v861_v50, %s7235_s12  ;;  %v1124_v19 = vpop.permute.xlu1 %1123  ;;  %v1161_v17 = vpop.permute.xlu0 %1160 }
 0x2a6   : > { %v1125_v28 = vsel %vm632_vm2, %v1124_v19, %v3940_v3  ;;  %v1162_v49 = vsel %vm632_vm2, %v1161_v17, %v3936_v63 }
 0x2a8   : > { %7261 = sst [smem:[#allocation89_spill]] %s4566_s27  ;;  %s7263_s27 = sadd.s32 37, %s3953_s0 }
 0x2a9   : > { %867 = vrot.lane.b32.xlu1 %v864_v44, %s7235_s12  ;;  %901 = vrot.lane.b32.xlu0 %v897_v22, %s7235_s12  ;;  %v1164_v30 = vpop.permute.xlu1 %1163  ;;  %s4585_s13 = sld [smem:[#allocation14 + %s7263_s27]] }
 0x2aa   : > { %v1165_v31 = vsel %vm632_vm2, %v1164_v30, %v3948_v4  ;;  %s4601_s27 = sld [smem:[#allocation8 + %s3953_s0]] }
 0x2ad   : > { %903 = vrot.lane.b32.xlu1 %v900_v57, %s7235_s12  ;;  %1964 = vrot.lane.b32.xlu0 %v4265_v1, %s7235_s12 }
 0x2af   : > { %7264 = sst [smem:[#allocation90_spill]] %s4585_s13 }
 0x2b0   : > { %7266 = sst [smem:[#allocation92_spill]] %s4601_s27 }
 0x2b1   : > { %1967 = vrot.lane.b32.xlu1 %v4274_v21, %s7235_s12  ;;  %2014 = vrot.lane.b32.xlu0 %v4278_v8, %s7235_s12  ;;  %s4613_s13 = sld [smem:[#allocation8 + %s3986_s3]] }
 0x2b2   : > { %s4621_s27 = sld [smem:[#allocation8 + %s4014_s23]] }
 0x2b3   : > { %s4641_s23 = sld [smem:[#allocation8 + %s4106_s11]] }
 0x2b5   : > { %2017 = vrot.lane.b32.xlu1 %v4288_v39, %s7235_s12  ;;  %937 = vrot.lane.b32.xlu0 %v933_v0, %s7235_s12 }
 0x2b7   : > { %7269 = sst [smem:[#allocation95_spill]] %s4613_s13 }
 0x2b8   : > { %7271 = sst [smem:[#allocation97_spill]] %s4621_s27  ;;  %s4644_s27 = sadd.s32 19, %s3953_s0 }
 0x2b9   : > { %939 = vrot.lane.b32.xlu1 %v936_v58, %s7235_s12  ;;  %1086 = vrot.lane.b32.xlu0 %v1082_v62, %s7235_s12  ;;  %s4635_s13 = sld [smem:[#allocation8 + %s3959_s5]] }
 0x2ba   : > { %7277 = sst [smem:[#allocation103_spill]] %s4641_s23  ;;  %s4662_s23 = sadd.s32 25, %s3953_s0 }
 0x2bb   : > { %7278 = sst [smem:[#allocation104_spill]] %s4644_s27 }
 0x2bc   : > { %s4656_s5 = sld [smem:[#allocation8 + %s4644_s27]]  ;;  %s4695_s27 = sadd.s32 29, %s3953_s0 }
 0x2bd   : > { %1088 = vrot.lane.b32.xlu1 %v1085_v24, %s7235_s12  ;;  %1126 = vrot.lane.b32.xlu0 %v1122_v25, %s7235_s12  ;;  %7283 = sst [smem:[#allocation109_spill]] %s4662_s23 }
 0x2be   : > { %7292 = sst [smem:[#allocation118_spill]] %s4695_s27 }
 0x2bf   : > { %7275 = sst [smem:[#allocation101_spill]] %s4635_s13  ;;  %s4665_s13 = sadd.s32 26, %s3953_s0 }
 0x2c0   : > { %7284 = sst [smem:[#allocation110_spill]] %s4665_s13 }
 0x2c1   : > { %1128 = vrot.lane.b32.xlu1 %v1125_v28, %s7235_s12  ;;  %1166 = vrot.lane.b32.xlu0 %v1162_v49, %s7235_s12 }
 0x2c2   : > { %7281 = sst [smem:[#allocation107_spill]] %s4656_s5 }
 0x2c5   : > { %1168 = vrot.lane.b32.xlu1 %v1165_v31, %s7235_s12 }
 0x2fa   : > { %v640_v50 = vpop.permute.xlu0 %639 }
 0x2fb   : > { %v643_v24 = vsel %vm632_vm2, %v640_v50, %v3853_v42 }
 0x2fe   : > { %v642_v2 = vpop.permute.xlu1 %641 }
 0x2ff   : > { %v1757_v44 = vpop.permute.xlu0 %1756  ;;  %v644_v30 = vsel %vm632_vm2, %v642_v2, %v3868_v47 }
 0x300   : > { %v1758_v22 = vsel %vm632_vm2, %v1757_v44, %v4193_v6 }
 0x301   : > { %1762 = vrot.lane.b32.xlu0 %v1758_v22, %s7235_s12 }
 0x303   : > { %v1760_v23 = vpop.permute.xlu1 %1759  ;;  %v1803_v55 = vpop.permute.xlu0 %1802 }
 0x304   : > { %v1761_v57 = vsel %vm632_vm2, %v1760_v23, %v4198_v34  ;;  %v1804_v11 = vsel %vm632_vm2, %v1803_v55, %v4200_v37 }
 0x305   : > { %1764 = vrot.lane.b32.xlu1 %v1761_v57, %s7235_s12  ;;  %1808 = vrot.lane.b32.xlu0 %v1804_v11, %s7235_s12 }
 0x307   : > { %v1806_v16 = vpop.permute.xlu1 %1805  ;;  %v1553_v10 = vpop.permute.xlu0 %1552 }
 0x308   : > { %v1807_v12 = vsel %vm632_vm2, %v1806_v16, %v4206_v38  ;;  %v1554_v26 = vsel %vm632_vm2, %v1553_v10, %v4212_v61 }
 0x309   : > { %1810 = vrot.lane.b32.xlu1 %v1807_v12, %s7235_s12  ;;  %1558 = vrot.lane.b32.xlu0 %v1554_v26, %s7235_s12 }
 0x30b   : > { %v1556_v29 = vpop.permute.xlu1 %1555  ;;  %v1595_v0 = vpop.permute.xlu0 %1594 }
 0x30c   : > { %v1557_v18 = vsel %vm632_vm2, %v1556_v29, %v4222_v9  ;;  %v1596_v58 = vsel %vm632_vm2, %v1595_v0, %v4226_v27 }
 0x30d   : > { %1560 = vrot.lane.b32.xlu1 %v1557_v18, %s7235_s12  ;;  %1600 = vrot.lane.b32.xlu0 %v1596_v58, %s7235_s12 }
 0x30f   : > { %v1598_v62 = vpop.permute.xlu1 %1597  ;;  %v676_v13 = vpop.permute.xlu0 %675 }
 0x310   : > { %v1599_v19 = vsel %vm632_vm2, %v1598_v62, %v4236_v33  ;;  %v679_v17 = vsel %vm632_vm2, %v676_v13, %v3872_v48 }
 0x311   : > { %1602 = vrot.lane.b32.xlu1 %v1599_v19, %s7235_s12  ;;  %647 = vrot.lane.b32.xlu0 %v643_v24, %s7236_s18 }
 0x313   : > { %v678_v25 = vpop.permute.xlu1 %677  ;;  %v716_v28 = vpop.permute.xlu0 %715 }
 0x314   : > { %v680_v49 = vsel %vm632_vm2, %v678_v25, %v3886_v52  ;;  %v719_v50 = vsel %vm632_vm2, %v716_v28, %v3882_v51 }
 0x315   : > { %649 = vrot.lane.b32.xlu1 %v644_v30, %s7236_s18  ;;  %683 = vrot.lane.b32.xlu0 %v679_v17, %s7236_s18 }
 0x317   : > { %v718_v31 = vpop.permute.xlu1 %717  ;;  %v866_v44 = vpop.permute.xlu0 %865 }
 0x318   : > { %v720_v22 = vsel %vm632_vm2, %v718_v31, %v3894_v53  ;;  %v4379_v18 = vsel %vm632_vm2, %v866_v44, %v3832_v35 }
 0x319   : > { %685 = vrot.lane.b32.xlu1 %v680_v49, %s7236_s18  ;;  %723 = vrot.lane.b32.xlu0 %v719_v50, %s7236_s18 }
 0x31b   : > { %v868_v2 = vpop.permute.xlu1 %867  ;;  %v4355_v23 = vpop.permute.xlu0 %901 }
 0x31c   : > { %v4386_v58 = vsel %vm632_vm2, %v868_v2, %v3835_v36 }
 0x31d   : > { %725 = vrot.lane.b32.xlu1 %v720_v22, %s7236_s18  ;;  %793 = vrot.lane.b32.xlu0 %v643_v24, %s7237_s30 }
 0x31f   : > { %v4359_v55 = vpop.permute.xlu1 %903  ;;  %v1965_v57 = vpop.permute.xlu0 %1964 }
 0x320   : > { %v1966_v11 = vsel %vm632_vm2, %v1965_v57, %v4265_v1 }
 0x321   : > { %795 = vrot.lane.b32.xlu1 %v644_v30, %s7237_s30  ;;  %1970 = vrot.lane.b32.xlu0 %v1966_v11, %s7235_s12 }
 0x323   : > { %v1968_v16 = vpop.permute.xlu1 %1967  ;;  %v2015_v10 = vpop.permute.xlu0 %2014 }
 0x324   : > { %v1969_v12 = vsel %vm632_vm2, %v1968_v16, %v4274_v21  ;;  %v2016_v26 = vsel %vm632_vm2, %v2015_v10, %v4278_v8 }
 0x325   : > { %1972 = vrot.lane.b32.xlu1 %v1969_v12, %s7235_s12  ;;  %2020 = vrot.lane.b32.xlu0 %v2016_v26, %s7235_s12 }
 0x327   : > { %v2018_v29 = vpop.permute.xlu1 %2017  ;;  %v4390_v62 = vpop.permute.xlu0 %937 }
 0x328   : > { %v2019_v0 = vsel %vm632_vm2, %v2018_v29, %v4288_v39 }
 0x329   : > { %2022 = vrot.lane.b32.xlu1 %v2019_v0, %s7235_s12  ;;  %815 = vrot.lane.b32.xlu0 %v679_v17, %s7237_s30  ;;  %s2085_s12 = sadd.s32 59, %s3953_s0 }
 0x32a   : > { %s4473_s2 = sld [smem:[#allocation14 + %s2085_s12]] }
 0x32b   : > { %v4392_v13 = vpop.permute.xlu1 %939  ;;  %v4394_v19 = vpop.permute.xlu0 %1086  ;;  %s4487_s12 = sld [smem:[#allocation14 + %s2115_s8]] }
 0x32c   : > { %s4511_s8 = sld [smem:[#allocation14 + %s4026_s21]] }
 0x32d   : > { %817 = vrot.lane.b32.xlu1 %v680_v49, %s7237_s30  ;;  %837 = vrot.lane.b32.xlu0 %v719_v50, %s7237_s30  ;;  %s4530_s21 = sld [smem:[#allocation14 + %s3956_s26]] }
 0x32f   : > { %v4396_v35 = vpop.permute.xlu1 %1088  ;;  %v4398_v24 = vpop.permute.xlu0 %1126 }
 0x331   : > { %839 = vrot.lane.b32.xlu1 %v720_v22, %s7237_s30  ;;  %873 = vrot.lane.b32.xlu0 %v4379_v18, %s7236_s18 }
 0x332   : > { %7251 = sst [smem:[#allocation79_spill]] %s4511_s8  ;;  %s4554_s8 = sadd.s32 35, %s3953_s0 }
 0x333   : > { %v4400_v25 = vpop.permute.xlu1 %1128  ;;  %v4402_v17 = vpop.permute.xlu0 %1166  ;;  %7255 = sst [smem:[#allocation83_spill]] %s4530_s21 }
 0x334   : > { %s4551_s21 = sld [smem:[#allocation14 + %s4522_s1]] }
 0x335   : > { %875 = vrot.lane.b32.xlu1 %v4386_v58, %s7236_s18  ;;  %7259 = sst [smem:[#allocation87_spill]] %s4554_s8 }
 0x336   : > { %s4574_s7 = sld [smem:[#allocation14 + %s4554_s8]] }
 0x337   : > { %v4404_v28 = vpop.permute.xlu1 %1168  ;;  %s4580_s1 = sld [smem:[#allocation14 + %s7262_s4]] }
 0x338   : > { %s4591_s8 = sld [smem:[#allocation14 + %s6974_s20]] }
 0x339   : > { %s4598_s4 = sld [smem:[#allocation14 + %s6977_s15]] }
 0x33a   : > { %s4605_s20 = sld [smem:[#allocation8 + %s3977_s6]] }
 0x33b   : > { %s4617_s15 = sld [smem:[#allocation8 + %s4008_s19]] }
 0x33e   : > { %7265 = sst [smem:[#allocation91_spill]] %s4591_s8 }
 0x33f   : > { %s4608_s8 = sld [smem:[#allocation8 + %s3983_s17]] }
 0x340   : > { %7267 = sst [smem:[#allocation93_spill]] %s4605_s20 }
 0x341   : > { %7270 = sst [smem:[#allocation96_spill]] %s4617_s15  ;;  %s4638_s15 = sadd.s32 18, %s3953_s0 }
 0x342   : > { %s4624_s20 = sld [smem:[#allocation8 + %s4040_s10]]  ;;  %s4659_s10 = sadd.s32 24, %s3953_s0 }
 0x343   : > { %s4631_s17 = sld [smem:[#allocation8 + %s3956_s26]] }
 0x344   : > { %7276 = sst [smem:[#allocation102_spill]] %s4638_s15 }
 0x345   : > { %7268 = sst [smem:[#allocation94_spill]] %s4608_s8 }
 0x346   : > { %s4627_s8 = sld [smem:[#allocation8 + %s4049_s29]] }
 0x347   : > { %s4647_s29 = sld [smem:[#allocation8 + %s4113_s22]] }
 0x348   : > { %7272 = sst [smem:[#allocation98_spill]] %s4624_s20  ;;  %s4687_s20 = sadd.s32 28, %s3953_s0 }
 0x349   : > { %7274 = sst [smem:[#allocation100_spill]] %s4631_s17 }
 0x34a   : > { %s4651_s26 = sld [smem:[#allocation8 + %s4638_s15]] }
 0x34b   : > { %7282 = sst [smem:[#allocation108_spill]] %s4659_s10 }
 0x34c   : > { %7273 = sst [smem:[#allocation99_spill]] %s4627_s8 }
 0x34d   : > { %7279 = sst [smem:[#allocation105_spill]] %s4647_s29  ;;  %s4673_s29 = sadd.s32 27, %s3953_s0 }
 0x34e   : > { %7286 = sst [smem:[#allocation112_spill]] %s4673_s29 }
 0x34f   : > { %s4678_s5 = sld [smem:[#allocation8 + %s4673_s29]] }
 0x350   : > { %7280 = sst [smem:[#allocation106_spill]] %s4651_s26 }
 0x351   : > { %s4670_s26 = sld [smem:[#allocation8 + %s4665_s13]] }
 0x352   : > { %s4681_s17 = sld [smem:[#allocation14 + %s4659_s10]] }
 0x353   : > { %s4684_s8 = sld [smem:[#allocation14 + %s4662_s23]] }
 0x354   : > { %7290 = sst [smem:[#allocation116_spill]] %s4687_s20 }
 0x355   : > { %7287 = sst [smem:[#allocation113_spill]] %s4678_s5 }
 0x356   : > { %s4700_s5 = sld [smem:[#allocation14 + %s4673_s29]] }
 0x357   : > { %7285 = sst [smem:[#allocation111_spill]] %s4670_s26 }
 0x358   : > { %7288 = sst [smem:[#allocation114_spill]] %s4681_s17  ;;  %s4706_s17 = sadd.s32 31, %s3953_s0 }
 0x359   : > { %7289 = sst [smem:[#allocation115_spill]] %s4684_s8  ;;  %s4703_s8 = sadd.s32 30, %s3953_s0 }
 0x35a   : > { %s4692_s26 = sld [smem:[#allocation14 + %s4665_s13]] }
 0x35b   : > { %7294 = sst [smem:[#allocation120_spill]] %s4703_s8 }
 0x35c   : > { %7293 = sst [smem:[#allocation119_spill]] %s4700_s5 }
 0x35d   : > { %7295 = sst [smem:[#allocation121_spill]] %s4706_s17 }
 0x35e   : > { %s4709_s23 = sld [smem:[#allocation14 + %s4687_s20]]  ;;  %s7019_s20 = sadd.s32 40, %s3953_s0 }
 0x35f   : > { %s4712_s10 = sld [smem:[#allocation14 + %s4695_s27]] }
 0x360   : > { %7291 = sst [smem:[#allocation117_spill]] %s4692_s26 }
 0x361   : > { %s4720_s29 = sld [smem:[#allocation14 + %s4703_s8]]  ;;  %s1205_s8 = sadd.s32 43, %s3953_s0 }
 0x362   : > { %s4724_s13 = sld [smem:[#allocation14 + %s4706_s17]] }
 0x363   : > { %s7301_s5 = sld [smem:[#allocation71_spill]] }
 0x364   : > { %7296 = sst [smem:[#allocation122_spill]] %s4709_s23 }
 0x365   : > { %7297 = sst [smem:[#allocation123_spill]] %s4712_s10  ;;  %s1198_s10 = sadd.s32 42, %s3953_s0 }
 0x366   : > { %s7300_s23 = sld [smem:[#allocation70_spill]] }
 0x367   : > { %7298 = sst [smem:[#allocation124_spill]] %s4720_s29 }
 0x368   : > { %7299 = sst [smem:[#allocation125_spill]] %s4724_s13 }
 0x369   : > { %s4734_s26 = sld [smem:[#allocation8 + %s1198_s10]] }
 0x36a   : > { %s4747_s27 = sld [smem:[#allocation8 + %s1205_s8]] }
 0x36b   : > { %s7307_s13 = sld [smem:[#allocation72_spill]] }
 0x36c   : > { %s4776_s29 = sld [smem:[#allocation14 + %s1198_s10]] }
 0x36d   : > { %s4793_s10 = sld [smem:[#allocation14 + %s1205_s8]] }
 0x36f   : > { %7302 = sst [smem:[#allocation126_spill]] %s4734_s26 }
 0x370   : > { %7303 = sst [smem:[#allocation127_spill]] %s4747_s27  ;;  %s7305_s27 = sadd.s32 41, %s3953_s0 }
 0x371   : > { %s4761_s26 = sld [smem:[#allocation14 + %s7019_s20]] }
 0x372   : > { %s4769_s17 = sld [smem:[#allocation14 + %s7305_s27]]  ;;  %s1214_s27 = sadd.s32 44, %s3953_s0 }
 0x373   : > { %v1763_v36 = vpop.permute.xlu0 %1762  ;;  %7308 = sst [smem:[#allocation72_spill]] %s4776_s29 }
 0x374   : > { %v1766_v30 = vsel %vm632_vm2, %v1763_v36, %v4193_v6  ;;  %s7309_s20 = sld [smem:[#allocation73_spill]] }
 0x375   : > { %1770 = vrot.lane.b32.xlu0 %v1766_v30, %s7236_s18  ;;  %7311 = sst [smem:[#allocation73_spill]] %s4793_s10  ;;  %s1221_s10 = sadd.s32 45, %s3953_s0 }
 0x376   : > { %s7312_s29 = sld [smem:[#allocation75_spill]] }
 0x377   : > { %v1765_v49 = vpop.permute.xlu1 %1764  ;;  %v1809_v31 = vpop.permute.xlu0 %1808  ;;  %7304 = sst [smem:[#allocation128_spill]] %s4761_s26 }
 0x378   : > { %v1767_v50 = vsel %vm632_vm2, %v1765_v49, %v4198_v34  ;;  %v1812_v44 = vsel %vm632_vm2, %v1809_v31, %v4200_v37  ;;  %7306 = sst [smem:[#allocation129_spill]] %s4769_s17 }
 0x379   : > { %1772 = vrot.lane.b32.xlu1 %v1767_v50, %s7236_s18  ;;  %1816 = vrot.lane.b32.xlu0 %v1812_v44, %s7236_s18  ;;  %s7310_s26 = sld [smem:[#allocation74_spill]] }
 0x37a   : > { %s4814_s8 = sld [smem:[#allocation8 + %s1214_s27]] }
 0x37b   : > { %v1811_v22 = vpop.permute.xlu1 %1810  ;;  %v1559_v2 = vpop.permute.xlu0 %1558  ;;  %s7314_s17 = sld [smem:[#allocation76_spill]] }
 0x37c   : > { %v1813_v57 = vsel %vm632_vm2, %v1811_v22, %v4206_v38  ;;  %v1562_v26 = vsel %vm632_vm2, %v1559_v2, %v4212_v61  ;;  %v4505_v2 = vsel %vm632_vm2, %v4355_v23, %v3844_v40  ;;  %v4527_v40 = vsel %vm632_vm2, %v4359_v55, %v3847_v41 }
 0x37d   : > { %1818 = vrot.lane.b32.xlu1 %v1813_v57, %s7236_s18  ;;  %1896 = vrot.lane.b32.xlu0 %v1766_v30, %s7237_s30 }
 0x37f   : > { %v1561_v11 = vpop.permute.xlu1 %1560  ;;  %v1601_v16 = vpop.permute.xlu0 %1600 }
 0x380   : > { %v1563_v0 = vsel %vm632_vm2, %v1561_v11, %v4222_v9  ;;  %v1604_v30 = vsel %vm632_vm2, %v1601_v16, %v4226_v27  ;;  %v4538_v11 = vsel %vm632_vm2, %v4390_v62, %v3858_v45  ;;  %v4563_v45 = vsel %vm632_vm2, %v4392_v13, %v3861_v46  ;;  %7313 = sst [smem:[#allocation74_spill]] %s4814_s8 }
 0x381   : > { %1898 = vrot.lane.b32.xlu1 %v1767_v50, %s7237_s30  ;;  %1928 = vrot.lane.b32.xlu0 %v1812_v44, %s7237_s30  ;;  %s7319_s8 = sld [smem:[#allocation80_spill]] }
 0x383   : > { %v1603_v10 = vpop.permute.xlu1 %1602  ;;  %v4424_v12 = vpop.permute.xlu0 %647 }
 0x384   : > { %v1605_v31 = vsel %vm632_vm2, %v1603_v10, %v4236_v33 }
 0x385   : > { %1930 = vrot.lane.b32.xlu1 %v1813_v57, %s7237_s30  ;;  %1566 = vrot.lane.b32.xlu0 %v1562_v26, %s7236_s18 }
 0x387   : > { %v4440_v29 = vpop.permute.xlu1 %649  ;;  %v4448_v36 = vpop.permute.xlu0 %683 }
 0x389   : > { %1568 = vrot.lane.b32.xlu1 %v1563_v0, %s7236_s18  ;;  %1608 = vrot.lane.b32.xlu0 %v1604_v30, %s7236_s18 }
 0x38b   : > { %v4464_v49 = vpop.permute.xlu1 %685  ;;  %v4471_v50 = vpop.permute.xlu0 %723 }
 0x38d   : > { %1610 = vrot.lane.b32.xlu1 %v1605_v31, %s7236_s18  ;;  %1692 = vrot.lane.b32.xlu0 %v1562_v26, %s7237_s30  ;;  %v4743_v26 = vsel %vm632_vm2, %v4398_v24, %v3922_v59  ;;  %v7033_v24 = vstv %s4433_s14  ;;  %s7317_s14 = sld [smem:[#allocation78_spill]] }
 0x38f   : > { %v4483_v44 = vpop.permute.xlu1 %725  ;;  %v4490_v22 = vpop.permute.xlu0 %793 }
 0x391   : > { %1694 = vrot.lane.b32.xlu1 %v1563_v0, %s7237_s30  ;;  %1724 = vrot.lane.b32.xlu0 %v1604_v30, %s7237_s30  ;;  %v7035_v0 = vstv %s4427_s9  ;;  %v761_v30 = vsel %vm606_vm3, %v3872_v48, 0.0  ;;  %v4774_v48 = vsel %vm632_vm2, %v4400_v25, %v3940_v3  ;;  %s7318_s9 = sld [smem:[#allocation79_spill]] }
 0x392   : > { %v4798_v25 = vmul.f32 %v7033_v24, %v761_v30  ;;  %v2063_v24 = vsel %vm609_vm4, %v4274_v21, 0.0 }
 0x393   : > { %v4507_v57 = vpop.permute.xlu1 %795  ;;  %v1971_v23 = vpop.permute.xlu0 %1970  ;;  %v7366_v7 = vstv %s7317_s14 }
 0x394   : > { %v1974_v55 = vsel %vm632_vm2, %v1971_v23, %v4265_v1 }
 0x395   : > { %1726 = vrot.lane.b32.xlu1 %v1605_v31, %s7237_s30  ;;  %909 = vrot.lane.b32.xlu0 %v4505_v2, %s7236_s18  ;;  %v7032_v31 = vstv %s4437_s16  ;;  %s7316_s16 = sld [smem:[#allocation77_spill]] }
 0x397   : > { %v1973_v41 = vpop.permute.xlu1 %1972  ;;  %v2021_v62 = vpop.permute.xlu0 %2020 }
 0x398   : > { %v1975_v46 = vsel %vm632_vm2, %v1973_v41, %v4274_v21  ;;  %v2024_v13 = vsel %vm632_vm2, %v2021_v62, %v4278_v8  ;;  %v4802_v41 = vmul.f32 %v7032_v31, %v761_v30  ;;  %v2066_v62 = vstv %s7307_s13  ;;  %s7321_s13 = sld [smem:[#allocation81_spill]] }
 0x399   : > { %911 = vrot.lane.b32.xlu1 %v4527_v40, %s7236_s18  ;;  %945 = vrot.lane.b32.xlu0 %v4538_v11, %s7236_s18  ;;  %v4834_v30 = vsel %vm632_vm2, %v4404_v28, %v3948_v4  ;;  %v1849_v28 = vstv %s4551_s21  ;;  %s7334_s21 = sld [smem:[#allocation49_spill]]  ;;  %v1640_v31 = vsel %vm606_vm3, %v4212_v61, 0.0 }
 0x39a   : > { %v4893_v32 = vmul.f32 %v1849_v28, %v4198_v34 }
 0x39b   : > { %v2023_v16 = vpop.permute.xlu1 %2022 }
 0x39c   : > { %v2025_v10 = vsel %vm632_vm2, %v2023_v16, %v4288_v39  ;;  %v2087_v16 = vstv %s4473_s2  ;;  %s7324_s2 = sld [smem:[#allocation85_spill]]  ;;  %7337 = vst [vmem:[#allocation132_spill] sm:$0xff] %v4893_v32 }
 0x39d   : > { %947 = vrot.lane.b32.xlu1 %v4563_v45, %s7236_s18  ;;  %1978 = vrot.lane.b32.xlu0 %v1974_v55, %s7236_s18 }
 0x3a1   : > { %1980 = vrot.lane.b32.xlu1 %v1975_v46, %s7236_s18  ;;  %2028 = vrot.lane.b32.xlu0 %v2024_v13, %s7236_s18 }
 0x3a5   : > { %2030 = vrot.lane.b32.xlu1 %v2025_v10, %s7236_s18  ;;  %2122 = vrot.lane.b32.xlu0 %v1974_v55, %s7237_s30  ;;  %v4820_v55 = vsel %vm609_vm4, %v3926_v60, 0.0 }
 0x3a9   : > { %2124 = vrot.lane.b32.xlu1 %v1975_v46, %s7237_s30  ;;  %2158 = vrot.lane.b32.xlu0 %v2024_v13, %s7237_s30  ;;  %v2073_v46 = vstv %s7309_s20  ;;  %v2080_v13 = vstv %s7310_s26  ;;  %s1237_s20 = sadd.s32 47, %s3953_s0  ;;  %s7322_s26 = sld [smem:[#allocation88_spill]] }
 0x3aa   : > { %v4920_v61 = vmul.f32 %v2073_v46, %v4265_v1 }
 0x3ac   : > { %7343 = vst [vmem:[#allocation137_spill] sm:$0xff] %v4920_v61 }
 0x3ad   : > { %2160 = vrot.lane.b32.xlu1 %v2025_v10, %s7237_s30  ;;  %1009 = vrot.lane.b32.xlu0 %v4379_v18, %s7237_s30  ;;  %v1090_v18 = vsel %vm632_vm2, %v4394_v19, %v3912_v56  ;;  %v745_v19 = vsel %vm606_vm3, %v3853_v42, 0.0  ;;  %v777_v42 = vsel %vm606_vm3, %v3882_v51, 0.0  ;;  %v2096_v10 = vstv %s4477_s28  ;;  %s4848_s28 = sld [smem:[#allocation8 + %s1237_s20]] }
 0x3ae   : > { %v4784_v23 = vmul.f32 %v7035_v0, %v745_v19  ;;  %v2093_v0 = vsel %vm609_vm4, %v4288_v39, 0.0  ;;  %v4928_v39 = vmul.f32 %v2073_v46, %v2063_v24  ;;  %v4943_v46 = vmul.f32 %v2096_v10, %v4278_v8 }
 0x3af   : > { %v1855_v54 = vstv %s7322_s26  ;;  %s7347_s26 = sld [smem:[#allocation55_spill]] }
 0x3b0   : > { %v4896_v21 = vmul.f32 %v1855_v54, %v4193_v6  ;;  %7346 = vst [vmem:[#allocation139_spill] sm:$0xff] %v4928_v39  ;;  %7353 = vst [vmem:[#allocation143_spill] sm:$0xff] %v4943_v46 }
 0x3b1   : > { %1011 = vrot.lane.b32.xlu1 %v4386_v58, %s7237_s30  ;;  %1031 = vrot.lane.b32.xlu0 %v4505_v2, %s7237_s30  ;;  %v4732_v58 = vsel %vm632_vm2, %v4396_v35, %v3926_v60  ;;  %v7036_v35 = vstv %s4422_s25  ;;  %v7031_v2 = vstv %s7300_s23  ;;  %s1230_s23 = sadd.s32 46, %s3953_s0  ;;  %v4842_v60 = vsel %vm609_vm4, %v3940_v3, 0.0 }
 0x3b2   : > { %v4780_v51 = vmul.f32 %v7036_v35, %v745_v19  ;;  %v2103_v19 = vstv %s7312_s29  ;;  %s4836_s25 = sld [smem:[#allocation8 + %s1230_s23]]  ;;  %v7053_v3 = vstv %s7316_s16  ;;  %7338 = vst [vmem:[#allocation133_spill] sm:$0xff] %v4896_v21  ;;  %v4917_v35 = vmul.f32 %v2066_v62, %v2063_v24 }
 0x3b3   : > { %s7323_s29 = sld [smem:[#allocation83_spill]] }
 0x3b4   : > { %7325 = sst [smem:[#allocation77_spill]] %s4848_s28  ;;  %7342 = vst [vmem:[#allocation136_spill] sm:$0xff] %v4917_v35 }
 0x3b5   : > { %1033 = vrot.lane.b32.xlu1 %v4527_v40, %s7237_s30  ;;  %1053 = vrot.lane.b32.xlu0 %v4538_v11, %s7237_s30  ;;  %v7030_v40 = vstv %s7301_s5  ;;  %v4789_v11 = vsel %vm632_vm2, %v4402_v17, %v3936_v63  ;;  %s4825_s5 = sld [smem:[#allocation8 + %s1221_s10]] }
 0x3b6   : > { %v4810_v17 = vmul.f32 %v7030_v40, %v777_v42  ;;  %v2117_v40 = vstv %s4487_s12  ;;  %s7330_s12 = sld [smem:[#allocation91_spill]] }
 0x3b7   : > { %s4868_s28 = sld [smem:[#allocation14 + %s1230_s23]] }
 0x3b8   : > { %7320 = sst [smem:[#allocation76_spill]] %s4836_s25 }
 0x3b9   : > { %1055 = vrot.lane.b32.xlu1 %v4563_v45, %s7237_s30  ;;  %1094 = vrot.lane.b32.xlu0 %v1090_v18, %s7236_s18  ;;  %v4806_v45 = vmul.f32 %v7031_v2, %v777_v42  ;;  %v2110_v42 = vstv %s4485_s24  ;;  %v4854_v2 = vsel %vm609_vm4, %v3948_v4, 0.0  ;;  %s4857_s25 = sld [smem:[#allocation14 + %s1214_s27]] }
 0x3ba   : > { %7327 = vst [vmem:[#allocation130_spill] sm:$0xff] %v4854_v2  ;;  %s7329_s24 = sld [smem:[#allocation90_spill]]  ;;  %v4890_v2 = vmul.f32 %v1849_v28, %v4193_v6  ;;  %v4912_v28 = vmul.f32 %v1855_v54, %v4198_v34  ;;  %v4933_v54 = vmul.f32 %v2087_v16, %v4265_v1 }
 0x3bb   : > { %7315 = sst [smem:[#allocation75_spill]] %s4825_s5 }
 0x3bc   : > { %s7326_s5 = sld [smem:[#allocation89_spill]]  ;;  %7336 = vst [vmem:[#allocation131_spill] sm:$0xff] %v4890_v2  ;;  %7340 = vst [vmem:[#allocation134_spill] sm:$0xff] %v4912_v28 }
 0x3bd   : > { %1096 = vrot.lane.b32.xlu1 %v4732_v58, %s7236_s18  ;;  %1134 = vrot.lane.b32.xlu0 %v4743_v26, %s7236_s18  ;;  %7332 = sst [smem:[#allocation80_spill]] %s4868_s28  ;;  %7350 = vst [vmem:[#allocation141_spill] sm:$0xff] %v4933_v54  ;;  %v7383_v54 = vstv %s7323_s29 }
 0x3be   : > { %s4887_s23 = sld [smem:[#allocation14 + %s3953_s0]] }
 0x3bf   : > { %7328 = sst [smem:[#allocation78_spill]] %s4857_s25  ;;  %s2166_s25 = sadd.s32 68, %s3953_s0 }
 0x3c0   : > { %s4909_s27 = sld [smem:[#allocation14 + %s3977_s6]] }
 0x3c1   : > { %1136 = vrot.lane.b32.xlu1 %v4774_v48, %s7236_s18  ;;  %1174 = vrot.lane.b32.xlu0 %v4789_v11, %s7236_s18  ;;  %s7349_s6 = sld [smem:[#allocation46_spill]] }
 0x3c4   : > { %7335 = sst [smem:[#allocation88_spill]] %s4887_s23 }
 0x3c5   : > { %1176 = vrot.lane.b32.xlu1 %v4834_v30, %s7236_s18  ;;  %1244 = vrot.lane.b32.xlu0 %v1090_v18, %s7237_s30  ;;  %s4862_s18 = sld [smem:[#allocation14 + %s1221_s10]]  ;;  %v4930_v18 = vmul.f32 %v2080_v13, %v2063_v24 }
 0x3c6   : > { %s4879_s10 = sld [smem:[#allocation14 + %s1237_s20]] }
 0x3c7   : > { %7339 = sst [smem:[#allocation83_spill]] %s4909_s27  ;;  %7348 = vst [vmem:[#allocation140_spill] sm:$0xff] %v4930_v18 }
 0x3c8   : > { %s4926_s20 = sld [smem:[#allocation14 + %s7334_s21]] }
 0x3c9   : > { %1246 = vrot.lane.b32.xlu1 %v4732_v58, %s7237_s30  ;;  %1266 = vrot.lane.b32.xlu0 %v4743_v26, %s7237_s30  ;;  %v1666_v26 = vsel %vm606_vm3, %v4226_v27, 0.0  ;;  %v4915_v58 = vmul.f32 %v2066_v62, %v4265_v1  ;;  %v4923_v27 = vmul.f32 %v2080_v13, %v4265_v1  ;;  %v4935_v62 = vmul.f32 %v2087_v16, %v2063_v24  ;;  %s4940_s27 = sld [smem:[#allocation14 + %s3986_s3]] }
 0x3ca   : > { %v4945_v13 = vmul.f32 %v2096_v10, %v2093_v0  ;;  %s7355_s21 = sld [smem:[#allocation47_spill]]  ;;  %v4948_v1 = vmul.f32 %v2103_v19, %v4278_v8  ;;  %v4950_v24 = vmul.f32 %v2103_v19, %v2093_v0  ;;  %v4960_v16 = vmul.f32 %v2110_v42, %v2093_v0 }
 0x3cb   : > { %7331 = sst [smem:[#allocation79_spill]] %s4862_s18  ;;  %7341 = vst [vmem:[#allocation135_spill] sm:$0xff] %v4915_v58  ;;  %7344 = vst [vmem:[#allocation138_spill] sm:$0xff] %v4923_v27  ;;  %v4963_v10 = vmul.f32 %v2117_v40, %v4278_v8  ;;  %v4965_v19 = vmul.f32 %v2117_v40, %v2093_v0  ;;  %v7367_v0 = vstv %s7318_s9  ;;  %v654_v58 = vsel %vm4051_vm5, %v4440_v29, 0.0 }
 0x3cc   : > { %7333 = sst [smem:[#allocation81_spill]] %s4879_s10  ;;  %7351 = vst [vmem:[#allocation142_spill] sm:$0xff] %v4935_v62  ;;  %7354 = vst [vmem:[#allocation144_spill] sm:$0xff] %v4945_v13  ;;  %v4987_v40 = vmul.f32 %v7367_v0, %v1640_v31  ;;  %v730_v29 = vsel %vm4051_vm5, %v4483_v44, 0.0  ;;  %s2151_s10 = sadd.s32 67, %s3953_s0 }
 0x3cd   : > { %1268 = vrot.lane.b32.xlu1 %v4774_v48, %s7237_s30  ;;  %7356 = vst [vmem:[#allocation145_spill] sm:$0xff] %v4948_v1  ;;  %7357 = vst [vmem:[#allocation146_spill] sm:$0xff] %v4950_v24  ;;  %1288 = vrot.lane.b32.xlu0 %v4789_v11, %s7237_s30  ;;  %s4955_s3 = sld [smem:[#allocation14 + %s4008_s19]]  ;;  %v4958_v48 = vmul.f32 %v2110_v42, %v4278_v8  ;;  %v7365_v11 = vstv %s7314_s17  ;;  %v4979_v42 = vmul.f32 %v7053_v3, %v1640_v31 }
 0x3ce   : > { %7345 = sst [smem:[#allocation85_spill]] %s4926_s20  ;;  %7360 = vst [vmem:[#allocation148_spill] sm:$0xff] %v4960_v16  ;;  %7361 = vst [vmem:[#allocation149_spill] sm:$0xff] %v4963_v10  ;;  %v4975_v4 = vmul.f32 %v7365_v11, %v1640_v31  ;;  %v4983_v8 = vmul.f32 %v7366_v7, %v1640_v31  ;;  %v7369_v11 = vstv %s7319_s8  ;;  %v7370_v3 = vstv %s7321_s13 }
 0x3cf   : > { %7352 = sst [smem:[#allocation89_spill]] %s4940_s27  ;;  %7359 = vst [vmem:[#allocation147_spill] sm:$0xff] %v4958_v48  ;;  %7362 = vst [vmem:[#allocation150_spill] sm:$0xff] %v4965_v19  ;;  %v4996_v5 = vmul.f32 %v7369_v11, %v1666_v26  ;;  %v5000_v19 = vmul.f32 %v7370_v3, %v1666_v26  ;;  %v7371_v7 = vstv %s7323_s29  ;;  %v7372_v31 = vstv %s7324_s2 }
 0x3d0   : > { %s4968_s27 = sld [smem:[#allocation14 + %s7347_s26]]  ;;  %v5004_v16 = vmul.f32 %v7371_v7, %v1666_v26  ;;  %v5008_v0 = vmul.f32 %v7372_v31, %v1666_v26  ;;  %v7375_v10 = vstv %s7316_s16  ;;  %v7377_v7 = vstv %s7317_s14  ;;  %s5063_s14 = sadd.s32 21, %s3953_s0 }
 0x3d1   : > { %s4971_s19 = sld [smem:[#allocation14 + %s7349_s6]]  ;;  %1290 = vrot.lane.b32.xlu1 %v4834_v30, %s7237_s30  ;;  %v7374_v30 = vstv %s7314_s17  ;;  %v5021_v3 = vmul.f32 %v7375_v10, %v4222_v9  ;;  %v5026_v62 = vmul.f32 %v7377_v7, %v4222_v9  ;;  %v7378_v26 = vstv %s7318_s9 }
 0x3d2   : > { %s4992_s6 = sld [smem:[#allocation14 + %s7355_s21]]  ;;  %v5016_v11 = vmul.f32 %v7374_v30, %v4222_v9  ;;  %v5031_v31 = vmul.f32 %v7378_v26, %v4222_v9  ;;  %v7381_v30 = vstv %s7319_s8  ;;  %v7382_v48 = vstv %s7321_s13 }
 0x3d3   : > { %7358 = sst [smem:[#allocation90_spill]] %s4955_s3  ;;  %v5042_v10 = vmul.f32 %v7381_v30, %v4236_v33  ;;  %v5047_v7 = vmul.f32 %v7382_v48, %v4236_v33  ;;  %v5052_v9 = vmul.f32 %v7383_v54, %v4236_v33  ;;  %v7384_v26 = vstv %s7324_s2  ;;  %s5089_s2 = sadd.s32 22, %s3953_s0 }
 0x3d4   : > { %s5011_s26 = sld [smem:[#allocation14 + %s4106_s11]]  ;;  %s5037_s11 = sadd.s32 20, %s3953_s0  ;;  %v5057_v18 = vmul.f32 %v7384_v26, %v4236_v33  ;;  %v7387_v30 = vstv %s7326_s5  ;;  %v7392_v24 = vstv %s4574_s7 }
 0x3d5   : > { %s7376_s21 = sld [smem:[#allocation104_spill]]  ;;  %v5068_v48 = vmul.f32 %v7387_v30, %v4193_v6  ;;  %v7389_v27 = vmov %v7387_v30  ;;  %v5078_v33 = vmul.f32 %v7392_v24, %v4193_v6  ;;  %v7395_v26 = vmov %v7392_v24 }
 0x3d6   : > { %7363 = sst [smem:[#allocation91_spill]] %s4968_s27  ;;  %v5073_v54 = vmul.f32 %v7389_v27, %v4198_v34  ;;  %v5083_v13 = vmul.f32 %v7395_v26, %v4198_v34  ;;  %v7400_v30 = vstv %s4580_s1  ;;  %v7405_v6 = vstv %s7329_s24  ;;  %s2173_s24 = sadd.s32 69, %s3953_s0 }
 0x3d7   : > { %7364 = sst [smem:[#allocation151_spill]] %s4971_s19  ;;  %7388 = vst [vmem:[#allocation158_spill] sm:$0xff] %v5068_v48  ;;  %7394 = vst [vmem:[#allocation160_spill] sm:$0xff] %v5078_v33  ;;  %v5094_v27 = vmul.f32 %v7400_v30, %v4200_v37  ;;  %v5104_v24 = vmul.f32 %v7405_v6, %v4200_v37  ;;  %v7408_v34 = vmov %v7405_v6  ;;  %v7417_v6 = vstv %s4598_s4  ;;  %s7527_s19 = sadd.s32 37, %s3953_s0 }
 0x3d8   : > { %7368 = sst [smem:[#allocation152_spill]] %s4992_s6  ;;  %7391 = vst [vmem:[#allocation159_spill] sm:$0xff] %v5073_v54  ;;  %7397 = vst [vmem:[#allocation161_spill] sm:$0xff] %v5083_v13  ;;  %v7403_v54 = vmov %v7400_v30  ;;  %v5109_v26 = vmul.f32 %v7408_v34, %v4206_v38  ;;  %v7413_v30 = vstv %s7330_s12  ;;  %v5130_v39 = vmul.f32 %v7417_v6, %v4200_v37 }
 0x3d9   : > { %s5034_s17 = sld [smem:[#allocation14 + %s4113_s22]]  ;;  %7402 = vst [vmem:[#allocation162_spill] sm:$0xff] %v5094_v27  ;;  %v5099_v48 = vmul.f32 %v7403_v54, %v4206_v38  ;;  %7407 = vst [vmem:[#allocation164_spill] sm:$0xff] %v5104_v24  ;;  %v5120_v13 = vmul.f32 %v7413_v30, %v4200_v37  ;;  %v7415_v54 = vmov %v7413_v30  ;;  %v7420_v34 = vmov %v7417_v6 }
 0x3da   : > { %7373 = sst [smem:[#allocation153_spill]] %s5011_s26  ;;  %7410 = vst [vmem:[#allocation165_spill] sm:$0xff] %v5109_v26  ;;  %v5125_v33 = vmul.f32 %v7415_v54, %v4206_v38  ;;  %7419 = vst [vmem:[#allocation168_spill] sm:$0xff] %v5130_v39  ;;  %v5135_v35 = vmul.f32 %v7420_v34, %v4206_v38  ;;  %v689_v30 = vsel %vm4070_vm7, %v4448_v36, 0.0  ;;  %v653_v37 = vsel %vm4070_vm7, %v4424_v12, 0.0  ;;  %v5152_v34 = vpop.permute.xlu0 %815  ;;  %s2180_s26 = sadd.s32 70, %s3953_s0 }
 0x3db   : > { %7380 = sst [smem:[#allocation155_spill]] %s5037_s11  ;;  %7404 = vst [vmem:[#allocation163_spill] sm:$0xff] %v5099_v48  ;;  %7414 = vst [vmem:[#allocation166_spill] sm:$0xff] %v5120_v13  ;;  %v729_v36 = vsel %vm4070_vm7, %v4471_v50, 0.0 }
 0x3dc   : > { %s5060_s9 = sld [smem:[#allocation14 + %s4638_s15]]  ;;  %7416 = vst [vmem:[#allocation167_spill] sm:$0xff] %v5125_v33  ;;  %7422 = vst [vmem:[#allocation169_spill] sm:$0xff] %v5135_v35  ;;  %v690_v35 = vsel %vm4051_vm5, %v4464_v49, 0.0 }
 0x3dd   : > { %7386 = sst [smem:[#allocation157_spill]] %s5063_s14 }
 0x3de   : > { %s7390_s16 = sld [smem:[#allocation92_spill]] }
 0x3df   : > { %7379 = sst [smem:[#allocation154_spill]] %s5034_s17 }
 0x3e0   : > { %s7393_s8 = sld [smem:[#allocation94_spill]] }
 0x3e1   : > { %s7396_s13 = sld [smem:[#allocation95_spill]] }
 0x3e2   : > { %7385 = sst [smem:[#allocation156_spill]] %s5060_s9  ;;  %s2144_s9 = sadd.s32 66, %s3953_s0 }
 0x3e3   : > { %s5086_s29 = sld [smem:[#allocation14 + %s7376_s21]]  ;;  %s5112_s21 = sadd.s32 23, %s3953_s0 }
 0x3e4   : > { %7399 = sst [smem:[#allocation94_spill]] %s5089_s2  ;;  %v657_v1 = vstv %s7390_s16 }
 0x3e5   : > { %s7401_s5 = sld [smem:[#allocation93_spill]]  ;;  %v658_v49 = vmul.f32 %v657_v1, %v653_v37 }
 0x3e6   : > { %s7406_s7 = sld [smem:[#allocation96_spill]]  ;;  %v693_v46 = vstv %s7393_s8 }
 0x3e7   : > { %s7409_s22 = sld [smem:[#allocation97_spill]]  ;;  %v700_v61 = vstv %s7396_s13  ;;  %v694_v12 = vmul.f32 %v693_v46, %v689_v30  ;;  %v695_v27 = vmul.f32 %v693_v46, %v690_v35 }
 0x3e8   : > { %7411 = sst [smem:[#allocation95_spill]] %s5112_s21  ;;  %v701_v13 = vmul.f32 %v700_v61, %v689_v30  ;;  %v5187_v30 = vpop.permute.xlu1 %817  ;;  %v702_v28 = vmul.f32 %v700_v61, %v690_v35 }
 0x3e9   : > { %7398 = sst [smem:[#allocation92_spill]] %s5086_s29  ;;  %v696_v35 = vadd.f32 %v694_v12, %v658_v49 }
 0x3ea   : > { %s5115_s15 = sld [smem:[#allocation14 + %s5037_s11]] }
 0x3eb   : > { %s7423_s12 = sld [smem:[#allocation66_spill]]  ;;  %v662_v54 = vstv %s7401_s5 }
 0x3ec   : > { %s5144_s30 = sld [smem:[#allocation14 + %s5063_s14]]  ;;  %v733_v6 = vstv %s7406_s7  ;;  %v663_v50 = vmul.f32 %v662_v54, %v653_v37 }
 0x3ed   : > { %s7425_s4 = sld [smem:[#allocation67_spill]]  ;;  %v740_v38 = vstv %s7409_s22  ;;  %v735_v46 = vmul.f32 %v733_v6, %v730_v29 }
 0x3ee   : > { %s5155_s16 = sld [smem:[#allocation14 + %s5089_s2]]  ;;  %v741_v24 = vmul.f32 %v740_v38, %v729_v36  ;;  %v703_v61 = vadd.f32 %v701_v13, %v663_v50 }
 0x3ef   : > { %s5166_s8 = sld [smem:[#allocation14 + %s5112_s21]] }
 0x3f0   : > { %7412 = sst [smem:[#allocation93_spill]] %s5115_s15  ;;  %v743_v49 = vadd.f32 %v741_v24, %v703_v61 }
 0x3f1   : > { %v7428_v26 = vstv %s7423_s12  ;;  %s7429_s22 = sld [smem:[#allocation68_spill]] }
 0x3f2   : > { %7424 = sst [smem:[#allocation96_spill]] %s5144_s30  ;;  %v5174_v48 = vmul.f32 %v7428_v26, %v3868_v47  ;;  %v734_v26 = vmul.f32 %v733_v6, %v729_v36 }
 0x3f3   : > { %s7430_s13 = sld [smem:[#allocation69_spill]]  ;;  %v7432_v33 = vstv %s7425_s4 }
 0x3f4   : > { %7426 = sst [smem:[#allocation97_spill]] %s5155_s16  ;;  %v5182_v39 = vmul.f32 %v7432_v33, %v3868_v47  ;;  %v659_v47 = vmul.f32 %v657_v1, %v654_v58  ;;  %v664_v33 = vmul.f32 %v662_v54, %v654_v58  ;;  %v742_v1 = vmul.f32 %v740_v38, %v730_v29  ;;  %v5209_v58 = vpop.permute.xlu0 %837 }
 0x3f5   : > { %7427 = sst [smem:[#allocation66_spill]] %s5166_s8  ;;  %v736_v12 = vadd.f32 %v734_v26, %v696_v35  ;;  %v5240_v35 = vpop.permute.xlu1 %839 }
 0x3f6   : > { %s5177_s5 = sld [smem:[#allocation8 + %s5037_s11]]  ;;  %v697_v50 = vadd.f32 %v695_v27, %v659_v47  ;;  %v704_v29 = vadd.f32 %v702_v28, %v664_v33 }
 0x3f7   : > { %s5190_s7 = sld [smem:[#allocation8 + %s5063_s14]]  ;;  %v7440_v44 = vstv %s7429_s22 }
 0x3f8   : > { %s7434_s12 = sld [smem:[#allocation108_spill]]  ;;  %v5198_v37 = vmul.f32 %v7440_v44, %v3886_v52  ;;  %v737_v28 = vadd.f32 %v735_v46, %v697_v50  ;;  %v744_v27 = vadd.f32 %v742_v1, %v704_v29  ;;  %v752_v1 = vadd.f32 %v4780_v51, %v736_v12  ;;  %v5265_v29 = vpop.permute.xlu0 %873 }
 0x3f9   : > { %s7435_s11 = sld [smem:[#allocation70_spill]]  ;;  %v7442_v32 = vstv %s7430_s13  ;;  %v759_v50 = vadd.f32 %v4784_v23, %v743_v49  ;;  %v5290_v61 = vpop.permute.xlu1 %875 }
 0x3fa   : > { %s5193_s8 = sld [smem:[#allocation8 + %s5089_s2]]  ;;  %v5203_v36 = vmul.f32 %v7442_v32, %v3886_v52  ;;  %v753_v23 = vadd.f32 %v5174_v48, %v737_v28  ;;  %v760_v12 = vadd.f32 %v5182_v39, %v744_v27  ;;  %v768_v39 = vadd.f32 %v4798_v25, %v752_v1 }
 0x3fb   : > { %s7438_s4 = sld [smem:[#allocation100_spill]]  ;;  %v775_v28 = vadd.f32 %v4802_v41, %v759_v50 }
 0x3fc   : > { %7431 = sst [smem:[#allocation67_spill]] %s5177_s5  ;;  %v5301_v27 = vpop.permute.xlu0 %1770  ;;  %v769_v41 = vadd.f32 %v5198_v37, %v753_v23  ;;  %v776_v50 = vadd.f32 %v5203_v36, %v760_v12  ;;  %v784_v12 = vadd.f32 %v4806_v45, %v768_v39 }
 0x3fd   : > { %7433 = sst [smem:[#allocation68_spill]] %s5190_s7  ;;  %v5327_v1 = vpop.permute.xlu1 %1772  ;;  %v791_v47 = vadd.f32 %v4810_v17, %v775_v28 }
 0x3fe   : > { %s7436_s5 = sld [smem:[#allocation71_spill]] }
 0x3ff   : > { %s7439_s16 = sld [smem:[#allocation101_spill]]  ;;  %v7448_v52 = vstv %s7435_s11  ;;  %s2130_s11 = sadd.s32 64, %s3953_s0 }
 0x400   : > { %7437 = sst [smem:[#allocation69_spill]] %s5193_s8  ;;  %v5218_v32 = vmul.f32 %v7448_v52, %v3894_v53 }
 0x401   : > { %s7441_s30 = sld [smem:[#allocation109_spill]]  ;;  %v825_v6 = vstv %s7438_s4  ;;  %s7472_s4 = sadd.s32 53, %s3953_s0 }
 0x402   : > { %s5206_s14 = sld [smem:[#allocation8 + %s5112_s21]]  ;;  %s7460_s21 = sadd.s32 49, %s3953_s0  ;;  %v785_v45 = vadd.f32 %v5218_v32, %v769_v41 }
 0x403   : > { %s7444_s2 = sld [smem:[#allocation103_spill]] }
 0x404   : > { %s7445_s22 = sld [smem:[#allocation105_spill]]  ;;  %v7450_v54 = vstv %s7436_s5  ;;  %s7455_s5 = sadd.s32 48, %s3953_s0 }
 0x405   : > { %s5212_s8 = sld [smem:[#allocation8 + %s7434_s12]]  ;;  %v5223_v13 = vmul.f32 %v7450_v54, %v3894_v53  ;;  %v832_v38 = vstv %s7439_s16  ;;  %s2048_s12 = sadd.s32 54, %s3953_s0  ;;  %v799_v54 = vsel %vm4101_vm8, %v4490_v22, 0.0  ;;  %v800_v22 = vsel %vm4055_vm6, %v4507_v57, 0.0  ;;  %v5339_v57 = vpop.permute.xlu0 %1816 }
 0x406   : > { %s5234_s1 = sld [smem:[#allocation14 + %s7455_s5]]  ;;  %s7463_s5 = sadd.s32 50, %s3953_s0 }
 0x407   : > { %s5228_s7 = sld [smem:[#allocation8 + %s7441_s30]]  ;;  %s2055_s16 = sadd.s32 55, %s3953_s0  ;;  %v792_v17 = vadd.f32 %v5223_v13, %v776_v50  ;;  %v821_v50 = vsel %vm4101_vm8, %v5152_v34, 0.0 }
 0x408   : > { %7443 = sst [smem:[#allocation70_spill]] %s5206_s14  ;;  %v833_v37 = vmul.f32 %v832_v38, %v821_v50 }
 0x409   : > { %v847_v53 = vstv %s7444_s2  ;;  %s5244_s30 = sld [smem:[#allocation14 + %s7460_s21]]  ;;  %s7468_s21 = sadd.s32 51, %s3953_s0 }
 0x40a   : > { %v854_v44 = vstv %s7445_s22  ;;  %s5251_s2 = sld [smem:[#allocation14 + %s7463_s5]]  ;;  %s7470_s5 = sadd.s32 52, %s3953_s0 }
 0x40b   : > { %7446 = sst [smem:[#allocation71_spill]] %s5212_s8  ;;  %s2137_s22 = sadd.s32 65, %s3953_s0 }
 0x40c   : > { %7457 = sst [smem:[#allocation171_spill]] %s5234_s1 }
 0x40d   : > { %7451 = sst [smem:[#allocation170_spill]] %s5228_s7 }
 0x40e   : > { %s5260_s7 = sld [smem:[#allocation14 + %s7468_s21]] }
 0x40f   : > { %s5271_s15 = sld [smem:[#allocation14 + %s7470_s5]] }
 0x410   : > { %s5280_s8 = sld [smem:[#allocation14 + %s7472_s4]] }
 0x411   : > { %s5287_s13 = sld [smem:[#allocation14 + %s2048_s12]] }
 0x412   : > { %s5296_s4 = sld [smem:[#allocation14 + %s2055_s16]] }
 0x413   : > { %s5305_s12 = sld [smem:[#allocation14 + %s2130_s11]] }
 0x414   : > { %7469 = sst [smem:[#allocation172_spill]] %s5260_s7 }
 0x415   : > { %s5314_s18 = sld [smem:[#allocation14 + %s2137_s22]] }
 0x416   : > { %s7480_s1 = sld [smem:[#allocation98_spill]] }
 0x417   : > { %7474 = sst [smem:[#allocation173_spill]] %s5287_s13 }
 0x418   : > { %7475 = sst [smem:[#allocation174_spill]] %s5296_s4  ;;  %s7534_s4 = sadd.s32 39, %s3953_s0 }
 0x419   : > { %7476 = sst [smem:[#allocation175_spill]] %s5305_s12 }
 0x41a   : > { %s5321_s5 = sld [smem:[#allocation14 + %s2144_s9]] }
 0x41b   : > { %7479 = sst [smem:[#allocation176_spill]] %s5314_s18 }
 0x41c   : > { %s7483_s20 = sld [smem:[#allocation99_spill]]  ;;  %v7489_v49 = vstv %s7480_s1 }
 0x41d   : > { %s5332_s21 = sld [smem:[#allocation14 + %s2151_s10]]  ;;  %v804_v33 = vmul.f32 %v7489_v49, %v799_v54  ;;  %s2187_s10 = sadd.s32 71, %s3953_s0  ;;  %v805_v39 = vmul.f32 %v7489_v49, %v800_v22  ;;  %v5371_v49 = vpop.permute.xlu0 %1896 }
 0x41e   : > { %s7488_s9 = sld [smem:[#allocation71_spill]] }
 0x41f   : > { %s5342_s17 = sld [smem:[#allocation14 + %s2166_s25]]  ;;  %v806_v13 = vadd.f32 %v804_v33, %v784_v12  ;;  %v807_v34 = vadd.f32 %v805_v39, %v785_v45  ;;  %v843_v45 = vsel %vm4101_vm8, %v5209_v58, 0.0 }
 0x420   : > { %7482 = sst [smem:[#allocation98_spill]] %s5321_s5  ;;  %v855_v39 = vmul.f32 %v854_v44, %v843_v45 }
 0x421   : > { %s7493_s28 = sld [smem:[#allocation170_spill]] }
 0x422   : > { %v7494_v36 = vstv %s7483_s20  ;;  %s5350_s16 = sld [smem:[#allocation14 + %s2173_s24]] }
 0x423   : > { %7487 = sst [smem:[#allocation99_spill]] %s5332_s21  ;;  %v811_v23 = vmul.f32 %v7494_v36, %v799_v54  ;;  %v7501_v48 = vmov %v7494_v36  ;;  %v5361_v36 = vpop.permute.xlu1 %1818 }
 0x424   : > { %s7497_s3 = sld [smem:[#allocation116_spill]]  ;;  %v969_v28 = vstv %s7488_s9  ;;  %v812_v54 = vmul.f32 %v7501_v48, %v800_v22  ;;  %v822_v22 = vsel %vm4055_vm6, %v5187_v30, 0.0 }
 0x425   : > { %7492 = sst [smem:[#allocation71_spill]] %s5342_s17  ;;  %v813_v41 = vadd.f32 %v811_v23, %v791_v47  ;;  %v827_v58 = vmul.f32 %v825_v6, %v822_v22  ;;  %v834_v26 = vmul.f32 %v832_v38, %v822_v22  ;;  %s7562_s17 = sadd.s32 49, %s3953_s0 }
 0x426   : > { %s7499_s25 = sld [smem:[#allocation40_spill]]  ;;  %v814_v12 = vadd.f32 %v812_v54, %v792_v17  ;;  %v844_v54 = vsel %vm4055_vm6, %v5240_v35, 0.0  ;;  %v879_v35 = vsel %vm4051_vm5, %v5265_v29, 0.0 }
 0x427   : > { %s5357_s14 = sld [smem:[#allocation14 + %s2180_s26]]  ;;  %v976_v32 = vstv %s7493_s28  ;;  %v5403_v17 = vpop.permute.xlu1 %1898  ;;  %v835_v38 = vadd.f32 %v833_v37, %v813_v41  ;;  %v880_v37 = vsel %vm4051_vm5, %v5290_v61, 0.0  ;;  %v829_v41 = vadd.f32 %v827_v58, %v807_v34 }
 0x428   : > { %7495 = sst [smem:[#allocation170_spill]] %s5350_s16 }
 0x429   : > { %s7502_s24 = sld [smem:[#allocation111_spill]]  ;;  %v857_v61 = vadd.f32 %v855_v39, %v835_v38 }
 0x42a   : > { %s7503_s29 = sld [smem:[#allocation118_spill]] }
 0x42b   : > { %s5366_s22 = sld [smem:[#allocation14 + %s2187_s10]]  ;;  %v5447_v22 = vpop.permute.xlu1 %1930 }
 0x42c   : > { %s7505_s1 = sld [smem:[#allocation120_spill]]  ;;  %v3098_v46 = vld [vmem:[%s7499_s25] sm:$0xff]  ;;  %v3099_v33 = vld [vmem:[%s7499_s25 + $0x8] sm:$0xff] }
 0x42d   : > { %7500 = sst [smem:[#allocation177_spill]] %s5357_s14  ;;  %v5379_v25 = vmul.f32 %v3098_v46, %v969_v28  ;;  %v5382_v47 = vmul.f32 %v3099_v33, %v969_v28  ;;  %v5391_v48 = vmul.f32 %v3098_v46, %v976_v32  ;;  %v826_v28 = vmul.f32 %v825_v6, %v821_v50  ;;  %v5409_v46 = vpop.permute.xlu0 %1928  ;;  %v3100_v50 = vld [vmem:[%s7499_s25 + $0x10] sm:$0xff] }
 0x42e   : > { %s5375_s9 = sld [smem:[#allocation8 + %s7497_s3]]  ;;  %v5413_v51 = vmul.f32 %v3099_v33, %v976_v32  ;;  %v848_v33 = vmul.f32 %v847_v53, %v843_v45  ;;  %v849_v45 = vmul.f32 %v847_v53, %v844_v54 }
 0x42f   : > { %s7508_s6 = sld [smem:[#allocation113_spill]]  ;;  %7510 = vst [vmem:[#allocation178_spill] sm:$0xff] %v5379_v25  ;;  %7512 = vst [vmem:[#allocation179_spill] sm:$0xff] %v5382_v47  ;;  %v7100_v23 = vstv %s7502_s24  ;;  %v828_v6 = vadd.f32 %v826_v28, %v806_v13  ;;  %v836_v28 = vadd.f32 %v834_v26, %v814_v12  ;;  %v7535_v53 = vstv %s7502_s24  ;;  %s7545_s24 = sadd.s32 40, %s3953_s0 }
 0x430   : > { %s7509_s28 = sld [smem:[#allocation121_spill]]  ;;  %7514 = vst [vmem:[#allocation180_spill] sm:$0xff] %v5391_v48  ;;  %7520 = vst [vmem:[#allocation181_spill] sm:$0xff] %v5413_v51  ;;  %v5418_v24 = vmul.f32 %v3100_v50, %v7100_v23  ;;  %v5485_v23 = vpop.permute.xlu1 %1568 }
 0x431   : > { %7504 = sst [smem:[#allocation111_spill]] %s5366_s22  ;;  %v5460_v13 = vpop.permute.xlu0 %1566 }
 0x432   : > { %s7511_s10 = sld [smem:[#allocation171_spill]]  ;;  %7521 = vst [vmem:[#allocation182_spill] sm:$0xff] %v5418_v24 }
 0x433   : > { %s5386_s23 = sld [smem:[#allocation8 + %s7503_s29]] }
 0x434   : > { %s7513_s3 = sld [smem:[#allocation82_spill]] }
 0x435   : > { %s5394_s11 = sld [smem:[#allocation8 + %s7505_s1]]  ;;  %v990_v30 = vstv %s7508_s6  ;;  %v1609_v38 = vpop.permute.xlu0 %1608 }
 0x436   : > { %s7516_s29 = sld [smem:[#allocation84_spill]]  ;;  %v5439_v52 = vmul.f32 %v3100_v50, %v990_v30  ;;  %v856_v50 = vmul.f32 %v854_v44, %v844_v54  ;;  %v850_v44 = vadd.f32 %v848_v33, %v828_v6 }
 0x437   : > { %s5407_s22 = sld [smem:[#allocation8 + %s7509_s28]] }
 0x438   : > { %s7519_s1 = sld [smem:[#allocation86_spill]]  ;;  %7523 = vst [vmem:[#allocation183_spill] sm:$0xff] %v5439_v52  ;;  %v858_v6 = vadd.f32 %v856_v50, %v836_v28 }
 0x439   : > { %s7522_s14 = sld [smem:[#allocation87_spill]]  ;;  %v1004_v39 = vstv %s5386_s23 }
 0x43a   : > { %s7524_s20 = sld [smem:[#allocation106_spill]] }
 0x43b   : > { %7515 = sst [smem:[#allocation100_spill]] %s5394_s11 }
 0x43c   : > { %s5421_s11 = sld [smem:[#allocation8 + %s7513_s3]] }
 0x43d   : > { %s5432_s6 = sld [smem:[#allocation8 + %s7516_s29]] }
 0x43e   : > { %s5442_s26 = sld [smem:[#allocation8 + %s7519_s1]]  ;;  %s7526_s1 = sadd.s32 36, %s3953_s0 }
 0x43f   : > { %s7525_s29 = sld [smem:[#allocation107_spill]] }
 0x440   : > { %s5451_s3 = sld [smem:[#allocation8 + %s7522_s14]]  ;;  %v7528_v54 = vstv %s7524_s20 }
 0x441   : > { %s5465_s28 = sld [smem:[#allocation8 + %s7526_s1]]  ;;  %v884_v29 = vmul.f32 %v7528_v54, %v879_v35  ;;  %s7530_s1 = sadd.s32 38, %s3953_s0  ;;  %v7531_v26 = vmov %v7528_v54  ;;  %v3101_v54 = vld [vmem:[%s7499_s25 + $0x18] sm:$0xff] }
 0x442   : > { %s5471_s27 = sld [smem:[#allocation8 + %s7527_s19]]  ;;  %v885_v34 = vmul.f32 %v7531_v26, %v880_v37  ;;  %v5497_v26 = vmul.f32 %v3101_v54, %v7535_v53  ;;  %v5505_v33 = vmul.f32 %v3101_v54, %v990_v30  ;;  %v1611_v54 = vpop.permute.xlu1 %1610 }
 0x443   : > { %s5479_s14 = sld [smem:[#allocation8 + %s7530_s1]]  ;;  %v7755_v43 = vstv %s5432_s6 }
 0x444   : > { %s7533_s19 = sld [smem:[#allocation48_spill]]  ;;  %7537 = vst [vmem:[#allocation184_spill] sm:$0xff] %v5497_v26  ;;  %7540 = vst [vmem:[#allocation185_spill] sm:$0xff] %v5505_v33 }
 0x445   : > { %v7529_v32 = vstv %s7525_s29  ;;  %s5491_s13 = sld [smem:[#allocation8 + %s7534_s4]]  ;;  %s7559_s29 = sadd.s32 48, %s3953_s0 }
 0x446   : > { %v891_v52 = vmul.f32 %v7529_v32, %v879_v35  ;;  %v7532_v12 = vmov %v7529_v32  ;;  %v851_v32 = vadd.f32 %v849_v45, %v829_v41  ;;  %s5500_s1 = sld [smem:[#allocation15 + %s3953_s0]]  ;;  %v5510_v45 = vadd.f32 %v884_v29, %v850_v44 }
 0x447   : > { %v892_v58 = vmul.f32 %v7532_v12, %v880_v37  ;;  %v997_v12 = vstv %s5375_s9  ;;  %s7539_s7 = sld [smem:[#allocation41_spill]]  ;;  %s7549_s9 = sadd.s32 41, %s3953_s0 }
 0x448   : > { %s7542_s18 = sld [smem:[#allocation100_spill]]  ;;  %7543 = vst [vmem:[#allocation186_spill] sm:$0xff] %v5510_v45  ;;  %v5512_v50 = vadd.f32 %v891_v52, %v857_v61  ;;  %v5520_v53 = vadd.f32 %v885_v34, %v851_v32  ;;  %v5530_v52 = vpop.permute.xlu0 %1692 }
 0x449   : > { %s5518_s25 = sld [smem:[#allocation8 + %s7545_s24]]  ;;  %v5522_v30 = vadd.f32 %v892_v58, %v858_v6 }
 0x44a   : > { %s5508_s4 = sld [smem:[#allocation15 + %s7533_s19]]  ;;  %7544 = vst [vmem:[#allocation187_spill] sm:$0xff] %v5512_v50  ;;  %7546 = vst [vmem:[#allocation188_spill] sm:$0xff] %v5520_v53 }
 0x44b   : > { %7547 = vst [vmem:[#allocation189_spill] sm:$0xff] %v5522_v30  ;;  %s7548_s23 = sld [smem:[#allocation126_spill]] }
 0x44c   : > { %s7550_s19 = sld [smem:[#allocation127_spill]]  ;;  %v5564_v35 = vpop.permute.xlu0 %1724 }
 0x44d   : > { %s5528_s21 = sld [smem:[#allocation8 + %s7549_s9]]  ;;  %v3102_v61 = vld [vmem:[%s7539_s7] sm:$0xff]  ;;  %v3103_v32 = vld [vmem:[%s7539_s7 + $0x8] sm:$0xff] }
 0x44e   : > { %s7552_s5 = sld [smem:[#allocation74_spill]]  ;;  %v5533_v37 = vmul.f32 %v3102_v61, %v997_v12  ;;  %v5535_v34 = vmul.f32 %v3102_v61, %v1004_v39  ;;  %v5539_v6 = vmul.f32 %v3103_v32, %v997_v12  ;;  %v5548_v28 = vmul.f32 %v3103_v32, %v1004_v39 }
 0x44f   : > { %s7553_s24 = sld [smem:[#allocation75_spill]] }
 0x450   : > { %7541 = sst [smem:[#allocation101_spill]] %s5508_s4  ;;  %7554 = vst [vmem:[#allocation190_spill] sm:$0xff] %v5533_v37  ;;  %7555 = vst [vmem:[#allocation191_spill] sm:$0xff] %v5535_v34  ;;  %v5604_v32 = vpop.permute.xlu0 %909 }
 0x451   : > { %s7556_s16 = sld [smem:[#allocation76_spill]]  ;;  %7558 = vst [vmem:[#allocation192_spill] sm:$0xff] %v5539_v6  ;;  %7561 = vst [vmem:[#allocation193_spill] sm:$0xff] %v5548_v28  ;;  %v1200_v61 = vstv %s7548_s23  ;;  %v5558_v6 = vpop.permute.xlu1 %1694 }
 0x452   : > { %s7557_s20 = sld [smem:[#allocation77_spill]]  ;;  %v1207_v58 = vstv %s7550_s19  ;;  %v5571_v37 = vmul.f32 %v1200_v61, %v3912_v56 }
 0x453   : > { %7551 = sst [smem:[#allocation113_spill]] %s5528_s21  ;;  %v5574_v24 = vmul.f32 %v1207_v58, %v3912_v56  ;;  %v1776_v56 = vsel %vm4051_vm5, %v5301_v27, 0.0 }
 0x454   : > { %s5543_s9 = sld [smem:[#allocation8 + %s7559_s29]]  ;;  %v1216_v41 = vstv %s7552_s5  ;;  %7564 = vst [vmem:[#allocation194_spill] sm:$0xff] %v5571_v37  ;;  %v5684_v47 = vpop.permute.xlu0 %945 }
 0x455   : > { %s5552_s12 = sld [smem:[#allocation8 + %s7562_s17]]  ;;  %v1223_v12 = vstv %s7553_s24  ;;  %7565 = vst [vmem:[#allocation195_spill] sm:$0xff] %v5574_v24  ;;  %v5577_v34 = vmul.f32 %v1216_v41, %v3922_v59  ;;  %v5593_v24 = vpop.permute.xlu1 %1726 }
 0x456   : > { %v5580_v44 = vmul.f32 %v1223_v12, %v3922_v59  ;;  %s7570_s17 = sld [smem:[#allocation114_spill]]  ;;  %v5597_v59 = vmul.f32 %v1200_v61, %v4820_v55  ;;  %v1777_v61 = vsel %vm4051_vm5, %v5327_v1, 0.0  ;;  %v1615_v1 = vsel %vm4051_vm5, %v1611_v54, 0.0 }
 0x457   : > { %v1232_v33 = vstv %s7556_s16  ;;  %7566 = vst [vmem:[#allocation196_spill] sm:$0xff] %v5577_v34  ;;  %s7571_s7 = sld [smem:[#allocation115_spill]]  ;;  %v5609_v34 = vmul.f32 %v1216_v41, %v4842_v60  ;;  %v1572_v41 = vsel %vm4070_vm7, %v5460_v13, 0.0 }
 0x458   : > { %v1239_v29 = vstv %s7557_s20  ;;  %7567 = vst [vmem:[#allocation197_spill] sm:$0xff] %v5580_v44  ;;  %v5583_v39 = vmul.f32 %v1232_v33, %v3936_v63  ;;  %7572 = vst [vmem:[#allocation200_spill] sm:$0xff] %v5597_v59  ;;  %s7573_s5 = sld [smem:[#allocation117_spill]] }
 0x459   : > { %v5586_v26 = vmul.f32 %v1239_v29, %v3936_v63  ;;  %v1614_v63 = vsel %vm4070_vm7, %v1609_v38, 0.0  ;;  %s7575_s16 = sld [smem:[#allocation90_spill]]  ;;  %7578 = vst [vmem:[#allocation202_spill] sm:$0xff] %v5609_v34  ;;  %v5616_v38 = vmul.f32 %v1223_v12, %v4842_v60 }
 0x45a   : > { %7560 = sst [smem:[#allocation171_spill]] %s5543_s9  ;;  %7568 = vst [vmem:[#allocation198_spill] sm:$0xff] %v5583_v39  ;;  %v5600_v39 = vmul.f32 %v1207_v58, %v4820_v55  ;;  %v7580_v58 = vld [vmem:[#allocation130_spill] sm:$0xff] }
 0x45b   : > { %7563 = sst [smem:[#allocation103_spill]] %s5552_s12  ;;  %7569 = vst [vmem:[#allocation199_spill] sm:$0xff] %v5586_v26  ;;  %7579 = vst [vmem:[#allocation203_spill] sm:$0xff] %v5616_v38  ;;  %v5619_v26 = vmul.f32 %v1232_v33, %v7580_v58  ;;  %v5631_v55 = vmul.f32 %v1239_v29, %v7580_v58 }
 0x45c   : > { %7574 = vst [vmem:[#allocation201_spill] sm:$0xff] %v5600_v39  ;;  %s7576_s19 = sld [smem:[#allocation119_spill]]  ;;  %v7583_v28 = vstv %s7570_s17  ;;  %v7592_v29 = vstv %s7570_s17 }
 0x45d   : > { %s7577_s20 = sld [smem:[#allocation91_spill]]  ;;  %7582 = vst [vmem:[#allocation130_spill] sm:$0xff] %v5619_v26  ;;  %v5623_v27 = vmul.f32 %v7583_v28, %v1776_v56  ;;  %7585 = vst [vmem:[#allocation204_spill] sm:$0xff] %v5631_v55  ;;  %v7586_v60 = vstv %s7571_s7  ;;  %v1822_v28 = vsel %vm4051_vm5, %v5339_v57, 0.0  ;;  %v5652_v58 = vmul.f32 %v7592_v29, %v1777_v61 }
 0x45e   : > { %s7581_s29 = sld [smem:[#allocation88_spill]]  ;;  %v5635_v12 = vmul.f32 %v7586_v60, %v1776_v56  ;;  %v7588_v33 = vstv %s7573_s5  ;;  %v7595_v34 = vstv %s7571_s7  ;;  %v7597_v39 = vstv %s7573_s5 }
 0x45f   : > { %s7584_s23 = sld [smem:[#allocation122_spill]]  ;;  %v5639_v26 = vmul.f32 %v7588_v33, %v1776_v56  ;;  %v7589_v13 = vstv %s7575_s16  ;;  %v1573_v33 = vsel %vm4051_vm5, %v5485_v23, 0.0  ;;  %v5661_v57 = vmul.f32 %v7595_v34, %v1777_v61 }
 0x460   : > { %s7587_s24 = sld [smem:[#allocation83_spill]]  ;;  %v1618_v20 = vmul.f32 %v7589_v13, %v1614_v63  ;;  %v5665_v13 = vmul.f32 %v7597_v39, %v1777_v61  ;;  %v7600_v29 = vstv %s7575_s16  ;;  %v1823_v23 = vsel %vm4051_vm5, %v5361_v36, 0.0 }
 0x461   : > { %s7590_s12 = sld [smem:[#allocation123_spill]]  ;;  %v1619_v59 = vmul.f32 %v7600_v29, %v1615_v1 }
 0x462   : > { %v7591_v38 = vstv %s7576_s19  ;;  %s7594_s9 = sld [smem:[#allocation124_spill]]  ;;  %7598 = vst [vmem:[#allocation205_spill] sm:$0xff] %v5665_v13  ;;  %v7619_v50 = vstv %s7576_s19 }
 0x463   : > { %v5648_v54 = vmul.f32 %v7591_v38, %v1776_v56  ;;  %v7593_v55 = vstv %s7577_s20  ;;  %s7596_s0 = sld [smem:[#allocation125_spill]]  ;;  %v7606_v51 = vstv %s7577_s20 }
 0x464   : > { %v1624_v60 = vmul.f32 %v7593_v55, %v1614_v63  ;;  %v7599_v56 = vstv %s7581_s29  ;;  %v5671_v55 = vpop.permute.xlu1 %911  ;;  %s7603_s17 = sld [smem:[#allocation151_spill]]  ;;  %v7610_v36 = vstv %s7581_s29 }
 0x465   : > { %v1576_v38 = vmul.f32 %v7599_v56, %v1572_v41  ;;  %7601 = vst [vmem:[#allocation206_spill] sm:$0xff] %v5671_v55  ;;  %v7602_v44 = vstv %s7584_s23  ;;  %s7605_s7 = sld [smem:[#allocation128_spill]]  ;;  %v1625_v56 = vmul.f32 %v7606_v51, %v1615_v1  ;;  %v1577_v48 = vmul.f32 %v7610_v36, %v1573_v33 }
 0x466   : > { %v5675_v37 = vmul.f32 %v7602_v44, %v1822_v28  ;;  %v7604_v34 = vstv %s7587_s24  ;;  %s7608_s5 = sld [smem:[#allocation129_spill]]  ;;  %v1902_v44 = vsel %vm4055_vm6, %v5371_v49, 0.0  ;;  %v5707_v55 = vmul.f32 %v7619_v50, %v1777_v61 }
 0x467   : > { %v1580_v39 = vmul.f32 %v7604_v34, %v1572_v41  ;;  %v7607_v29 = vstv %s7590_s12  ;;  %s7609_s16 = sld [smem:[#allocation85_spill]]  ;;  %v1620_v53 = vadd.f32 %v1618_v20, %v1576_v38  ;;  %v7621_v49 = vstv %s7584_s23 }
 0x468   : > { %v5688_v30 = vmul.f32 %v7607_v29, %v1822_v28  ;;  %s7611_s21 = sld [smem:[#allocation152_spill]]  ;;  %v7612_v34 = vstv %s7594_s9  ;;  %v7617_v29 = vstv %s7587_s24  ;;  %7620 = vst [vmem:[#allocation209_spill] sm:$0xff] %v5707_v55  ;;  %v5711_v20 = vmul.f32 %v7621_v49, %v1823_v23 }
 0x469   : > { %v5697_v25 = vmul.f32 %v7612_v34, %v1822_v28  ;;  %v7614_v51 = vstv %s7596_s0  ;;  %s7616_s20 = sld [smem:[#allocation72_spill]]  ;;  %v1626_v2 = vadd.f32 %v1624_v60, %v1580_v39  ;;  %v1581_v13 = vmul.f32 %v7617_v29, %v1573_v33 }
 0x46a   : > { %v5701_v21 = vmul.f32 %v7614_v51, %v1822_v28  ;;  %s7618_s4 = sld [smem:[#allocation73_spill]]  ;;  %v7622_v38 = vstv %s7603_s17  ;;  %v1621_v34 = vadd.f32 %v1619_v59, %v1577_v48  ;;  %v7626_v28 = vstv %s7590_s12  ;;  %v5736_v59 = vpop.permute.xlu1 %947 }
 0x46b   : > { %7613 = vst [vmem:[#allocation207_spill] sm:$0xff] %v5697_v25  ;;  %v1630_v36 = vmul.f32 %v7622_v38, %v1614_v63  ;;  %s7623_s29 = sld [smem:[#allocation89_spill]]  ;;  %v7624_v25 = vstv %s7605_s7  ;;  %v5721_v60 = vmul.f32 %v7626_v28, %v1823_v23  ;;  %v7627_v39 = vstv %s7594_s9  ;;  %7633 = vst [vmem:[#allocation213_spill] sm:$0xff] %v5736_v59 }
 0x46c   : > { %7615 = vst [vmem:[#allocation208_spill] sm:$0xff] %v5701_v21  ;;  %v5717_v45 = vmul.f32 %v7624_v25, %v1902_v44  ;;  %v5725_v51 = vmul.f32 %v7627_v39, %v1823_v23  ;;  %v1627_v50 = vadd.f32 %v1625_v56, %v1581_v13  ;;  %v7629_v61 = vstv %s7608_s5  ;;  %s7640_s12 = sld [smem:[#allocation153_spill]] }
 0x46d   : > { %v5729_v29 = vmul.f32 %v7629_v61, %v1902_v44  ;;  %v7631_v49 = vstv %s7609_s16  ;;  %v1646_v25 = vadd.f32 %v4975_v4, %v1620_v53  ;;  %v1652_v13 = vadd.f32 %v4979_v42, %v1626_v2  ;;  %s7643_s9 = sld [smem:[#allocation154_spill]] }
 0x46e   : > { %7625 = vst [vmem:[#allocation210_spill] sm:$0xff] %v5717_v45  ;;  %7628 = vst [vmem:[#allocation211_spill] sm:$0xff] %v5725_v51  ;;  %v1584_v38 = vmul.f32 %v7631_v49, %v1572_v41  ;;  %v7632_v21 = vstv %s7611_s21  ;;  %v7637_v56 = vstv %s7603_s17  ;;  %v1647_v53 = vadd.f32 %v5016_v11, %v1621_v34  ;;  %s7651_s19 = sld [smem:[#allocation156_spill]] }
 0x46f   : > { %7630 = vst [vmem:[#allocation212_spill] sm:$0xff] %v5729_v29  ;;  %v1636_v48 = vmul.f32 %v7632_v21, %v1614_v63  ;;  %v7634_v45 = vstv %s7616_s20  ;;  %v1631_v61 = vmul.f32 %v7637_v56, %v1615_v1  ;;  %v5749_v29 = vpop.permute.xlu0 %1978  ;;  %v7639_v63 = vstv %s7611_s21  ;;  %s7647_s21 = sld [smem:[#allocation96_spill]] }
 0x470   : > { %v5740_v28 = vmul.f32 %v7634_v45, %v1902_v44  ;;  %v7636_v39 = vstv %s7618_s4  ;;  %v1632_v21 = vadd.f32 %v1630_v36, %v1584_v38  ;;  %v1637_v4 = vmul.f32 %v7639_v63, %v1615_v1  ;;  %s7653_s23 = sld [smem:[#allocation78_spill]] }
 0x471   : > { %v5744_v51 = vmul.f32 %v7636_v39, %v1902_v44  ;;  %v7638_v49 = vstv %s7623_s29  ;;  %v7641_v59 = vstv %s7596_s0  ;;  %v1698_v2 = vsel %vm4101_vm8, %v5530_v52, 0.0  ;;  %s7645_s0 = sld [smem:[#allocation93_spill]] }
 0x472   : > { %7635 = vst [vmem:[#allocation214_spill] sm:$0xff] %v5740_v28  ;;  %v1588_v55 = vmul.f32 %v7638_v49, %v1572_v41  ;;  %v5758_v45 = vmul.f32 %v7641_v59, %v1823_v23  ;;  %v7642_v28 = vstv %s7609_s16  ;;  %v1653_v42 = vadd.f32 %v5021_v3, %v1627_v50  ;;  %v5785_v50 = vpop.permute.xlu1 %1980  ;;  %s7655_s24 = sld [smem:[#allocation92_spill]] }
 0x473   : > { %v1585_v44 = vmul.f32 %v7642_v28, %v1573_v33  ;;  %v5769_v41 = vsel %vm4055_vm6, %v5403_v17, 0.0  ;;  %v7644_v36 = vmov %v7638_v49  ;;  %v1672_v23 = vadd.f32 %v4996_v5, %v1646_v25  ;;  %v5796_v59 = vpop.permute.xlu0 %2028  ;;  %s7658_s17 = sld [smem:[#allocation97_spill]] }
 0x474   : > { %v1638_v1 = vadd.f32 %v1636_v48, %v1588_v55  ;;  %v1589_v11 = vmul.f32 %v7644_v36, %v1573_v33  ;;  %v1678_v34 = vadd.f32 %v5000_v19, %v1652_v13  ;;  %v1730_v52 = vsel %vm4101_vm8, %v5564_v35, 0.0  ;;  %s7661_s16 = sld [smem:[#allocation79_spill]] }
 0x475   : > { %v1633_v38 = vadd.f32 %v1631_v61, %v1585_v44  ;;  %v1699_v3 = vsel %vm4055_vm6, %v5558_v6, 0.0  ;;  %v1658_v17 = vadd.f32 %v4983_v8, %v1632_v21  ;;  %v7646_v55 = vstv %s7640_s12  ;;  %s7674_s29 = sld [smem:[#allocation67_spill]] }
 0x476   : > { %v1702_v33 = vmul.f32 %v7646_v55, %v1698_v2  ;;  %v1639_v5 = vadd.f32 %v1637_v4, %v1589_v11  ;;  %v1673_v19 = vadd.f32 %v5042_v10, %v1647_v53  ;;  %v1934_v48 = vsel %vm4055_vm6, %v5409_v46, 0.0  ;;  %s7676_s12 = sld [smem:[#allocation68_spill]] }
 0x477   : > { %v7648_v35 = vstv %s7643_s9  ;;  %v1679_v6 = vadd.f32 %v5047_v7, %v1653_v42  ;;  %v1731_v8 = vsel %vm4055_vm6, %v5593_v24, 0.0  ;;  %v1664_v10 = vadd.f32 %v4987_v40, %v1638_v1  ;;  %s7681_s9 = sld [smem:[#allocation69_spill]] }
 0x478   : > { %v1708_v25 = vmul.f32 %v7648_v35, %v1698_v2  ;;  %v1704_v28 = vadd.f32 %v1702_v33, %v1672_v23  ;;  %v7649_v39 = vstv %s7645_s0  ;;  %v7650_v13 = vmov %v7646_v55  ;;  %s7683_s0 = sld [smem:[#allocation70_spill]] }
 0x479   : > { %v1734_v46 = vmul.f32 %v7649_v39, %v1730_v52  ;;  %v1703_v56 = vmul.f32 %v7650_v13, %v1699_v3  ;;  %v1659_v7 = vadd.f32 %v5026_v62, %v1633_v38  ;;  %v7652_v49 = vstv %s7647_s21  ;;  %s7721_s21 = sld [smem:[#allocation176_spill]] }
 0x47a   : > { %v1710_v61 = vadd.f32 %v1708_v25, %v1678_v34  ;;  %v1740_v21 = vmul.f32 %v7652_v49, %v1730_v52  ;;  %v7654_v63 = vmov %v7648_v35  ;;  %v1684_v4 = vadd.f32 %v5004_v16, %v1658_v17 }
 0x47b   : > { %v1709_v24 = vmul.f32 %v7654_v63, %v1699_v3  ;;  %v1665_v40 = vadd.f32 %v5031_v31, %v1639_v5  ;;  %v1705_v53 = vadd.f32 %v1703_v56, %v1673_v19  ;;  %v7656_v44 = vmov %v7649_v39  ;;  %v5832_v19 = vpop.permute.xlu1 %2030 }
 0x47c   : > { %v1735_v42 = vmul.f32 %v7656_v44, %v1731_v8  ;;  %v7657_v1 = vstv %s7605_s7  ;;  %v7659_v62 = vstv %s7608_s5  ;;  %v7660_v34 = vmov %v7652_v49  ;;  %s7664_s7 = sld [smem:[#allocation66_spill]]  ;;  %v5841_v49 = vpop.permute.xlu0 %2122 }
 0x47d   : > { %v5815_v36 = vmul.f32 %v7657_v1, %v5769_v41  ;;  %v5820_v11 = vmul.f32 %v7659_v62, %v5769_v41  ;;  %v1711_v23 = vadd.f32 %v1709_v24, %v1679_v6  ;;  %v1741_v38 = vmul.f32 %v7660_v34, %v1731_v8  ;;  %s7670_s5 = sld [smem:[#allocation80_spill]] }
 0x47e   : > { %v7662_v16 = vstv %s7616_s20  ;;  %v1690_v31 = vadd.f32 %v5008_v0, %v1664_v10  ;;  %v7663_v55 = vstv %s7651_s19  ;;  %v1736_v5 = vadd.f32 %v1734_v46, %v1704_v28  ;;  %s7671_s20 = sld [smem:[#allocation81_spill]] }
 0x47f   : > { %v5827_v17 = vmul.f32 %v7662_v16, %v5769_v41  ;;  %v1714_v33 = vmul.f32 %v7663_v55, %v1698_v2  ;;  %v7665_v35 = vstv %s7653_s23  ;;  %v7666_v6 = vstv %s7655_s24  ;;  %s7730_s19 = sld [smem:[#allocation71_spill]] }
 0x480   : > { %v5836_v25 = vmul.f32 %v7665_v35, %v1934_v48  ;;  %v1720_v39 = vmul.f32 %v7666_v6, %v1698_v2  ;;  %v1742_v13 = vadd.f32 %v1740_v21, %v1710_v61  ;;  %v1685_v56 = vadd.f32 %v5052_v9, %v1659_v7  ;;  %s7823_s24 = sld [smem:[#allocation171_spill]] }
 0x481   : > { %v1716_v63 = vadd.f32 %v1714_v33, %v1684_v4  ;;  %v7667_v0 = vstv %s7658_s17  ;;  %v1691_v28 = vadd.f32 %v5057_v18, %v1665_v40  ;;  %v1737_v46 = vadd.f32 %v1735_v42, %v1705_v53  ;;  %s7825_s17 = sld [smem:[#allocation103_spill]] }
 0x482   : > { %v1746_v10 = vmul.f32 %v7667_v0, %v1730_v52  ;;  %v7668_v24 = vstv %s7661_s16  ;;  %v1935_v2 = vsel %vm4055_vm6, %v5447_v22, 0.0  ;;  %v7669_v61 = vmov %v7663_v55  ;;  %v5869_v55 = vpop.permute.xlu1 %2124  ;;  %s7833_s16 = sld [smem:[#allocation48_spill]] }
 0x483   : > { %v5848_v44 = vmul.f32 %v7668_v24, %v1934_v48  ;;  %v1715_v9 = vmul.f32 %v7669_v61, %v1699_v3  ;;  %v1743_v7 = vadd.f32 %v1741_v38, %v1711_v23  ;;  %v1722_v21 = vadd.f32 %v1720_v39, %v1690_v31 }
 0x484   : > { %v7672_v4 = vstv %s7664_s7  ;;  %v1782_v18 = vadd.f32 %v5623_v27, %v1736_v5  ;;  %v7673_v40 = vmov %v7666_v6  ;;  %v1788_v42 = vadd.f32 %v5635_v12, %v1742_v13  ;;  %s7837_s7 = sld [smem:[#allocation49_spill]] }
 0x485   : > { %v1752_v1 = vmul.f32 %v7672_v4, %v1730_v52  ;;  %v1721_v53 = vmul.f32 %v7673_v40, %v1699_v3  ;;  %v1717_v62 = vadd.f32 %v1715_v9, %v1685_v56  ;;  %v915_v22 = vsel %vm4051_vm5, %v5604_v32, 0.0 }
 0x486   : > { %v7675_v34 = vmov %v7667_v0  ;;  %v1748_v23 = vadd.f32 %v1746_v10, %v1716_v63  ;;  %v7677_v31 = vmov %v7672_v4  ;;  %v1783_v27 = vadd.f32 %v5652_v58, %v1737_v46 }
 0x487   : > { %v1747_v16 = vmul.f32 %v7675_v34, %v1731_v8  ;;  %v1723_v38 = vadd.f32 %v1721_v53, %v1691_v28  ;;  %v1753_v52 = vmul.f32 %v7677_v31, %v1731_v8  ;;  %v7678_v3 = vstv %s7670_s5  ;;  %v5885_v8 = vpop.permute.xlu0 %2158  ;;  %v5924_v34 = vpop.permute.xlu1 %2160 }
 0x488   : > { %v5873_v12 = vmul.f32 %v7678_v3, %v1934_v48  ;;  %v7679_v33 = vstv %s7671_s20  ;;  %v7680_v32 = vstv %s7618_s4  ;;  %v1789_v6 = vadd.f32 %v5661_v57, %v1743_v7  ;;  %s7719_s4 = sld [smem:[#allocation175_spill]] }
 0x489   : > { %v5877_v5 = vmul.f32 %v7679_v33, %v1934_v48  ;;  %v5882_v35 = vmul.f32 %v7680_v32, %v5769_v41  ;;  %v7682_v39 = vstv %s7653_s23  ;;  %v1754_v13 = vadd.f32 %v1752_v1, %v1722_v21  ;;  %v7698_v32 = vld [vmem:[#allocation209_spill] sm:$0xff]  ;;  %s7821_s23 = sld [smem:[#allocation99_spill]] }
 0x48a   : > { %v5889_v58 = vmul.f32 %v7682_v39, %v1935_v2  ;;  %v7684_v56 = vstv %s7674_s29  ;;  %v951_v48 = vsel %vm4051_vm5, %v5684_v47, 0.0  ;;  %v1828_v41 = vadd.f32 %v5675_v37, %v1782_v18  ;;  %v7699_v39 = vld [vmem:[#allocation213_spill] sm:$0xff]  ;;  %s6291_s5 = sld [smem:[#allocation9 + %s7833_s16]] }
 0x48b   : > { %v920_v63 = vmul.f32 %v7684_v56, %v915_v22  ;;  %v1834_v0 = vadd.f32 %v5688_v30, %v1788_v42  ;;  %v7685_v57 = vstv %s7676_s12  ;;  %v1749_v28 = vadd.f32 %v1747_v16, %v1717_v62  ;;  %v7691_v62 = vld [vmem:[#allocation186_spill] sm:$0xff]  ;;  %v1010_v31 = vpop.permute.xlu0 %1009  ;;  %v7700_v56 = vld [vmem:[#allocation132_spill] sm:$0xff]  ;;  %s7843_s20 = sld [smem:[#allocation177_spill]] }
 0x48c   : > { %v927_v10 = vmul.f32 %v7685_v57, %v915_v22  ;;  %v7686_v46 = vmov %v7668_v24  ;;  %v1794_v61 = vadd.f32 %v5639_v26, %v1748_v23  ;;  %v1755_v9 = vadd.f32 %v1753_v52, %v1723_v38  ;;  %v7692_v22 = vld [vmem:[#allocation206_spill] sm:$0xff]  ;;  %v7694_v23 = vld [vmem:[#allocation205_spill] sm:$0xff] }
 0x48d   : > { %v5902_v24 = vmul.f32 %v7686_v46, %v1935_v2  ;;  %v1829_v7 = vadd.f32 %v5711_v20, %v1783_v27  ;;  %v7687_v21 = vmov %v7678_v3  ;;  %v1835_v47 = vadd.f32 %v5721_v60, %v1789_v6  ;;  %v7693_v60 = vld [vmem:[#allocation187_spill] sm:$0xff]  ;;  %v7695_v52 = vld [vmem:[#allocation131_spill] sm:$0xff]  ;;  %v7696_v27 = vld [vmem:[#allocation133_spill] sm:$0xff] }
 0x48e   : > { %v5908_v4 = vmul.f32 %v7687_v21, %v1935_v2  ;;  %v7688_v1 = vstv %s7681_s9  ;;  %v7689_v18 = vstv %s7683_s0  ;;  %v7690_v40 = vmov %v7679_v33  ;;  %v7703_v21 = vld [vmem:[#allocation208_spill] sm:$0xff] }
 0x48f   : > { %v956_v37 = vmul.f32 %v7688_v1, %v951_v48  ;;  %v963_v30 = vmul.f32 %v7689_v18, %v951_v48  ;;  %v5917_v53 = vmul.f32 %v7690_v40, %v1935_v2  ;;  %v1800_v42 = vadd.f32 %v5648_v54, %v1754_v13  ;;  %v7697_v54 = vld [vmem:[#allocation207_spill] sm:$0xff]  ;;  %v7705_v18 = vld [vmem:[#allocation162_spill] sm:$0xff] }
 0x490   : > { %v922_v26 = vadd.f32 %v920_v63, %v7691_v62  ;;  %v916_v20 = vsel %vm4051_vm5, %v7692_v22, 0.0  ;;  %v929_v16 = vadd.f32 %v927_v10, %v7693_v60  ;;  %v1795_v38 = vadd.f32 %v7694_v23, %v1749_v28  ;;  %v7707_v22 = vld [vmem:[#allocation211_spill] sm:$0xff]  ;;  %v7711_v23 = vld [vmem:[#allocation165_spill] sm:$0xff] }
 0x491   : > { %v1852_v2 = vadd.f32 %v7695_v52, %v1828_v41  ;;  %v1858_v3 = vadd.f32 %v7696_v27, %v1834_v0  ;;  %v5931_v33 = vadd.f32 %v7697_v54, %v1794_v61  ;;  %v1801_v6 = vadd.f32 %v7698_v32, %v1755_v9  ;;  %v7702_v41 = vld [vmem:[#allocation134_spill] sm:$0xff]  ;;  %v7706_v9 = vld [vmem:[#allocation164_spill] sm:$0xff] }
 0x492   : > { %v952_v13 = vsel %vm4051_vm5, %v7699_v39, 0.0  ;;  %v1853_v63 = vadd.f32 %v7700_v56, %v1829_v7  ;;  %v958_v48 = vadd.f32 %v956_v37, %v922_v26  ;;  %v965_v57 = vadd.f32 %v963_v30, %v929_v16  ;;  %v5960_v26 = vpop.permute.xlu1 %1011  ;;  %v7715_v39 = vld [vmem:[#allocation180_spill] sm:$0xff] }
 0x493   : > { %v7701_v10 = vstv %s7674_s29  ;;  %v1859_v46 = vadd.f32 %v7702_v41, %v1835_v47  ;;  %v5942_v0 = vadd.f32 %v7703_v21, %v1800_v42  ;;  %v7704_v1 = vstv %s7676_s12  ;;  %v7717_v41 = vld [vmem:[#allocation189_spill] sm:$0xff]  ;;  %s6299_s29 = sld [smem:[#allocation15 + %s7837_s7]] }
 0x494   : > { %v921_v28 = vmul.f32 %v7701_v10, %v916_v20  ;;  %v928_v61 = vmul.f32 %v7704_v1, %v916_v20  ;;  %v1876_v40 = vadd.f32 %v7705_v18, %v1852_v2  ;;  %v1882_v62 = vadd.f32 %v7706_v9, %v1858_v3  ;;  %v7710_v20 = vld [vmem:[#allocation163_spill] sm:$0xff]  ;;  %v7712_v2 = vld [vmem:[#allocation210_spill] sm:$0xff]  ;;  %s7845_s12 = sld [smem:[#allocation50_spill]] }
 0x495   : > { %v5949_v60 = vadd.f32 %v7707_v22, %v1795_v38  ;;  %v5954_v7 = vsel %vm4051_vm5, %v5749_v29, 0.0  ;;  %v7708_v37 = vstv %s7681_s9  ;;  %v7709_v30 = vstv %s7683_s0  ;;  %v7713_v38 = vld [vmem:[#allocation212_spill] sm:$0xff]  ;;  %v7714_v29 = vld [vmem:[#allocation178_spill] sm:$0xff]  ;;  %s7850_s9 = sld [smem:[#allocation111_spill]] }
 0x496   : > { %v957_v47 = vmul.f32 %v7708_v37, %v952_v13  ;;  %v964_v42 = vmul.f32 %v7709_v30, %v952_v13  ;;  %v1877_v16 = vadd.f32 %v7710_v20, %v1853_v63  ;;  %v1883_v52 = vadd.f32 %v7711_v23, %v1859_v46  ;;  %v7716_v13 = vld [vmem:[#allocation188_spill] sm:$0xff]  ;;  %v1032_v63 = vpop.permute.xlu0 %1031 }
 0x497   : > { %v1908_v27 = vadd.f32 %v7712_v2, %v1876_v40  ;;  %v1914_v3 = vadd.f32 %v7713_v38, %v1882_v62  ;;  %v5967_v54 = vadd.f32 %v5758_v45, %v1801_v6  ;;  %v972_v32 = vadd.f32 %v7714_v29, %v958_v48  ;;  %v7732_v38 = vld [vmem:[#allocation179_spill] sm:$0xff] }
 0x498   : > { %v979_v56 = vadd.f32 %v7715_v39, %v965_v57  ;;  %v923_v10 = vadd.f32 %v921_v28, %v7716_v13  ;;  %v930_v46 = vadd.f32 %v928_v61, %v7717_v41  ;;  %v7718_v21 = vstv %s7511_s10  ;;  %s7731_s10 = sld [smem:[#allocation170_spill]]  ;;  %v7734_v41 = vld [vmem:[#allocation181_spill] sm:$0xff] }
 0x499   : > { %v1988_v1 = vmul.f32 %v7718_v21, %v5954_v7  ;;  %v5979_v45 = vsel %vm4051_vm5, %v5796_v59, 0.0  ;;  %v5984_v48 = vsel %vm4162_vm9, %v5785_v50, 0.0  ;;  %v5989_v28 = vsel %vm4055_vm6, %v5841_v49, 0.0 }
 0x49a   : > { %v959_v57 = vadd.f32 %v957_v47, %v923_v10  ;;  %v1940_v61 = vadd.f32 %v5836_v25, %v1908_v27  ;;  %v1946_v18 = vadd.f32 %v5848_v44, %v1914_v3  ;;  %v7722_v40 = vstv %s5244_s30  ;;  %v1034_v27 = vpop.permute.xlu1 %1033  ;;  %v1054_v39 = vpop.permute.xlu0 %1053  ;;  %s7793_s30 = sld [smem:[#allocation43_spill]] }
 0x49b   : > { %v1994_v59 = vmul.f32 %v7722_v40, %v5954_v7  ;;  %v966_v9 = vadd.f32 %v964_v42, %v930_v46  ;;  %v1909_v62 = vadd.f32 %v5815_v36, %v1877_v16  ;;  %v1915_v22 = vadd.f32 %v5820_v11, %v1883_v52  ;;  %s6319_s0 = sld [smem:[#allocation15 + %s7845_s12]] }
 0x49c   : > { %v7723_v50 = vstv %s5251_s2  ;;  %v7724_v47 = vstv %s5271_s15  ;;  %v7725_v30 = vstv %s5280_s8  ;;  %v7726_v44 = vmov %v7718_v21 }
 0x49d   : > { %v6001_v37 = vmul.f32 %v7723_v50, %v5954_v7  ;;  %v2038_v49 = vmul.f32 %v7724_v47, %v5979_v45  ;;  %v2044_v25 = vmul.f32 %v7725_v30, %v5979_v45  ;;  %v1989_v20 = vmul.f32 %v7726_v44, %v5984_v48 }
 0x49e   : > { %v7727_v42 = vmov %v7722_v40  ;;  %v7728_v11 = vstv %s7719_s4  ;;  %v7729_v23 = vstv %s7721_s21  ;;  %v6028_v2 = vsel %vm4162_vm9, %v5832_v19, 0.0 }
 0x49f   : > { %v1995_v36 = vmul.f32 %v7727_v42, %v5984_v48  ;;  %v6018_v16 = vmul.f32 %v7728_v11, %v5989_v28  ;;  %v6023_v52 = vmul.f32 %v7729_v23, %v5989_v28  ;;  %v973_v3 = vadd.f32 %v7732_v38, %v959_v57 }
 0x4a0   : > { %v6034_v29 = vsel %vm4055_vm6, %v5885_v8, 0.0  ;;  %v1990_v13 = vadd.f32 %v1988_v1, %v1940_v61  ;;  %v1996_v10 = vadd.f32 %v1994_v59, %v1946_v18  ;;  %v980_v46 = vadd.f32 %v7734_v41, %v966_v9  ;;  %v7739_v18 = vld [vmem:[#allocation182_spill] sm:$0xff]  ;;  %s7798_s15 = sadd.s32 50, %s7793_s30 }
 0x4a1   : > { %7733 = vst [vmem:[#allocation186_spill] sm:$0xff] %v6034_v29  ;;  %v1015_v19 = vsel %vm4055_vm6, %v1010_v31, 0.0  ;;  %v1941_v21 = vadd.f32 %v5889_v58, %v1909_v62  ;;  %v1947_v57 = vadd.f32 %v5902_v24, %v1915_v22  ;;  %v7735_v40 = vmov %v7724_v47  ;;  %v7742_v22 = vld [vmem:[#allocation183_spill] sm:$0xff]  ;;  %s6198_s8 = sld [smem:[#allocation8 + %s7798_s15]] }
 0x4a2   : > { %v2039_v50 = vmul.f32 %v7735_v40, %v6028_v2  ;;  %v7736_v8 = vmov %v7725_v30  ;;  %v6050_v61 = vsel %vm4178_vm10, %v5869_v55, 0.0  ;;  %v986_v59 = vadd.f32 %v7739_v18, %v972_v32  ;;  %v1056_v18 = vpop.permute.xlu1 %1055  ;;  %s7865_s15 = sld [smem:[#allocation62_spill]] }
 0x4a3   : > { %v2045_v47 = vmul.f32 %v7736_v8, %v6028_v2  ;;  %7738 = vst [vmem:[#allocation206_spill] sm:$0xff] %v6050_v61  ;;  %v7740_v31 = vstv %s7730_s19  ;;  %v7741_v24 = vstv %s7731_s10  ;;  %v6066_v62 = vsel %vm4178_vm10, %v5924_v34, 0.0 }
 0x4a4   : > { %v6056_v58 = vmul.f32 %v7740_v31, %v6034_v29  ;;  %v6061_v9 = vmul.f32 %v7741_v24, %v6034_v29  ;;  %v1037_v55 = vsel %vm4055_vm6, %v1032_v63, 0.0  ;;  %v993_v32 = vadd.f32 %v7742_v22, %v979_v56  ;;  %v7746_v31 = vld [vmem:[#allocation190_spill] sm:$0xff] }
 0x4a5   : > { %v7743_v30 = vstv %s7542_s18  ;;  %v2040_v42 = vadd.f32 %v2038_v49, %v1990_v13  ;;  %v2046_v11 = vadd.f32 %v2044_v25, %v1996_v10  ;;  %v7744_v23 = vstv %s7719_s4  ;;  %v1095_v10 = vpop.permute.xlu0 %1094  ;;  %s2210_s4 = sld [smem:[#allocation20 + %s7833_s16]] }
 0x4a6   : > { %v1020_v44 = vmul.f32 %v7743_v30, %v1015_v19  ;;  %v6076_v38 = vmul.f32 %v7744_v23, %v6050_v61  ;;  %v7745_v41 = vstv %s7721_s21  ;;  %v1991_v8 = vadd.f32 %v1989_v20, %v1941_v21  ;;  %v7750_v30 = vld [vmem:[#allocation184_spill] sm:$0xff]  ;;  %v7751_v20 = vld [vmem:[#allocation185_spill] sm:$0xff]  ;;  %s7860_s21 = smov 32  }
 0x4a7   : > { %v6081_v40 = vmul.f32 %v7745_v41, %v6050_v61  ;;  %v1997_v34 = vadd.f32 %v1995_v36, %v1947_v57  ;;  %v1000_v63 = vadd.f32 %v7746_v31, %v986_v59  ;;  %v7747_v24 = vstv %s5407_s22  ;;  %v7752_v57 = vld [vmem:[#allocation191_spill] sm:$0xff]  ;;  %v7753_v31 = vld [vmem:[#allocation135_spill] sm:$0xff] }
 0x4a8   : > { %v1027_v56 = vmul.f32 %v7747_v24, %v1015_v19  ;;  %v7748_v22 = vstv %s7730_s19  ;;  %v7749_v25 = vstv %s5421_s11  ;;  %v987_v23 = vadd.f32 %v7750_v30, %v973_v3  ;;  %s7861_s19 = smov 97  }
 0x4a9   : > { %v6089_v49 = vmul.f32 %v7748_v22, %v6066_v62  ;;  %v1042_v13 = vmul.f32 %v7749_v25, %v1037_v55  ;;  %v994_v21 = vadd.f32 %v7751_v20, %v980_v46  ;;  %v1016_v36 = vsel %vm4055_vm6, %v5960_v26, 0.0  ;;  %v7754_v22 = vld [vmem:[#allocation137_spill] sm:$0xff] }
 0x4aa   : > { %v1059_v19 = vsel %vm4055_vm6, %v1054_v39, 0.0  ;;  %v1007_v59 = vadd.f32 %v7752_v57, %v993_v32  ;;  %v1022_v41 = vadd.f32 %v1020_v44, %v1000_v63  ;;  %v2069_v24 = vadd.f32 %v7753_v31, %v2040_v42  ;;  %v7759_v42 = vld [vmem:[#allocation192_spill] sm:$0xff] }
 0x4ab   : > { %v2076_v25 = vadd.f32 %v7754_v22, %v2046_v11  ;;  %v1049_v3 = vmul.f32 %v7755_v43, %v1037_v55  ;;  %v1038_v46 = vsel %vm4055_vm6, %v1034_v27, 0.0  ;;  %v2041_v30 = vadd.f32 %v2039_v50, %v1991_v8  ;;  %v7760_v11 = vld [vmem:[#allocation193_spill] sm:$0xff]  ;;  %v1097_v27 = vpop.permute.xlu1 %1096  ;;  %v7767_v22 = vld [vmem:[#allocation139_spill] sm:$0xff] }
 0x4ac   : > { %v2047_v20 = vadd.f32 %v2045_v47, %v1997_v34  ;;  %v1029_v26 = vadd.f32 %v1027_v56, %v1007_v59  ;;  %v7756_v61 = vstv %s7542_s18  ;;  %v7757_v29 = vstv %s5407_s22  ;;  %s7783_s18 = sld [smem:[#allocation113_spill]]  ;;  %s7804_s22 = sadd.s32 52, %s7793_s30 }
 0x4ad   : > { %v1021_v39 = vmul.f32 %v7756_v61, %v1016_v36  ;;  %v1028_v1 = vmul.f32 %v7757_v29, %v1016_v36  ;;  %v7758_v32 = vstv %s5442_s26  ;;  %v1044_v63 = vadd.f32 %v1042_v13, %v1022_v41  ;;  %v7763_v61 = vld [vmem:[#allocation143_spill] sm:$0xff]  ;;  %v7764_v29 = vld [vmem:[#allocation145_spill] sm:$0xff]  ;;  %v1135_v36 = vpop.permute.xlu0 %1134  ;;  %v7766_v41 = vld [vmem:[#allocation136_spill] sm:$0xff] }
 0x4ae   : > { %v1064_v44 = vmul.f32 %v7758_v32, %v1059_v19  ;;  %v1001_v57 = vadd.f32 %v7759_v42, %v987_v23  ;;  %v1008_v31 = vadd.f32 %v7760_v11, %v994_v21  ;;  %v7761_v43 = vstv %s5451_s3 }
 0x4af   : > { %v1071_v55 = vmul.f32 %v7761_v43, %v1059_v19  ;;  %v7762_v50 = vstv %s5421_s11  ;;  %v1100_v8 = vsel %vm4051_vm5, %v1095_v10, 0.0  ;;  %v2099_v34 = vadd.f32 %v7763_v61, %v2069_v24  ;;  %v7773_v61 = vld [vmem:[#allocation158_spill] sm:$0xff] }
 0x4b0   : > { %v1043_v47 = vmul.f32 %v7762_v50, %v1038_v46  ;;  %v2106_v56 = vadd.f32 %v7764_v29, %v2076_v25  ;;  %v1051_v13 = vadd.f32 %v1049_v3, %v1029_v26  ;;  %v7765_v59 = vstv %s5432_s6  ;;  %s7807_s6 = sadd.s32 53, %s7793_s30 }
 0x4b1   : > { %v1050_v23 = vmul.f32 %v7765_v59, %v1038_v46  ;;  %v2070_v21 = vadd.f32 %v7766_v41, %v2041_v30  ;;  %v2077_v19 = vadd.f32 %v7767_v22, %v2047_v20  ;;  %v7768_v32 = vstv %s7731_s10  ;;  %s7862_s10 = smov 127  }
 0x4b2   : > { %v2177_v42 = vmul.f32 %v7768_v32, %v6066_v62  ;;  %v1023_v11 = vadd.f32 %v1021_v39, %v1001_v57  ;;  %v1030_v43 = vadd.f32 %v1028_v1, %v1008_v31  ;;  %v1066_v10 = vadd.f32 %v1064_v44, %v1044_v63  ;;  %v7771_v44 = vld [vmem:[#allocation144_spill] sm:$0xff]  ;;  %v7772_v31 = vld [vmem:[#allocation146_spill] sm:$0xff] }
 0x4b3   : > { %v1073_v24 = vadd.f32 %v1071_v55, %v1051_v13  ;;  %v7769_v50 = vstv %s5465_s28  ;;  %v1060_v3 = vsel %vm4055_vm6, %v1056_v18, 0.0  ;;  %v1140_v46 = vsel %vm4051_vm5, %v1135_v36, 0.0  ;;  %v1137_v13 = vpop.permute.xlu1 %1136 }
 0x4b4   : > { %v1105_v25 = vmul.f32 %v7769_v50, %v1100_v8  ;;  %v1045_v30 = vadd.f32 %v1043_v47, %v1023_v11  ;;  %v7770_v20 = vstv %s5471_s27  ;;  %v2135_v39 = vadd.f32 %v6018_v16, %v2099_v34  ;;  %v1175_v16 = vpop.permute.xlu0 %1174 }
 0x4b5   : > { %v1112_v26 = vmul.f32 %v7770_v20, %v1100_v8  ;;  %v2142_v1 = vadd.f32 %v6023_v52, %v2106_v56  ;;  %v1052_v57 = vadd.f32 %v1050_v23, %v1030_v43  ;;  %v2100_v63 = vadd.f32 %v7771_v44, %v2070_v21  ;;  %v7778_v52 = vld [vmem:[#allocation159_spill] sm:$0xff]  ;;  %v7779_v23 = vld [vmem:[#allocation160_spill] sm:$0xff] }
 0x4b6   : > { %v2107_v55 = vadd.f32 %v7772_v31, %v2077_v19  ;;  %v1864_v29 = vadd.f32 %v7773_v61, %v5931_v33  ;;  %v7774_v18 = vstv %s5442_s26  ;;  %v7775_v41 = vstv %s5451_s3  ;;  %v7780_v19 = vld [vmem:[#allocation161_spill] sm:$0xff]  ;;  %s7781_s3 = sld [smem:[#allocation101_spill]]  ;;  %v7784_v20 = vld [vmem:[#allocation167_spill] sm:$0xff] }
 0x4b7   : > { %v1065_v59 = vmul.f32 %v7774_v18, %v1060_v3  ;;  %v1072_v36 = vmul.f32 %v7775_v41, %v1060_v3  ;;  %v7776_v47 = vstv %s5479_s14  ;;  %v7777_v8 = vstv %s5491_s13  ;;  %s6220_s26 = sld [smem:[#allocation8 + %s7807_s6]] }
 0x4b8   : > { %v1145_v22 = vmul.f32 %v7776_v47, %v1140_v46  ;;  %v1152_v32 = vmul.f32 %v7777_v8, %v1140_v46  ;;  %v1107_v34 = vadd.f32 %v1105_v25, %v1066_v10  ;;  %v1865_v56 = vadd.f32 %v7778_v52, %v5949_v60  ;;  %s7873_s6 = sld [smem:[#allocation120_spill]] }
 0x4b9   : > { %v1870_v21 = vadd.f32 %v7779_v23, %v5942_v0  ;;  %v1871_v33 = vadd.f32 %v7780_v19, %v5967_v54  ;;  %v1114_v11 = vadd.f32 %v1112_v26, %v1073_v24  ;;  %v2171_v43 = vadd.f32 %v6056_v58, %v2135_v39  ;;  %v7782_v0 = vld [vmem:[#allocation166_spill] sm:$0xff] }
 0x4ba   : > { %v2178_v50 = vadd.f32 %v6061_v9, %v2142_v1  ;;  %v1101_v3 = vsel %vm4162_vm9, %v1097_v27, 0.0  ;;  %v2136_v10 = vadd.f32 %v6076_v38, %v2100_v63  ;;  %v2143_v60 = vadd.f32 %v6081_v40, %v2107_v55  ;;  %v7785_v27 = vld [vmem:[#allocation168_spill] sm:$0xff]  ;;  %v7786_v1 = vld [vmem:[#allocation169_spill] sm:$0xff]  ;;  %v1177_v40 = vpop.permute.xlu1 %1176 }
 0x4bb   : > { %v1888_v25 = vadd.f32 %v7782_v0, %v1864_v29  ;;  %v1180_v54 = vsel %vm4051_vm5, %v1175_v16, 0.0  ;;  %v1067_v24 = vadd.f32 %v1065_v59, %v1045_v30  ;;  %v1074_v58 = vadd.f32 %v1072_v36, %v1052_v57  ;;  %v7791_v36 = vld [vmem:[#allocation214_spill] sm:$0xff] }
 0x4bc   : > { %v1147_v46 = vadd.f32 %v1145_v22, %v1107_v34  ;;  %v1154_v9 = vadd.f32 %v1152_v32, %v1114_v11  ;;  %v1889_v26 = vadd.f32 %v7784_v20, %v1865_v56  ;;  %v1894_v39 = vadd.f32 %v7785_v27, %v1870_v21 }
 0x4bd   : > { %v1895_v38 = vadd.f32 %v7786_v1, %v1871_v33  ;;  %v7787_v44 = vstv %s5465_s28  ;;  %v7788_v31 = vstv %s5518_s25  ;;  %v1141_v30 = vsel %vm4162_vm9, %v1137_v13, 0.0  ;;  %s6214_s25 = sld [smem:[#allocation8 + %s7804_s22]] }
 0x4be   : > { %v1106_v63 = vmul.f32 %v7787_v44, %v1101_v3  ;;  %v1185_v55 = vmul.f32 %v7788_v31, %v1180_v54  ;;  %v7789_v61 = vstv %s5500_s1  ;;  %v7790_v29 = vstv %s7781_s3  ;;  %s7805_s28 = sld [smem:[#allocation173_spill]] }
 0x4bf   : > { %v2196_v57 = vadd.f32 %v7789_v61, %v2171_v43  ;;  %v2200_v18 = vadd.f32 %v7790_v29, %v2178_v50  ;;  %v2172_v59 = vadd.f32 %v6089_v49, %v2136_v10  ;;  %v2179_v41 = vadd.f32 %v2177_v42, %v2143_v60  ;;  %s7811_s1 = sld [smem:[#allocation174_spill]] }
 0x4c0   : > { %v1920_v47 = vadd.f32 %v7791_v36, %v1888_v25  ;;  %v7792_v22 = vstv %s7783_s18  ;;  %v7794_v32 = vstv %s5471_s27  ;;  %v1181_v13 = vsel %vm4162_vm9, %v1177_v40, 0.0  ;;  %v7809_v40 = vld [vmem:[#allocation195_spill] sm:$0xff]  ;;  %s6227_s27 = sld [smem:[#allocation9 + %s7793_s30]] }
 0x4c1   : > { %v1192_v8 = vmul.f32 %v7792_v22, %v1180_v54  ;;  %v1113_v16 = vmul.f32 %v7794_v32, %v1101_v3  ;;  %v2211_v34 = vsub.f32 0.0, %v2196_v57  ;;  %v2232_v52 = vsub.f32 0.0, %v2200_v18  ;;  %s7863_s3 = sld [smem:[#allocation102_spill]] }
 0x4c2   : > { %v1921_v56 = vadd.f32 %v5827_v17, %v1889_v26  ;;  %v1926_v49 = vadd.f32 %v5744_v51, %v1894_v39  ;;  %v1108_v42 = vadd.f32 %v1106_v63, %v1067_v24  ;;  %v7795_v23 = vstv %s5479_s14  ;;  %s7801_s14 = sld [smem:[#allocation172_spill]]  ;;  %v7806_v39 = vld [vmem:[#allocation194_spill] sm:$0xff] }
 0x4c3   : > { %v1146_v21 = vmul.f32 %v7795_v23, %v1141_v30  ;;  %v1187_v19 = vadd.f32 %v1185_v55, %v1147_v46  ;;  %v7796_v33 = vstv %s5491_s13  ;;  %v2213_v43 = vmul.f32 1.442695, %v2211_v34  ;;  %v1245_v46 = vpop.permute.xlu0 %1244  ;;  %s7803_s13 = sadd.s32 51, %s7793_s30  ;;  %s7864_s18 = sld [smem:[#allocation104_spill]] }
 0x4c4   : > { %v1153_v11 = vmul.f32 %v7796_v33, %v1141_v30  ;;  %v2234_v50 = vmul.f32 1.442695, %v2232_v52  ;;  %v1194_v3 = vadd.f32 %v1192_v8, %v1154_v9  ;;  %v7797_v10 = vmov %v7788_v31  ;;  %s6209_s11 = sld [smem:[#allocation8 + %s7803_s13]]  ;;  %v7820_v33 = vld [vmem:[#allocation201_spill] sm:$0xff] }
 0x4c5   : > { %v1186_v60 = vmul.f32 %v7797_v10, %v1181_v13  ;;  %v7799_v17 = vmov %v7789_v61  ;;  %v7800_v25 = vmov %v7790_v29  ;;  %v1927_v54 = vadd.f32 %v5882_v35, %v1895_v38  ;;  %s7868_s13 = sld [smem:[#allocation55_spill]] }
 0x4c6   : > { %v2197_v0 = vadd.f32 %v7799_v17, %v2172_v59  ;;  %v2201_v51 = vadd.f32 %v7800_v25, %v2179_v41  ;;  %v1115_v24 = vadd.f32 %v1113_v16, %v1074_v58  ;;  %v7802_v20 = vmov %v7792_v22  ;;  %s7870_s22 = sld [smem:[#allocation47_spill]] }
 0x4c7   : > { %v1193_v26 = vmul.f32 %v7802_v20, %v1181_v13  ;;  %3082 = vpow2.f32 %v2213_v43  ;;  %v1952_v9 = vadd.f32 %v5873_v12, %v1920_v47  ;;  %v1148_v27 = vadd.f32 %v1146_v21, %v1108_v42  ;;  %v1247_v47 = vpop.permute.xlu1 %1246  ;;  %v1267_v13 = vpop.permute.xlu0 %1266  ;;  %v7827_v20 = vld [vmem:[#allocation199_spill] sm:$0xff] }
 0x4c8   : > { %3084 = vpow2.f32 %v2234_v50  ;;  %v2212_v35 = vsub.f32 0.0, %v2197_v0  ;;  %v1953_v58 = vadd.f32 %v5908_v4, %v1921_v56  ;;  %v1203_v1 = vadd.f32 %v7806_v39, %v1187_v19  ;;  %v7824_v0 = vld [vmem:[#allocation198_spill] sm:$0xff] }
 0x4c9   : > { %v1155_v38 = vadd.f32 %v1153_v11, %v1115_v24  ;;  %v2233_v44 = vsub.f32 0.0, %v2201_v51  ;;  %v7808_v63 = vstv %s7801_s14  ;;  %v1210_v31 = vadd.f32 %v7809_v40, %v1194_v3  ;;  %s7867_s14 = sld [smem:[#allocation53_spill]] }
 0x4ca   : > { %v2006_v12 = vmul.f32 %v7808_v63, %v5954_v7  ;;  %v1188_v55 = vadd.f32 %v1186_v60, %v1148_v27  ;;  %v2215_v30 = vmul.f32 1.442695, %v2212_v35  ;;  %v7810_v4 = vstv %s5251_s2  ;;  %s7817_s2 = sld [smem:[#allocation98_spill]] }
 0x4cb   : > { %v2001_v61 = vmul.f32 %v7810_v4, %v5984_v48  ;;  %v1958_v57 = vadd.f32 %v5877_v5, %v1926_v49  ;;  %v1195_v29 = vadd.f32 %v1193_v26, %v1155_v38  ;;  %v2236_v18 = vmul.f32 1.442695, %v2233_v44  ;;  %v7814_v5 = vld [vmem:[#allocation196_spill] sm:$0xff]  ;;  %v7831_v44 = vld [vmem:[#allocation203_spill] sm:$0xff] }
 0x4cc   : > { %v7812_v59 = vstv %s7805_s28  ;;  %v1959_v7 = vadd.f32 %v5917_v53, %v1927_v54  ;;  %v2002_v36 = vadd.f32 %v6001_v37, %v1952_v9  ;;  %3086 = vpow2.f32 %v2215_v30  ;;  %v7816_v53 = vld [vmem:[#allocation197_spill] sm:$0xff]  ;;  %v7818_v37 = vld [vmem:[#allocation200_spill] sm:$0xff]  ;;  %v7828_v9 = vld [vmem:[#allocation202_spill] sm:$0xff]  ;;  %s7872_s28 = sld [smem:[#allocation118_spill]] }
 0x4cd   : > { %v2051_v41 = vmul.f32 %v7812_v59, %v5979_v45  ;;  %v7813_v22 = vmov %v7812_v59  ;;  %v2003_v32 = vadd.f32 %v2001_v61, %v1953_v58  ;;  %v1219_v16 = vadd.f32 %v7814_v5, %v1203_v1 }
 0x4ce   : > { %v2052_v8 = vmul.f32 %v7813_v22, %v6028_v2  ;;  %3088 = vpow2.f32 %v2236_v18  ;;  %v7815_v34 = vmov %v7808_v63  ;;  %v1226_v56 = vadd.f32 %v7816_v53, %v1210_v31  ;;  %v7840_v53 = vld [vmem:[#allocation204_spill] sm:$0xff] }
 0x4cf   : > { %v2007_v52 = vmul.f32 %v7815_v34, %v5984_v48  ;;  %v1204_v49 = vadd.f32 %v7818_v37, %v1188_v55  ;;  %v1276_v42 = vstv %s6198_s8  ;;  %v7819_v23 = vstv %s7811_s1  ;;  %v7832_v55 = vld [vmem:[#allocation138_spill] sm:$0xff]  ;;  %s7866_s8 = sld [smem:[#allocation63_spill]] }
 0x4d0   : > { %v2058_v21 = vmul.f32 %v7819_v23, %v5979_v45  ;;  %v2008_v19 = vadd.f32 %v2006_v12, %v1958_v57  ;;  %v1211_v11 = vadd.f32 %v7820_v33, %v1195_v29  ;;  %v1283_v43 = vstv %s6209_s11  ;;  %v1289_v12 = vpop.permute.xlu0 %1288  ;;  %v7835_v29 = vld [vmem:[#allocation140_spill] sm:$0xff]  ;;  %s7869_s11 = sld [smem:[#allocation46_spill]] }
 0x4d1   : > { %v7822_v50 = vmov %v7819_v23  ;;  %v2009_v48 = vadd.f32 %v2007_v52, %v1959_v7  ;;  %v2053_v10 = vadd.f32 %v2051_v41, %v2002_v36  ;;  %v1250_v60 = vsel %vm4055_vm6, %v1245_v46, 0.0  ;;  %s7876_s1 = sld [smem:[#allocation59_spill]] }
 0x4d2   : > { %v2059_v3 = vmul.f32 %v7822_v50, %v6028_v2  ;;  %v2054_v17 = vadd.f32 %v2052_v8, %v2003_v32  ;;  %v1235_v25 = vadd.f32 %v7824_v0, %v1219_v16  ;;  %v1298_v51 = vstv %s6214_s25  ;;  %v1269_v2 = vpop.permute.xlu1 %1268  ;;  %v7838_v8 = vld [vmem:[#allocation130_spill] sm:$0xff]  ;;  %s7871_s25 = sld [smem:[#allocation116_spill]] }
 0x4d3   : > { %v1305_v45 = vstv %s6220_s26  ;;  %v7826_v54 = vstv %s7817_s2  ;;  %v1242_v26 = vadd.f32 %v7827_v20, %v1226_v56  ;;  %v1220_v27 = vadd.f32 %v7828_v9, %v1204_v49  ;;  %v7846_v20 = vld [vmem:[#allocation142_spill] sm:$0xff]  ;;  %s7874_s26 = sld [smem:[#allocation121_spill]] }
 0x4d4   : > { %v2147_v24 = vmul.f32 %v7826_v54, %v5989_v28  ;;  %v1311_v35 = vstv %s6227_s27  ;;  %v7829_v58 = vstv %s7821_s23  ;;  %v2060_v46 = vadd.f32 %v2058_v21, %v2008_v19  ;;  %v3083_v40 = vpop.eup %3082  ;;  %s7875_s27 = sld [smem:[#allocation58_spill]] }
 0x4d5   : > { %v6270_v39 = vmul.f32 %v7829_v58, %v5989_v28  ;;  %v7830_v1 = vstv %s7823_s24  ;;  %v1227_v63 = vadd.f32 %v7831_v44, %v1211_v11  ;;  %v2061_v31 = vadd.f32 %v2059_v3, %v2009_v48  ;;  %v3085_v28 = vpop.eup %3084  ;;  %s6510_s24 = sld [smem:[#allocation17 + %s7863_s3]] }
 0x4d6   : > { %v1255_v38 = vmul.f32 %v7830_v1, %v1250_v60  ;;  %v2083_v30 = vadd.f32 %v7832_v55, %v2053_v10  ;;  %v7834_v4 = vstv %s7825_s17  ;;  %v1272_v57 = vsel %vm4055_vm6, %v1267_v13, 0.0  ;;  %v7839_v13 = vld [vmem:[#allocation141_spill] sm:$0xff]  ;;  %v1291_v19 = vpop.permute.xlu1 %1290  ;;  %v7851_v55 = vld [vmem:[#allocation148_spill] sm:$0xff]  ;;  %s6513_s17 = sld [smem:[#allocation17 + %s7864_s18]] }
 0x4d7   : > { %v1262_v61 = vmul.f32 %v7834_v4, %v1250_v60  ;;  %v2084_v18 = vadd.f32 %v7835_v29, %v2054_v17  ;;  %v1251_v7 = vsel %vm4178_vm10, %v1247_v47, 0.0  ;;  %v2217_v36 = vadd.f32 1.0, %v3083_v40  ;;  %v7841_v47 = vld [vmem:[#allocation147_spill] sm:$0xff]  ;;  %s6540_s3 = sld [smem:[#allocation17 + %s7873_s6]] }
 0x4d8   : > { %v1257_v59 = vadd.f32 %v1255_v38, %v1235_v25  ;;  %v1236_v32 = vadd.f32 %v7838_v8, %v1220_v27  ;;  %v1294_v5 = vsel %vm4055_vm6, %v1289_v12, 0.0  ;;  %v2238_v16 = vadd.f32 1.0, %v3085_v28  ;;  %s6564_s6 = sld [smem:[#allocation17 + %s7837_s7]] }
 0x4d9   : > { %v1264_v22 = vadd.f32 %v1262_v61, %v1242_v26  ;;  %v2090_v34 = vadd.f32 %v7839_v13, %v2060_v46  ;;  %v1277_v52 = vmul.f32 %v1276_v42, %v1272_v57  ;;  %v1243_v56 = vadd.f32 %v7840_v53, %v1227_v63  ;;  %v3087_v33 = vpop.eup %3086  ;;  %v7847_v46 = vld [vmem:[#allocation186_spill] sm:$0xff]  ;;  %s6543_s18 = sld [smem:[#allocation17 + %s7874_s26]] }
 0x4da   : > { %3090 = vrcp.f32 %v2217_v36  ;;  %v2113_v37 = vadd.f32 %v7841_v47, %v2083_v30  ;;  %v1284_v49 = vmul.f32 %v1283_v43, %v1272_v57  ;;  %v7842_v23 = vmov %v7830_v1  ;;  %v7852_v57 = vld [vmem:[#allocation150_spill] sm:$0xff]  ;;  %v7854_v36 = vld [vmem:[#allocation206_spill] sm:$0xff]  ;;  %s6567_s26 = sld [smem:[#allocation17 + %s7845_s12]] }
 0x4db   : > { %v1256_v21 = vmul.f32 %v7842_v23, %v1251_v7  ;;  %3092 = vrcp.f32 %v2238_v16  ;;  %v1279_v11 = vadd.f32 %v1277_v52, %v1257_v59  ;;  %v7844_v50 = vmov %v7834_v4  ;;  %v3089_v60 = vpop.eup %3088  ;;  %s7883_s7 = sld [smem:[#allocation155_spill]] }
 0x4dc   : > { %v1263_v3 = vmul.f32 %v7844_v50, %v1251_v7  ;;  %v1299_v48 = vmul.f32 %v1298_v51, %v1294_v5  ;;  %v1273_v10 = vsel %vm4178_vm10, %v1269_v2, 0.0  ;;  %v1286_v17 = vadd.f32 %v1284_v49, %v1264_v22  ;;  %v7849_v2 = vld [vmem:[#allocation149_spill] sm:$0xff] }
 0x4dd   : > { %v1258_v0 = vadd.f32 %v1256_v21, %v1236_v32  ;;  %v1306_v25 = vmul.f32 %v1305_v45, %v1294_v5  ;;  %v2218_v54 = vadd.f32 1.0, %v3087_v33  ;;  %v2091_v26 = vadd.f32 %v7846_v20, %v2061_v31 }
 0x4de   : > { %v1265_v9 = vadd.f32 %v1263_v3, %v1243_v56  ;;  %v1295_v27 = vsel %vm4178_vm10, %v1291_v19, 0.0  ;;  %v2239_v58 = vadd.f32 1.0, %v3089_v60  ;;  %v7848_v1 = vstv %s7843_s20  ;;  %s6519_s20 = sld [smem:[#allocation17 + %s7866_s8]] }
 0x4df   : > { %v2183_v38 = vmul.f32 %v7848_v1, %v7847_v46  ;;  %v2120_v44 = vadd.f32 %v7849_v2, %v2090_v34  ;;  %v1278_v63 = vmul.f32 %v1276_v42, %v1273_v10  ;;  %3094 = vrcp.f32 %v2218_v54  ;;  %s6549_s8 = sld [smem:[#allocation17 + %s7876_s1]] }
 0x4e0   : > { %v2149_v12 = vadd.f32 %v2147_v24, %v2113_v37  ;;  %v1301_v40 = vadd.f32 %v1299_v48, %v1279_v11  ;;  %v1285_v31 = vmul.f32 %v1283_v43, %v1273_v10  ;;  %3096 = vrcp.f32 %v2239_v58  ;;  %s7882_s1 = sld [smem:[#allocation57_spill]] }
 0x4e1   : > { %v2114_v30 = vadd.f32 %v7851_v55, %v2084_v18  ;;  %v1308_v4 = vadd.f32 %v1306_v25, %v1286_v17  ;;  %v1280_v61 = vadd.f32 %v1278_v63, %v1258_v0  ;;  %v1300_v42 = vmul.f32 %v1298_v51, %v1295_v27 }
 0x4e2   : > { %v2121_v28 = vadd.f32 %v7852_v57, %v2091_v26  ;;  %v1315_v29 = vstv %s6291_s5  ;;  %v1287_v59 = vadd.f32 %v1285_v31, %v1265_v9  ;;  %v1307_v24 = vmul.f32 %v1305_v45, %v1295_v27  ;;  %s6516_s5 = sld [smem:[#allocation17 + %s7865_s15]] }
 0x4e3   : > { %v7853_v7 = vstv %s7850_s9  ;;  %v7855_v22 = vstv %s7817_s2  ;;  %v2156_v18 = vadd.f32 %v6270_v39, %v2120_v44  ;;  %v2203_v32 = vstv %s6299_s29  ;;  %s7877_s2 = sld [smem:[#allocation44_spill]] }
 0x4e4   : > { %v2190_v43 = vmul.f32 %v7853_v7, %v7847_v46  ;;  %v2148_v8 = vmul.f32 %v7855_v22, %v7854_v36  ;;  %v7856_v51 = vstv %s7821_s23  ;;  %v2185_v16 = vadd.f32 %v2183_v38, %v2149_v12  ;;  %s7878_s23 = sld [smem:[#allocation45_spill]] }
 0x4e5   : > { %v2155_v5 = vmul.f32 %v7856_v51, %v7854_v36  ;;  %v1312_v13 = vadd.f32 %v1311_v35, %v1301_v40  ;;  %v7857_v34 = vmov %v7848_v1  ;;  %v1316_v53 = vadd.f32 %v1315_v29, %v1308_v4  ;;  %s6522_s29 = sld [smem:[#allocation17 + %s7867_s14]] }
 0x4e6   : > { %v2184_v45 = vmul.f32 %v7857_v34, %v6066_v62  ;;  %v2150_v52 = vadd.f32 %v2148_v8, %v2114_v30  ;;  %v1302_v56 = vadd.f32 %v1300_v42, %v1280_v61  ;;  %v7858_v47 = vmov %v7853_v7  ;;  %s6525_s9 = sld [smem:[#allocation17 + %s7868_s13]] }
 0x4e7   : > { %v2191_v37 = vmul.f32 %v7858_v47, %v6066_v62  ;;  %v2157_v49 = vadd.f32 %v2155_v5, %v2121_v28  ;;  %v1309_v23 = vadd.f32 %v1307_v24, %v1287_v59  ;;  %v3091_v39 = vpop.eup %3090  ;;  %v2192_v21 = vadd.f32 %v2190_v43, %v2156_v18  ;;  %s6546_s15 = sld [smem:[#allocation17 + %s7875_s27]] }
 0x4e8   : > { %v3093_v19 = vpop.eup %3092  ;;  %v2207_v33 = vstv %s6319_s0  ;;  %v2221_v11 = vmul.f32 %v3091_v39, %v1312_v13  ;;  %v2204_v50 = vadd.f32 %v2203_v32, %v2185_v16  ;;  %v2186_v3 = vadd.f32 %v2184_v45, %v2150_v52  ;;  %s6528_s0 = sld [smem:[#allocation17 + %s7869_s11]] }
 0x4e9   : > { %v2242_v48 = vmul.f32 %v3093_v19, %v1316_v53  ;;  %v1313_v10 = vadd.f32 %v1311_v35, %v1302_v56  ;;  %v2193_v60 = vadd.f32 %v2191_v37, %v2157_v49  ;;  %v1317_v17 = vadd.f32 %v1315_v29, %v1309_v23  ;;  %s7880_s14 = sld [smem:[#allocation52_spill]] }
 0x4ea   : > { %v2223_v0 = vadd.f32 %v2221_v11, %v2204_v50  ;;  %v2227_v25 = vstv %s2210_s4  ;;  %v2208_v54 = vadd.f32 %v2207_v33, %v2192_v21  ;;  %v2205_v9 = vadd.f32 %v2203_v32, %v2186_v3  ;;  %s7879_s4 = sld [smem:[#allocation51_spill]] }
 0x4eb   : > { %v2209_v1 = vadd.f32 %v2207_v33, %v2193_v60  ;;  %s6552_s13 = sld [smem:[#allocation17 + %s7877_s2]] }
 0x4ec   : > { %v3095_v20 = vpop.eup %3094  ;;  %v2228_v27 = vmul.f32 %v2227_v25, %v2223_v0  ;;  %v2244_v58 = vadd.f32 %v2242_v48, %v2208_v54  ;;  %vm2225_vm15 = vcmp.ge.f32.partialorder %v2223_v0, 0.0  ;;  %s6555_s11 = sld [smem:[#allocation17 + %s7878_s23]] }
 0x4ed   : > { %v3097_v26 = vpop.eup %3096  ;;  %v2222_v62 = vmul.f32 %v3095_v20, %v1313_v10  ;;  %s7884_s23 = sld [smem:[#allocation157_spill]] }
 0x4ee   : > { %v2243_v46 = vmul.f32 %v3097_v26, %v1317_v17  ;;  %v6353_v63 = vsel %vm2225_vm15, %v2223_v0, %v2228_v27  ;;  %v2248_v35 = vmul.f32 %v2244_v58, %v2227_v25  ;;  %vm2246_vm12 = vcmp.ge.f32.partialorder %v2244_v58, 0.0 }
 0x4ef   : > { %v2224_v38 = vadd.f32 %v2222_v62, %v2205_v9  ;;  %v2252_v31 = vrot.slane %v6353_v63, 7  ;;  %v2524_v43 = vrot.slane %v6353_v63, 1  ;;  %s6581_s2 = sld [smem:[#allocation17 + %s7880_s14]] }
 0x4f0   : > { %v2245_v2 = vadd.f32 %v2243_v46, %v2209_v1  ;;  %v6361_v4 = vsel %vm2246_vm12, %v2244_v58, %v2248_v35  ;;  %s6572_s27 = sld [smem:[#allocation17 + %s7879_s4]] }
 0x4f1   : > { %vm2226_vm11 = vcmp.ge.f32.partialorder %v2224_v38, 0.0  ;;  %v2229_v44 = vmul.f32 %v2227_v25, %v2224_v38  ;;  %v2286_v29 = vrot.slane %v6361_v4, 7  ;;  %v2562_v18 = vrot.slane %v6361_v4, 1  ;;  %s7893_s14 = sld [smem:[#allocation112_spill]] }
 0x4f2   : > { %vm2247_vm13 = vcmp.ge.f32.partialorder %v2245_v2, 0.0  ;;  %v2249_v12 = vmul.f32 %v2245_v2, %v2227_v25 }
 0x4f3   : > { %v6355_v40 = vsel %vm2226_vm11, %v2224_v38, %v2229_v44 }
 0x4f4   : > { %v2253_v55 = vrot.slane %v6355_v40, 7  ;;  %v6359_v30 = vsel %vm2247_vm13, %v2245_v2, %v2249_v12  ;;  %v2525_v7 = vrot.slane %v6355_v40, 1 }
 0x4f5   : > { %v2287_v28 = vrot.slane %v6359_v30, 7  ;;  %v2563_v8 = vrot.slane %v6359_v30, 1 }
 0x4f6   : > { %v6365_v42 = vsel %vm629_vm0, %v2253_v55, %v2252_v31  ;;  %v6369_v57 = vsel %vm629_vm0, %v2252_v31, %v2253_v55  ;;  %v6401_v36 = vsel %vm1077_vm1, %v2524_v43, %v2525_v7  ;;  %v6405_v22 = vsel %vm1077_vm1, %v2525_v7, %v2524_v43 }
 0x4f7   : > { %2256 = vrot.lane.b32.xlu0 %v6365_v42, %s7860_s21  ;;  %2259 = vrot.lane.b32.xlu1 %v6369_v57, %s7860_s21  ;;  %v6379_v59 = vsel %vm629_vm0, %v2287_v28, %v2286_v29  ;;  %v6383_v24 = vsel %vm629_vm0, %v2286_v29, %v2287_v28  ;;  %v6415_v32 = vsel %vm1077_vm1, %v2562_v18, %v2563_v8  ;;  %vm2678_vm0 = vcmask 261120  }
 0x4f8   : > { %v6419_v51 = vsel %vm1077_vm1, %v2563_v8, %v2562_v18 }
 0x4fb   : > { %2290 = vrot.lane.b32.xlu0 %v6379_v59, %s7860_s21  ;;  %2293 = vrot.lane.b32.xlu1 %v6383_v24, %s7860_s21 }
 0x4ff   : > { %2392 = vrot.lane.b32.xlu0 %v6353_v63, %s7860_s21  ;;  %2395 = vrot.lane.b32.xlu1 %v6355_v40, %s7860_s21 }
 0x503   : > { %2426 = vrot.lane.b32.xlu0 %v6361_v4, %s7860_s21  ;;  %2429 = vrot.lane.b32.xlu1 %v6359_v30, %s7860_s21 }
 0x507   : > { %2528 = vrot.lane.b32.xlu0 %v6401_v36, %s7860_s21  ;;  %2531 = vrot.lane.b32.xlu1 %v6405_v22, %s7860_s21 }
 0x50b   : > { %2566 = vrot.lane.b32.xlu0 %v6415_v32, %s7860_s21  ;;  %2569 = vrot.lane.b32.xlu1 %v6419_v51, %s7860_s21 }
 0x569   : > { %v2257_v5 = vpop.permute.xlu0 %2256  ;;  %v2260_v16 = vpop.permute.xlu1 %2259 }
 0x56a   : > { %v2258_v13 = vsel %vm632_vm2, %v2257_v5, %v6365_v42  ;;  %v2261_v34 = vsel %vm632_vm2, %v2260_v16, %v6369_v57  ;;  %v2327_v16 = vstv %s6522_s29  ;;  %s7888_s29 = sld [smem:[#allocation108_spill]] }
 0x56b   : > { %2262 = vrot.lane.b32.xlu0 %v2258_v13, %s7860_s21  ;;  %2264 = vrot.lane.b32.xlu1 %v2261_v34, %s7860_s21  ;;  %v2333_v13 = vstv %s6525_s9  ;;  %v2461_v34 = vstv %s6516_s5  ;;  %s6598_s5 = sld [smem:[#allocation17 + %s7882_s1]] }
 0x56c   : > { %v6617_v61 = vmul.f32 %v2461_v34, %v6355_v40  ;;  %s6637_s9 = sld [smem:[#allocation17 + %s7884_s23]] }
 0x56d   : > { %v2291_v45 = vpop.permute.xlu0 %2290  ;;  %v2294_v52 = vpop.permute.xlu1 %2293 }
 0x56e   : > { %v2292_v53 = vsel %vm632_vm2, %v2291_v45, %v6379_v59  ;;  %v2295_v56 = vsel %vm632_vm2, %v2294_v52, %v6383_v24  ;;  %v2467_v45 = vstv %s6519_s20  ;;  %s7887_s20 = sld [smem:[#allocation95_spill]] }
 0x56f   : > { %2296 = vrot.lane.b32.xlu0 %v2292_v53, %s7860_s21  ;;  %2298 = vrot.lane.b32.xlu1 %v2295_v56, %s7860_s21  ;;  %v2341_v56 = vstv %s6528_s0 }
 0x571   : > { %v2393_v47 = vpop.permute.xlu0 %2392  ;;  %v2396_v37 = vpop.permute.xlu1 %2395 }
 0x572   : > { %v2394_v49 = vsel %vm632_vm2, %v2393_v47, %v6353_v63  ;;  %v2397_v23 = vsel %vm632_vm2, %v2396_v37, %v6355_v40  ;;  %v2473_v37 = vstv %s6510_s24  ;;  %s7885_s24 = sld [smem:[#allocation94_spill]] }
 0x573   : > { %2398 = vrot.lane.b32.xlu0 %v2394_v49, %s7860_s21  ;;  %2400 = vrot.lane.b32.xlu1 %v2397_v23, %s7860_s21  ;;  %v2479_v49 = vstv %s6513_s17  ;;  %v2324_v23 = vsel %vm606_vm3, %v6365_v42, 0.0  ;;  %s6614_s17 = sld [smem:[#allocation17 + %s7883_s7]] }
 0x574   : > { %s6661_s4 = sld [smem:[#allocation17 + %s7887_s20]] }
 0x575   : > { %v2427_v39 = vpop.permute.xlu0 %2426  ;;  %v2430_v21 = vpop.permute.xlu1 %2429  ;;  %s6822_s7 = sld [smem:[#allocation18 + %s7793_s30]] }
 0x576   : > { %v2428_v19 = vsel %vm632_vm2, %v2427_v39, %v6361_v4  ;;  %v2431_v33 = vsel %vm632_vm2, %v2430_v21, %v6359_v30  ;;  %s7904_s20 = sld [smem:[#allocation227_spill]] }
 0x577   : > { %2432 = vrot.lane.b32.xlu0 %v2428_v19, %s7860_s21  ;;  %2434 = vrot.lane.b32.xlu1 %v2431_v33, %s7860_s21  ;;  %v7140_v19 = vstv %s6540_s3  ;;  %v2338_v33 = vsel %vm606_vm3, %v6379_v59, 0.0 }
 0x578   : > { %s6647_s0 = sld [smem:[#allocation17 + %s7885_s24]] }
 0x579   : > { %v2529_v11 = vpop.permute.xlu0 %2528  ;;  %v2532_v50 = vpop.permute.xlu1 %2531 }
 0x57a   : > { %v2530_v3 = vsel %vm632_vm2, %v2529_v11, %v6401_v36  ;;  %v2533_v48 = vsel %vm632_vm2, %v2532_v50, %v6405_v22  ;;  %v6601_v11 = vmul.f32 %v2461_v34, %v6353_v63  ;;  %v6604_v50 = vmul.f32 %v2467_v45, %v6353_v63 }
 0x57b   : > { %2534 = vrot.lane.b32.xlu0 %v2530_v3, %s7860_s21  ;;  %2536 = vrot.lane.b32.xlu1 %v2533_v48, %s7860_s21  ;;  %v7139_v3 = vstv %s6543_s18  ;;  %v6611_v48 = vmul.f32 %v2479_v49, %v6361_v4 }
 0x57d   : > { %v2567_v10 = vpop.permute.xlu0 %2566  ;;  %v2570_v60 = vpop.permute.xlu1 %2569 }
 0x57e   : > { %v2568_v17 = vsel %vm632_vm2, %v2567_v10, %v6415_v32  ;;  %v2571_v0 = vsel %vm632_vm2, %v2570_v60, %v6419_v51  ;;  %v6628_v60 = vsel %vm609_vm4, %v6419_v51, 0.0 }
 0x57f   : > { %2572 = vrot.lane.b32.xlu0 %v2568_v17, %s7860_s21  ;;  %2574 = vrot.lane.b32.xlu1 %v2571_v0, %s7860_s21  ;;  %s6531_s21 = sld [smem:[#allocation17 + %s7870_s22]]  ;;  %v6634_v0 = vmul.f32 %v2327_v16, %v2324_v23 }
 0x580   : > { %s6558_s22 = sld [smem:[#allocation17 + %s7793_s30]] }
 0x581   : > { %s7900_s30 = sld [smem:[#allocation34_spill]] }
 0x585   : > { %v2347_v47 = vstv %s6531_s21  ;;  %s6664_s21 = sld [smem:[#allocation17 + %s7888_s29]] }
 0x5dd   : > { %v2263_v25 = vpop.permute.xlu0 %2262  ;;  %v2265_v54 = vpop.permute.xlu1 %2264 }
 0x5de   : > { %v2266_v44 = vsel %vm632_vm2, %v2263_v25, %v6365_v42  ;;  %v2267_v35 = vsel %vm632_vm2, %v2265_v54, %v6369_v57  ;;  %v6608_v42 = vmul.f32 %v2473_v37, %v6361_v4  ;;  %v2329_v25 = vmul.f32 %v2327_v16, %v6369_v57 }
 0x5df   : > { %v6644_v54 = vmul.f32 %v2341_v56, %v2338_v33  ;;  %v2387_v16 = vstv %s6598_s5 }
 0x5e1   : > { %v2297_v20 = vpop.permute.xlu0 %2296  ;;  %v2299_v26 = vpop.permute.xlu1 %2298 }
 0x5e2   : > { %v2300_v12 = vsel %vm632_vm2, %v2297_v20, %v6379_v59  ;;  %v2301_v31 = vsel %vm632_vm2, %v2299_v26, %v6383_v24  ;;  %v6620_v59 = vmul.f32 %v2467_v45, %v6355_v40  ;;  %v6649_v20 = vmul.f32 %v2347_v47, %v2338_v33 }
 0x5e3   : > { %v6652_v26 = vmul.f32 %v2341_v56, %v6383_v24 }
 0x5e5   : > { %v2399_v62 = vpop.permute.xlu0 %2398  ;;  %v2401_v9 = vpop.permute.xlu1 %2400 }
 0x5e6   : > { %v2402_v27 = vsel %vm632_vm2, %v2399_v62, %v6353_v63  ;;  %v2403_v58 = vsel %vm632_vm2, %v2401_v9, %v6355_v40  ;;  %v2601_v63 = vsel %vm609_vm4, %v6405_v22, 0.0  ;;  %v6640_v40 = vmul.f32 %v2473_v37, %v6359_v30 }
 0x5e7   : > { %2406 = vrot.lane.b32.xlu0 %v2402_v27, %s7861_s19  ;;  %2408 = vrot.lane.b32.xlu1 %v2403_v58, %s7861_s19  ;;  %v6655_v62 = vmul.f32 %v2347_v47, %v6383_v24  ;;  %v6658_v9 = vmul.f32 %v2479_v49, %v6359_v30  ;;  %v2493_v47 = vstv %s6614_s17 }
 0x5e9   : > { %v2433_v46 = vpop.permute.xlu0 %2432  ;;  %v2435_v1 = vpop.permute.xlu1 %2434 }
 0x5ea   : > { %v2436_v38 = vsel %vm632_vm2, %v2433_v46, %v6361_v4  ;;  %v2437_v2 = vsel %vm632_vm2, %v2435_v1, %v6359_v30  ;;  %v2415_v30 = vstv %s6546_s15  ;;  %v2421_v46 = vstv %s6549_s8  ;;  %s7894_s15 = sld [smem:[#allocation82_spill]] }
 0x5eb   : > { %2440 = vrot.lane.b32.xlu0 %v2436_v38, %s7861_s19  ;;  %2442 = vrot.lane.b32.xlu1 %v2437_v2, %s7861_s19  ;;  %s7895_s8 = sld [smem:[#allocation84_spill]] }
 0x5ed   : > { %v2535_v55 = vpop.permute.xlu0 %2534  ;;  %v2537_v28 = vpop.permute.xlu1 %2536 }
 0x5ee   : > { %v2538_v29 = vsel %vm632_vm2, %v2535_v55, %v6401_v36  ;;  %v2539_v7 = vsel %vm632_vm2, %v2537_v28, %v6405_v22  ;;  %v2334_v22 = vmul.f32 %v2333_v13, %v2324_v23  ;;  %v2455_v28 = vstv %s6555_s11 }
 0x5ef   : > { %2270 = vrot.lane.b32.xlu0 %v2266_v44, %s7861_s19  ;;  %2272 = vrot.lane.b32.xlu1 %v2267_v35, %s7861_s19 }
 0x5f1   : > { %v2573_v43 = vpop.permute.xlu0 %2572  ;;  %v2575_v8 = vpop.permute.xlu1 %2574  ;;  %s6779_s11 = sld [smem:[#allocation17 + %s7895_s8]] }
 0x5f2   : > { %v2576_v18 = vsel %vm632_vm2, %v2573_v43, %v6415_v32  ;;  %v2577_v5 = vsel %vm632_vm2, %v2575_v8, %v6419_v51  ;;  %v2335_v51 = vmul.f32 %v2333_v13, %v6369_v57  ;;  %v2319_v43 = vstv %s6567_s26  ;;  %s7897_s26 = sld [smem:[#allocation87_spill]] }
 0x5f3   : > { %2304 = vrot.lane.b32.xlu0 %v2300_v12, %s7861_s19  ;;  %2306 = vrot.lane.b32.xlu1 %v2301_v31, %s7861_s19  ;;  %v2361_v8 = vstv %s6572_s27 }
 0x5f7   : > { %2352 = vrot.lane.b32.xlu0 %v2266_v44, %s7862_s10  ;;  %2354 = vrot.lane.b32.xlu1 %v2267_v35, %s7862_s10  ;;  %v2449_v44 = vstv %s6552_s13  ;;  %v2279_v35 = vstv %s6558_s22  ;;  %s6768_s13 = sld [smem:[#allocation17 + %s7894_s15]] }
 0x5f8   : > { %s6809_s1 = sld [smem:[#allocation17 + %s7897_s26]] }
 0x5fb   : > { %2372 = vrot.lane.b32.xlu0 %v2300_v12, %s7862_s10  ;;  %2374 = vrot.lane.b32.xlu1 %v2301_v31, %s7862_s10 }
 0x5ff   : > { %2484 = vrot.lane.b32.xlu0 %v2402_v27, %s7862_s10  ;;  %2486 = vrot.lane.b32.xlu1 %v2403_v58, %s7862_s10 }
 0x603   : > { %2504 = vrot.lane.b32.xlu0 %v2436_v38, %s7862_s10  ;;  %2506 = vrot.lane.b32.xlu1 %v2437_v2, %s7862_s10  ;;  %v6681_v2 = vmul.f32 %v7140_v19, %v6415_v32 }
 0x607   : > { %2542 = vrot.lane.b32.xlu0 %v2538_v29, %s7861_s19  ;;  %2544 = vrot.lane.b32.xlu1 %v2539_v7, %s7861_s19 }
 0x60b   : > { %2580 = vrot.lane.b32.xlu0 %v2576_v18, %s7861_s19  ;;  %2582 = vrot.lane.b32.xlu1 %v2577_v5, %s7861_s19  ;;  %s6534_s19 = sld [smem:[#allocation17 + %s7871_s25]] }
 0x60c   : > { %s6561_s25 = sld [smem:[#allocation17 + %s7833_s16]] }
 0x60f   : > { %2628 = vrot.lane.b32.xlu0 %v2538_v29, %s7862_s10  ;;  %2630 = vrot.lane.b32.xlu1 %v2539_v7, %s7862_s10  ;;  %v2313_v7 = vstv %s6564_s6  ;;  %s7896_s6 = sld [smem:[#allocation86_spill]] }
 0x611   : > { %v2603_v39 = vstv %s6534_s19  ;;  %s7890_s19 = sld [smem:[#allocation109_spill]] }
 0x612   : > { %v6667_v57 = vmul.f32 %v2603_v39, %v6401_v36  ;;  %v6672_v58 = vmul.f32 %v2603_v39, %v2601_v63  ;;  %v2283_v12 = vstv %s6561_s25 }
 0x613   : > { %2648 = vrot.lane.b32.xlu0 %v2576_v18, %s7862_s10  ;;  %2650 = vrot.lane.b32.xlu1 %v2577_v5, %s7862_s10  ;;  %s6537_s10 = sld [smem:[#allocation17 + %s7872_s28]]  ;;  %v2367_v18 = vstv %s6581_s2 }
 0x614   : > { %s7881_s28 = sld [smem:[#allocation56_spill]] }
 0x615   : > { %s6806_s27 = sld [smem:[#allocation17 + %s7896_s6]] }
 0x616   : > { %s6835_s2 = sld [smem:[#allocation18 + %s7833_s16]] }
 0x617   : > { %s6724_s22 = sld [smem:[#allocation17 + %s7890_s19]] }
 0x618   : > { %s7901_s16 = sld [smem:[#allocation39_spill]] }
 0x619   : > { %v2609_v21 = vstv %s6537_s10  ;;  %s7891_s10 = sld [smem:[#allocation110_spill]] }
 0x61a   : > { %s6589_s12 = sld [smem:[#allocation17 + %s7881_s28]]  ;;  %v6670_v27 = vmul.f32 %v2609_v21, %v6401_v36  ;;  %v6674_v24 = vmul.f32 %v2609_v21, %v2601_v63  ;;  %v6686_v36 = vmul.f32 %v7139_v3, %v6415_v32  ;;  %v2499_v63 = vstv %s6637_s9 }
 0x61b   : > { %s6734_s28 = sld [smem:[#allocation17 + %s7893_s14]] }
 0x61c   : > { %v2673_v41 = vstv %s6835_s2  ;;  %s7905_s9 = sld [smem:[#allocation37_spill]] }
 0x61f   : > { %s6727_s25 = sld [smem:[#allocation17 + %s7891_s10]] }
 0x620   : > { %v2381_v5 = vstv %s6589_s12  ;;  %s7903_s12 = sshll.u32 %s7901_s16, 5 }
 0x621   : > { %s586_s23 = scalar_lea.vmem [#allocation21], %s7903_s12 }
 0x622   : > { %s2701_s5 = sshll.u32 %s586_s23, 4  ;;  %p7906_p6 = scmp.ne.s32.totalorder %s7905_s9, 0  ;;  %s6859_s5 = int_to_ptr.vmem [resolvable:$true] %s2701_s5 }
 0x659   : > { %v2407_v52 = vpop.permute.xlu0 %2406  ;;  %v6576_v53 = vpop.permute.xlu1 %2408 }
 0x65a   : > { %v2412_v32 = vsel %vm4051_vm5, %v2407_v52, 0.0 }
 0x65d   : > { %v6630_v4 = vpop.permute.xlu0 %2440  ;;  %v6632_v17 = vpop.permute.xlu1 %2442 }
 0x661   : > { %v2271_v1 = vpop.permute.xlu0 %2270  ;;  %v2273_v38 = vpop.permute.xlu1 %2272 }
 0x662   : > { %v2276_v55 = vsel %vm4070_vm7, %v2271_v1, 0.0  ;;  %v2277_v29 = vsel %vm4051_vm5, %v2273_v38, 0.0  ;;  %v2513_v1 = vstv %s6647_s0  ;;  %v2519_v38 = vstv %s6661_s4  ;;  %s2687_s0 = scalar_lea.sflag [#allocation4], %s7901_s16  ;;  %s3299_s4 = scalar_lea.vmem %s6859_s5, 512 }
 0x663   : > { %v2280_v13 = vmul.f32 %v2279_v35, %v2276_v55  ;;  %v2284_v34 = vmul.f32 %v2283_v12, %v2276_v55  ;;  %v2281_v37 = vmul.f32 %v2279_v35, %v2277_v29  ;;  %v2285_v49 = vmul.f32 %v2283_v12, %v2277_v29  ;;  %p3300_p5 = scmp.ne.s32.totalorder %s6859_s5, %s3299_s4 }
 0x664   : > { %v2551_v55 = vstv %s6664_s21  ;;  %s3405_s21 = smov [#allocation21]  }
 0x665   : > { %v2305_v45 = vpop.permute.xlu0 %2304  ;;  %v2307_v56 = vpop.permute.xlu1 %2306  ;;  %p3301_p13 = pnand %p3300_p5, %p7906_p6  ;;  %s3303_s19 = sshll.u32 %s3405_s21, 4  ;;  %s3304_s19 = int_to_ptr.vmem [resolvable:$false] %s3303_s19 }
 0x666   : > { %v2310_v23 = vsel %vm4070_vm7, %v2305_v45, 0.0  ;;  %v2311_v39 = vsel %vm4051_vm5, %v2307_v56, 0.0  ;;  %v2416_v45 = vmul.f32 %v2415_v30, %v2412_v32  ;;  %v2413_v56 = vsel %vm4051_vm5, %v6576_v53, 0.0  ;;  %s3305_s10 = scalar_lea.vmem %s3304_s19, 1024  ;;  %p3306_p8 = scmp.lt.s32.totalorder %s6859_s5, %s3304_s19 }
 0x667   : > { %v2314_v21 = vmul.f32 %v2313_v7, %v2310_v23  ;;  %v2320_v33 = vmul.f32 %v2319_v43, %v2310_v23  ;;  %v2315_v10 = vmul.f32 %v2313_v7, %v2311_v39  ;;  %v2321_v52 = vmul.f32 %v2319_v43, %v2311_v39  ;;  %p3302_p7 = pneg %p3301_p13  ;;  %p3307_p11 = scmp.lt.s32.totalorder %s3305_s10, %s3299_s4 }
 0x668   : > { %v2423_v7 = vmul.f32 %v2421_v46, %v2413_v56 }
 0x669   : > { %v2316_v3 = vadd.f32 %v2314_v21, %v2280_v13  ;;  %v2322_v19 = vadd.f32 %v2320_v33, %v2284_v34  ;;  %v2317_v35 = vadd.f32 %v2315_v10, %v2281_v37  ;;  %v2323_v12 = vadd.f32 %v2321_v52, %v2285_v49  ;;  %v2353_v31 = vpop.permute.xlu0 %2352  ;;  %v2355_v29 = vpop.permute.xlu1 %2354  ;;  %p3308_p0 = por %p3307_p11, %p3306_p8 }
 0x66a   : > { %v2358_v43 = vsel %vm4101_vm8, %v2353_v31, 0.0  ;;  %v2359_v23 = vsel %vm4055_vm6, %v2355_v29, 0.0  ;;  %v2422_v29 = vmul.f32 %v2421_v46, %v2412_v32 }
 0x66b   : > { %v2330_v13 = vadd.f32 %v6634_v0, %v2316_v3  ;;  %v2336_v34 = vadd.f32 %v2334_v22, %v2322_v19  ;;  %v2331_v37 = vadd.f32 %v2329_v25, %v2317_v35  ;;  %v2337_v49 = vadd.f32 %v2335_v51, %v2323_v12  ;;  %p3309_p1 = pnand %p3308_p0, %p3302_p7 }
 0x66c   : > { %v2362_v39 = vmul.f32 %v2361_v8, %v2358_v43  ;;  %v2368_v21 = vmul.f32 %v2367_v18, %v2358_v43  ;;  %v2363_v33 = vmul.f32 %v2361_v8, %v2359_v23  ;;  %v2369_v10 = vmul.f32 %v2367_v18, %v2359_v23 }
 0x66d   : > { %v2344_v53 = vadd.f32 %v6644_v54, %v2330_v13  ;;  %v2350_v52 = vadd.f32 %v6649_v20, %v2336_v34  ;;  %v2345_v31 = vadd.f32 %v6652_v26, %v2331_v37  ;;  %v2351_v3 = vadd.f32 %v6655_v62, %v2337_v49  ;;  %v2373_v19 = vpop.permute.xlu0 %2372  ;;  %v2375_v0 = vpop.permute.xlu1 %2374 }
 0x66e   : > { %v2446_v22 = vsel %vm4051_vm5, %v6630_v4, 0.0  ;;  %v2447_v25 = vsel %vm4051_vm5, %v6632_v17, 0.0  ;;  %v2378_v51 = vsel %vm4101_vm8, %v2373_v19, 0.0  ;;  %v2379_v54 = vsel %vm4055_vm6, %v2375_v0, 0.0 }
 0x66f   : > { %v2364_v20 = vadd.f32 %v2362_v39, %v2344_v53  ;;  %v2370_v26 = vadd.f32 %v2368_v21, %v2350_v52  ;;  %v2365_v62 = vadd.f32 %v2363_v33, %v2345_v31  ;;  %v2371_v8 = vadd.f32 %v2369_v10, %v2351_v3 }
 0x670   : > { %v2382_v18 = vmul.f32 %v2381_v5, %v2378_v51  ;;  %v2388_v35 = vmul.f32 %v2387_v16, %v2378_v51  ;;  %v2383_v4 = vmul.f32 %v2381_v5, %v2379_v54  ;;  %v2389_v12 = vmul.f32 %v2387_v16, %v2379_v54 }
 0x671   : > { %v2417_v17 = vmul.f32 %v2415_v30, %v2413_v56  ;;  %v2450_v43 = vmul.f32 %v2449_v44, %v2446_v22  ;;  %v2485_v23 = vpop.permute.xlu0 %2484  ;;  %v2487_v13 = vpop.permute.xlu1 %2486  ;;  %v2456_v5 = vmul.f32 %v2455_v28, %v2446_v22  ;;  %v2451_v16 = vmul.f32 %v2449_v44, %v2447_v25 }
 0x672   : > { %v2384_v34 = vadd.f32 %v2382_v18, %v2364_v20  ;;  %v2390_v37 = vadd.f32 %v2388_v35, %v2370_v26  ;;  %v2385_v49 = vadd.f32 %v2383_v4, %v2365_v62  ;;  %v2391_v39 = vadd.f32 %v2389_v12, %v2371_v8 }
 0x673   : > { %v2457_v32 = vmul.f32 %v2455_v28, %v2447_v25  ;;  %v2490_v30 = vsel %vm4055_vm6, %v2485_v23, 0.0  ;;  %v2491_v10 = vsel %vm4055_vm6, %v2487_v13, 0.0  ;;  %v2557_v31 = vstv %s6724_s22 }
 0x674   : > { %v2418_v46 = vadd.f32 %v2416_v45, %v2384_v34  ;;  %v2424_v56 = vadd.f32 %v2422_v29, %v2390_v37  ;;  %v2419_v21 = vadd.f32 %v2417_v17, %v2385_v49  ;;  %v2425_v33 = vadd.f32 %v2423_v7, %v2391_v39 }
 0x675   : > { %v2505_v53 = vpop.permute.xlu0 %2504  ;;  %v2507_v52 = vpop.permute.xlu1 %2506  ;;  %v2589_v44 = vstv %s6727_s25  ;;  %v2595_v28 = vstv %s6734_s28  ;;  %v2494_v22 = vmul.f32 %v2493_v47, %v2490_v30  ;;  %v2500_v25 = vmul.f32 %v2499_v63, %v2490_v30 }
 0x676   : > { %v2452_v3 = vadd.f32 %v2450_v43, %v2418_v46  ;;  %v2458_v19 = vadd.f32 %v2456_v5, %v2424_v56  ;;  %v2453_v45 = vadd.f32 %v2451_v16, %v2419_v21  ;;  %v2459_v0 = vadd.f32 %v2457_v32, %v2425_v33 }
 0x677   : > { %v2510_v51 = vsel %vm4055_vm6, %v2505_v53, 0.0  ;;  %v2511_v54 = vsel %vm4055_vm6, %v2507_v52, 0.0  ;;  %v2495_v18 = vmul.f32 %v2493_v47, %v2491_v10  ;;  %v2501_v35 = vmul.f32 %v2499_v63, %v2491_v10 }
 0x678   : > { %v2464_v20 = vadd.f32 %v6601_v11, %v2452_v3  ;;  %v2470_v26 = vadd.f32 %v6604_v50, %v2458_v19  ;;  %v2465_v62 = vadd.f32 %v6617_v61, %v2453_v45  ;;  %v2471_v8 = vadd.f32 %v6620_v59, %v2459_v0 }
 0x679   : > { %v2514_v4 = vmul.f32 %v2513_v1, %v2510_v51  ;;  %v2520_v12 = vmul.f32 %v2519_v38, %v2510_v51  ;;  %v2543_v29 = vpop.permute.xlu0 %2542  ;;  %v2545_v17 = vpop.permute.xlu1 %2544  ;;  %v2515_v47 = vmul.f32 %v2513_v1, %v2511_v54  ;;  %v2521_v63 = vmul.f32 %v2519_v38, %v2511_v54 }
 0x67a   : > { %v2476_v11 = vadd.f32 %v6608_v42, %v2464_v20  ;;  %v2482_v50 = vadd.f32 %v6611_v48, %v2470_v26  ;;  %v2477_v61 = vadd.f32 %v6640_v40, %v2465_v62  ;;  %v2483_v59 = vadd.f32 %v6658_v9, %v2471_v8 }
 0x67b   : > { %v2548_v7 = vsel %vm4051_vm5, %v2543_v29, 0.0  ;;  %v2549_v43 = vsel %vm4162_vm9, %v2545_v17, 0.0  ;;  %v2637_v46 = vstv %s6768_s13  ;;  %v2643_v56 = vstv %s6779_s11 }
 0x67c   : > { %v2496_v42 = vadd.f32 %v2494_v22, %v2476_v11  ;;  %v2502_v23 = vadd.f32 %v2500_v25, %v2482_v50  ;;  %v2497_v48 = vadd.f32 %v2495_v18, %v2477_v61  ;;  %v2503_v40 = vadd.f32 %v2501_v35, %v2483_v59 }
 0x67d   : > { %v2552_v9 = vmul.f32 %v2551_v55, %v2548_v7  ;;  %v2558_v1 = vmul.f32 %v2557_v31, %v2548_v7  ;;  %v2553_v38 = vmul.f32 %v2551_v55, %v2549_v43  ;;  %v2559_v13 = vmul.f32 %v2557_v31, %v2549_v43  ;;  %v2581_v34 = vpop.permute.xlu0 %2580  ;;  %v2583_v37 = vpop.permute.xlu1 %2582 }
 0x67e   : > { %v2516_v49 = vadd.f32 %v2514_v4, %v2496_v42  ;;  %v2522_v39 = vadd.f32 %v2520_v12, %v2502_v23  ;;  %v2517_v5 = vadd.f32 %v2515_v47, %v2497_v48  ;;  %v2523_v16 = vadd.f32 %v2521_v63, %v2503_v40 }
 0x67f   : > { %v2586_v32 = vsel %vm4051_vm5, %v2581_v34, 0.0  ;;  %v2587_v30 = vsel %vm4162_vm9, %v2583_v37, 0.0  ;;  %v7898_v45 = vstv %s6540_s3  ;;  %v7899_v22 = vstv %s6543_s18  ;;  %s7902_s3 = sld [smem:[#allocation40_spill]]  ;;  %s2932_s18 = sshll.u32 %s7900_s30, 9 }
 0x680   : > { %v2554_v55 = vadd.f32 %v2552_v9, %v2516_v49  ;;  %v2560_v21 = vadd.f32 %v2558_v1, %v2522_v39  ;;  %v2555_v33 = vadd.f32 %v2553_v38, %v2517_v5  ;;  %v2561_v10 = vadd.f32 %v2559_v13, %v2523_v16  ;;  %s6857_s29 = scalar_lea.hbm %s7904_s20, %s2932_s18 }
 0x681   : > { %v2590_v53 = vmul.f32 %v2589_v44, %v2586_v32  ;;  %v2596_v52 = vmul.f32 %v2595_v28, %v2586_v32  ;;  %v2591_v31 = vmul.f32 %v2589_v44, %v2587_v30  ;;  %v2597_v3 = vmul.f32 %v2595_v28, %v2587_v30  ;;  %v2629_v14 = vpop.permute.xlu0 %2628  ;;  %v2631_v19 = vpop.permute.xlu1 %2630 }
 0x682   : > { %v2634_v6 = vsel %vm4055_vm6, %v2629_v14, 0.0  ;;  %v2619_v0 = vmul.f32 %v7898_v45, %v6628_v60  ;;  %v2625_v25 = vmul.f32 %v7899_v22, %v6628_v60  ;;  %v2635_v51 = vsel %vm4178_vm10, %v2631_v19, 0.0 }
 0x683   : > { %v2592_v44 = vadd.f32 %v2590_v53, %v2554_v55  ;;  %v2598_v28 = vadd.f32 %v2596_v52, %v2560_v21  ;;  %v2593_v54 = vadd.f32 %v2591_v31, %v2555_v33  ;;  %v2599_v20 = vadd.f32 %v2597_v3, %v2561_v10 }
 0x684   : > { %v2638_v26 = vmul.f32 %v2637_v46, %v2634_v6  ;;  %v2644_v62 = vmul.f32 %v2643_v56, %v2634_v6  ;;  %v2657_v8 = vstv %s6806_s27  ;;  %v2663_v18 = vstv %s6809_s1 }
 0x685   : > { %v2606_v35 = vadd.f32 %v6667_v57, %v2592_v44  ;;  %v2612_v4 = vadd.f32 %v6670_v27, %v2598_v28  ;;  %v2607_v12 = vadd.f32 %v6672_v58, %v2593_v54  ;;  %v2613_v60 = vadd.f32 %v6674_v24, %v2599_v20  ;;  %v2649_v29 = vpop.permute.xlu0 %2648  ;;  %v2651_v17 = vpop.permute.xlu1 %2650  ;;  %v3104_v49 = vld [vmem:[%s7902_s3] sm:$0xff]  ;;  %v3105_v5 = vld [vmem:[%s7902_s3 + $0x10] sm:$0xff]  ;;  %v3106_v32 = vld [vmem:[%s7902_s3 + $0x8] sm:$0xff] }
 0x686   : > { %v2639_v11 = vmul.f32 %v2637_v46, %v2635_v51  ;;  %v2645_v50 = vmul.f32 %v2643_v56, %v2635_v51  ;;  %v2654_v61 = vsel %vm4055_vm6, %v2649_v29, 0.0  ;;  %v2655_v59 = vsel %vm4178_vm10, %v2651_v17, 0.0  ;;  %v3107_v46 = vld [vmem:[%s7902_s3 + $0x18] sm:$0xff] }
 0x687   : > { %v2620_v57 = vadd.f32 %v6681_v2, %v2606_v35  ;;  %v2626_v27 = vadd.f32 %v6686_v36, %v2612_v4  ;;  %v2621_v47 = vadd.f32 %v2619_v0, %v2607_v12  ;;  %v2627_v58 = vadd.f32 %v2625_v25, %v2613_v60 }
 0x688   : > { %v2658_v24 = vmul.f32 %v2657_v8, %v2654_v61  ;;  %v2664_v63 = vmul.f32 %v2663_v18, %v2654_v61  ;;  %v2659_v7 = vmul.f32 %v2657_v8, %v2655_v59  ;;  %v2665_v43 = vmul.f32 %v2663_v18, %v2655_v59 }
 0x689   : > { %v2640_v42 = vadd.f32 %v2638_v26, %v2620_v57  ;;  %v2646_v23 = vadd.f32 %v2644_v62, %v2626_v27  ;;  %v2641_v15 = vadd.f32 %v2639_v11, %v2621_v47  ;;  %v2647_v48 = vadd.f32 %v2645_v50, %v2627_v58 }
 0x68a   : > { %v2669_v40 = vstv %s6822_s7 }
 0x68b   : > { %v2660_v9 = vadd.f32 %v2658_v24, %v2640_v42  ;;  %v2666_v2 = vadd.f32 %v2664_v63, %v2646_v23  ;;  %v2661_v1 = vadd.f32 %v2659_v7, %v2641_v15  ;;  %v2667_v36 = vadd.f32 %v2665_v43, %v2647_v48 }
 0x68d   : > { %v2670_v38 = vadd.f32 %v2669_v40, %v2660_v9  ;;  %v2674_v13 = vadd.f32 %v2673_v41, %v2666_v2  ;;  %v2671_v34 = vadd.f32 %v2669_v40, %v2661_v1  ;;  %v2675_v37 = vadd.f32 %v2673_v41, %v2667_v36 }
 0x68f   : > { %v2676_v39 = vadd.f32 %v3104_v49, %v2670_v38  ;;  %v2681_v16 = vadd.f32 %v3105_v5, %v2674_v13  ;;  %v2677_v30 = vadd.f32 %v3106_v32, %v2671_v34  ;;  %v2682_v56 = vadd.f32 %v3107_v46, %v2675_v37 }
 0x691   : > { %2679 = vst.msk [vmem:[%s586_s23] sm:$0xff] %vm2678_vm0, %v2676_v39  ;;  %2920 = vst.msk [vmem:[%s586_s23 + $0x10] sm:$0xff] %vm2678_vm0, %v2681_v16 }
 0x692   : > { %2680 = vst.msk [vmem:[%s586_s23 + $0x8] sm:$0xff] %vm2678_vm0, %v2677_v30  ;;  %2921 = vst.msk [vmem:[%s586_s23 + $0x18] sm:$0xff] %vm2678_vm0, %v2682_v56 }
 0x693   : > { %3312 = shalt.err (!%p3309_p1)
}
 0x694   : > { %s3313_s14 = scalar_lea.hbm %s6857_s29, 512  ;;  %s3317_s28 = scalar_lea.hbm %s7904_s20, 2048 }
 0x695   : > { %p3314_p2 = scmp.ne.s32.totalorder %s6857_s29, %s3313_s14  ;;  %p3318_p9 = scmp.lt.s32.totalorder %s6857_s29, %s7904_s20 }
 0x696   : > { %p3319_p10 = scmp.lt.s32.totalorder %s3317_s28, %s3313_s14 }
 0x697   : > { %p3315_p4 = pnand %p3314_p2, %p7906_p6 }
 0x698   : > { %p3320_p12 = por %p3319_p10, %p3318_p9 }
 0x699   : > { %p3316_p3 = pneg %p3315_p4 }
 0x69b   : > { %p3321_p5 = pnand %p3320_p12, %p3316_p3 }
 0x69d   : > { %3324 = shalt.err (!%p3321_p5)
}
 0x69e   : > { %s3406_s13 = smov 128   ;;  %s3407_s11 = smov 8  }
 0x69f   : > { %2973 = dma.vmem_to_hbm [thread:$0]  (%p7906_p6), %s6859_s5, 512, %s6857_s29, %s2687_s0, %s3406_s13, %s3406_s13, %s3407_s11  }
 0x6a0 PF: > { %s7907_s6 = sld [smem:[#allocation33_spill]] }
 0x6a1   : > { %s7908_s26 = sld [smem:[#allocation30_spill]] }
 0x6a2   : > { %s7909_s27 = sld [smem:[#allocation38_spill]] }
 0x6a6   : > { %p3033_p13 = scmp.ge.s32.totalorder %s7907_s6, 2 }
 0x6a7   : > { %s2716_s1 = sand.u32 1, %s7908_s26  }
 0x6a8   : > { %p7910_p7 = scmp.ne.s32.totalorder %s7909_s27, 0  ;;  %s2717_s7 = scalar_lea.sflag [#allocation4], %s2716_s1 }
 0x6aa   : > { %p3011_p8 = pnand %p3033_p13, %p7910_p7 }
 0x6ac   : > { %p3012_p11 = pneg %p3011_p8 }
 0x6ae   : > { %3370 = dma.done.wait (%p3012_p11), %s2717_s7, 512  }
 0x6af   : > { %3372 = vsyncadd (%p3012_p11), %s2717_s7, 4294966784  ;;  %s7911_s24 = sld [smem:[#allocation35_spill]] }
 0x6b0   : > { %s7912_s21 = sld [smem:[#allocation31_spill]] }
 0x6b1   : > { %s7913_s22 = sld [smem:[#allocation32_spill]] }
 0x6b2   : > { %s7914_s23 = sld [smem:[#allocation36_spill]] }
 0x6b5   : > { %p33_p0 = scmp.ge.s32.totalorder %s7911_s24, 6  }
 0x6b7   :  { %35 = sbr.rel (!%p33_p0) target bundleno = 26 (0x1a), region = 165 }
 0x6bc   :  { %2722 = vsyncpa [#allocation3], 1 }
 0x6bd   :  { %2724 = vsyncpa [#allocation3 + $0x1], 1 }
 0x6be   :  { %2725 = vsyncpa [#allocation7], 1 }
 0x6bf   :  { %2727 = vsyncpa [#allocation7 + $0x1], 1 }
 0x6c0   :  { %2728 = vsyncpa [#allocation4], 1 }
 0x6c1   :  { %2730 = vsyncpa [#allocation4 + $0x1], 1 }
 0x6c2   :  { %2731 = vsyncpa [#allocation5], 1 }
 0x6c3   :  { %2733 = vsyncpa [#allocation5 + $0x1], 1 }
 0x6c4   :  { %2734 = vsyncpa [#allocation10], 1 }
 0x6c5   :  { %2735 = vsyncpa [#allocation13], 1 }
 0x6c6   :  { %2736 = vsyncpa [#allocation16], 1 }
 0x6c7   :  { %2737 = vsyncpa [#allocation19], 1 }

</bundles_post_ra>
